<compile_context>
chip_gen: v5e
topology: v5e:2x2
jax: 0.10.0
libtpu: 0.0.40
codegen_flags: <defaults>
</compile_context>

<pallas_src>
import functools

import jax
import jax.numpy as jnp
from jax.experimental import pallas as pl
from jax.experimental.pallas import tpu as pltpu

_VMEM_LIMIT = 48 * 1024 * 1024


# ---------------------------------------------------------------------------
# In-kernel 3x3 "same" conv + bias + ReLU on a row-halo'd slab.
# ---------------------------------------------------------------------------
def _conv3x3_relu(slab, wp, b, cout):
    # slab: (R+2, W, Cin) bf16   (one halo row above/below the R output rows)
    # wp  : (3*Cin, 3*Cout) bf16 (K packs dy row taps, N packs dx col taps)
    # b   : (1, Cout) f32
    # -> (R, W, Cout) f32
    rin, wd, cin = slab.shape
    r = rin - 2
    # dy taps: three row-aligned slices concatenated along channels -> K = 3*Cin.
    xcat = jnp.concatenate([slab[0:r], slab[1:r + 1], slab[2:r + 2]], axis=-1)
    q = jnp.dot(xcat.reshape(r * wd, 3 * cin), wp,
                preferred_element_type=jnp.float32).reshape(r, wd, 3 * cout)
    # dx taps were packed along N; combine with W-shifted adds (zero-pad in W).
    zcol = jnp.zeros((r, 1, cout), jnp.float32)
    left = jnp.concatenate([zcol, q[:, :wd - 1, 0:cout]], axis=1)           # dx=0
    mid = q[:, :, cout:2 * cout]                                            # dx=1
    right = jnp.concatenate([q[:, 1:, 2 * cout:3 * cout], zcol], axis=1)    # dx=2
    return jnp.maximum(left + mid + right + b, 0.0)


def _halo_row_mask(h, r0, n_rows_total):
    # Zero the halo rows of an intermediate activation that fall outside the
    # image (they are the *conv padding* of the next conv, not real data).
    rows = h.shape[0]
    row = jax.lax.broadcasted_iota(jnp.int32, (rows, 1, 1), 0) + (r0 - 1)
    return jnp.where((row >= 0) & (row < n_rows_total), h, 0.0)


# ---------------------------------------------------------------------------
# Stage 1: conv1(3->C1)+ReLU, conv2(C1->C2)+ReLU, maxpool 2x2 stride 2.
# ---------------------------------------------------------------------------
def _stage1_kernel(xm_ref, xh_ref, w1_ref, b1_ref, w2_ref, b2_ref, o_ref,
                   *, H, W, TH, C1, C2):
    t = pl.program_id(1)
    r0 = t * TH
    xm = xm_ref[0]                                    # (TH, W, Cin)
    xh = xh_ref[0, 0]                                 # (4,  W, Cin)
    slab = jnp.concatenate([xh[0:2], xm, xh[2:4]], axis=0)   # rows r0-2 .. r0+TH+1

    h1 = _conv3x3_relu(slab, w1_ref[...], b1_ref[...], C1)   # (TH+2, W, C1) f32
    h1 = _halo_row_mask(h1, r0, H).astype(jnp.bfloat16)

    h2 = _conv3x3_relu(h1, w2_ref[...], b2_ref[...], C2)     # (TH, W, C2) f32

    # bf16 before the pool (max commutes with monotone rounding -> identical).
    pooled = jnp.max(
        h2.astype(jnp.bfloat16).reshape(TH // 2, 2, W // 2, 2, C2), axis=(1, 3))
    o_ref[...] = pooled.reshape(1, 1, TH // 2, (W // 2) * C2).astype(o_ref.dtype)


def _stage1(x, halo, w1, b1, w2, b2, *, TH):
    N, H, W, Cin = x.shape
    C1, C2 = b1.shape[-1], b2.shape[-1]
    nt = H // TH
    kernel = functools.partial(_stage1_kernel, H=H, W=W, TH=TH, C1=C1, C2=C2)
    return pl.pallas_call(
        kernel,
        out_shape=jax.ShapeDtypeStruct((N, nt, TH // 2, (W // 2) * C2),
                                       jnp.bfloat16),
        grid=(N, nt),
        in_specs=[
            pl.BlockSpec((1, TH, W, Cin), lambda n, t: (n, t, 0, 0)),
            pl.BlockSpec((1, 1, 4, W, Cin), lambda n, t: (n, t, 0, 0, 0)),
            pl.BlockSpec(w1.shape, lambda n, t: (0, 0)),
            pl.BlockSpec(b1.shape, lambda n, t: (0, 0)),
            pl.BlockSpec(w2.shape, lambda n, t: (0, 0)),
            pl.BlockSpec(b2.shape, lambda n, t: (0, 0)),
        ],
        out_specs=pl.BlockSpec((1, 1, TH // 2, (W // 2) * C2),
                               lambda n, t: (n, t, 0, 0)),
        compiler_params=pltpu.CompilerParams(
            dimension_semantics=("parallel", "parallel"),
            vmem_limit_bytes=_VMEM_LIMIT),
    )(x, halo, w1, b1, w2, b2)


# ---------------------------------------------------------------------------
# Stage 2: conv3(C2->C3)+ReLU, conv4(C3->C4)+ReLU.
# ---------------------------------------------------------------------------
def _stage2_kernel(xm_ref, xh_ref, w3_ref, b3_ref, w4_ref, b4_ref, o_ref,
                   *, H, W, TH, C3, C4):
    t = pl.program_id(1)
    r0 = t * TH
    slab = jnp.concatenate([xh_ref[0, 0][0:2], xm_ref[0], xh_ref[0, 0][2:4]],
                           axis=0)                               # (TH+4, W, C2)

    h3 = _conv3x3_relu(slab, w3_ref[...], b3_ref[...], C3)       # (TH+2, W, C3)
    h3 = _halo_row_mask(h3, r0, H).astype(jnp.bfloat16)

    h4 = _conv3x3_relu(h3, w4_ref[...], b4_ref[...], C4)         # (TH, W, C4)
    o_ref[...] = h4.reshape(1, 1, TH, W * C4).astype(o_ref.dtype)


def _stage2(x, halo, w3, b3, w4, b4, *, TH, out_dtype):
    N, H, W, C2 = x.shape
    C3, C4 = b3.shape[-1], b4.shape[-1]
    nt = H // TH
    kernel = functools.partial(_stage2_kernel, H=H, W=W, TH=TH, C3=C3, C4=C4)
    return pl.pallas_call(
        kernel,
        out_shape=jax.ShapeDtypeStruct((N, nt, TH, W * C4), out_dtype),
        grid=(N, nt),
        in_specs=[
            pl.BlockSpec((1, TH, W, C2), lambda n, t: (n, t, 0, 0)),
            pl.BlockSpec((1, 1, 4, W, C2), lambda n, t: (n, t, 0, 0, 0)),
            pl.BlockSpec(w3.shape, lambda n, t: (0, 0)),
            pl.BlockSpec(b3.shape, lambda n, t: (0, 0)),
            pl.BlockSpec(w4.shape, lambda n, t: (0, 0)),
            pl.BlockSpec(b4.shape, lambda n, t: (0, 0)),
        ],
        out_specs=pl.BlockSpec((1, 1, TH, W * C4), lambda n, t: (n, t, 0, 0)),
        compiler_params=pltpu.CompilerParams(
            dimension_semantics=("parallel", "parallel"),
            vmem_limit_bytes=_VMEM_LIMIT),
    )(x, halo, w3, b3, w4, b4)


# ---------------------------------------------------------------------------
# Wrapper-side helpers.
# ---------------------------------------------------------------------------
def _pick_tile(dim, cap, multiple=1):
    best = multiple
    for d in range(multiple, min(cap, dim) + 1, multiple):
        if dim % d == 0:
            best = d
    return best


def _build_halo(x, th):
    # x: (N, R, W, C) -> (N, R//th, 4, W, C): for tile t the rows
    # [t*th-2, t*th-1, t*th+th, t*th+th+1], zero where outside the image.
    _, R, _, _ = x.shape
    xp = jnp.pad(x, ((0, 0), (2, 2), (0, 0), (0, 0)))
    tiles = []
    for t in range(R // th):
        top = xp[:, t * th: t * th + 2]
        bot = xp[:, t * th + th + 2: t * th + th + 4]
        tiles.append(jnp.concatenate([top, bot], axis=1))
    return jnp.stack(tiles, axis=1)


def init_vgg_params(key):
    # Deterministic synthetic weights with VGG.features[:9] conv shapes (HWIO).
    shapes = [(3, 64), (64, 64), (64, 128), (128, 128)]
    params = []
    for cin, cout in shapes:
        key, kw, kb = jax.random.split(key, 3)
        scale = (1.0 / (3 * 3 * cin)) ** 0.5
        w = jax.random.normal(kw, (3, 3, cin, cout), jnp.float32) * scale
        b = jax.random.normal(kb, (cout,), jnp.float32) * 0.01
        params.append((w, b))
    return params


def _pack_params(params):
    # (3,3,Cin,Cout) HWIO -> (3*Cin, 3*Cout): K packs dy, N packs dx. bf16 MXU inputs.
    packed = []
    for w, b in params:
        cin, cout = w.shape[2], w.shape[3]
        wp = jnp.transpose(w, (0, 2, 1, 3)).reshape(3 * cin, 3 * cout)
        packed.append((wp.astype(jnp.bfloat16),
                       b.reshape(1, cout).astype(jnp.float32)))
    return packed


def feature_extractor(x_nchw, params, *, tile_rows1=32, tile_rows2=16,
                      out_dtype=jnp.float32):
    (w1, b1), (w2, b2), (w3, b3), (w4, b4) = _pack_params(params)
    N, _, H, W = x_nchw.shape
    assert H % 2 == 0 and W % 2 == 0, "maxpool(2,2) needs even H, W"
    C2, C4 = b2.shape[-1], b4.shape[-1]

    x = jnp.transpose(x_nchw, (0, 2, 3, 1)).astype(jnp.bfloat16)     # NHWC bf16

    th1 = _pick_tile(H, tile_rows1, multiple=2)
    y1 = _stage1(x, _build_halo(x, th1), w1, b1, w2, b2, TH=th1)
    H2, W2 = H // 2, W // 2
    y1 = y1.reshape(N, H2, W2, C2)                                   # free reshape

    th2 = _pick_tile(H2, tile_rows2, multiple=1)
    y2 = _stage2(y1, _build_halo(y1, th2), w3, b3, w4, b4, TH=th2,
                 out_dtype=out_dtype)
    y2 = y2.reshape(N, H2, W2, C4)
    return jnp.transpose(y2, (0, 3, 1, 2))                           # NHWC -> NCHW


def _reference(x_nchw, params):
    # Pure-JAX f32 reference of VGG.features[:9] for tolerance checking.
    x = jnp.transpose(x_nchw, (0, 2, 3, 1)).astype(jnp.float32)

    def conv(h, w, b):
        y = jax.lax.conv_general_dilated(
            h, w, (1, 1), "SAME", dimension_numbers=("NHWC", "HWIO", "NHWC"))
        return jax.nn.relu(y + b)

    (w1, b1), (w2, b2), (w3, b3), (w4, b4) = params
    h = conv(conv(x, w1, b1), w2, b2)
    n, hh, ww, c = h.shape
    h = jnp.max(h.reshape(n, hh // 2, 2, ww // 2, 2, c), axis=(2, 4))
    h = conv(conv(h, w3, b3), w4, b4)
    return jnp.transpose(h, (0, 3, 1, 2))


if __name__ == "__main__":
    key = jax.random.PRNGKey(0)
    kx, kp = jax.random.split(key)
    x = jax.random.normal(kx, (2, 3, 16, 16), jnp.float32)   # NCHW like torch
    params = init_vgg_params(kp)

    # Small row tiles here to exercise the multi-tile + halo paths at 16x16.
    fn = jax.jit(functools.partial(feature_extractor, tile_rows1=8, tile_rows2=4))
    out = jax.block_until_ready(fn(x, params))

    assert out.shape == (2, 128, 8, 8), out.shape
    assert bool(jnp.all(jnp.isfinite(out)))

    ref = _reference(x, params)
    err = float(jnp.max(jnp.abs(out.astype(jnp.float32) - ref)))
    scale = float(jnp.max(jnp.abs(ref))) + 1e-6
    assert err <= 5e-2 * scale, (err, scale)

    print("KERNEL_OK")
</pallas_src>

<mosaic_0001>
module attributes {stable_mosaic.version = 11 : i64} {
  func.func @_stage1_kernel(%arg0: i32, %arg1: i32, %arg2: memref<1x8x16x3xbf16, #tpu.memory_space<vmem>>, %arg3: memref<1x1x4x16x3xbf16, #tpu.memory_space<vmem>>, %arg4: memref<9x192xbf16, #tpu.memory_space<vmem>>, %arg5: memref<1x64xf32, #tpu.memory_space<vmem>>, %arg6: memref<192x192xbf16, #tpu.memory_space<vmem>>, %arg7: memref<1x64xf32, #tpu.memory_space<vmem>>, %arg8: memref<1x1x4x512xbf16, #tpu.memory_space<vmem>>) attributes {dimension_semantics = [#tpu.dimension_semantics<parallel>, #tpu.dimension_semantics<parallel>], iteration_bounds = array<i64: 2, 2>, scalar_prefetch = 0 : i64, scratch_operands = 0 : i64, tpu.core_type = #tpu.core_type<tc>, window_params = [{transform_indices = @transform_0, window_bounds = array<i64: 1, 8, 16, 3>}, {transform_indices = @transform_1, window_bounds = array<i64: 1, 1, 4, 16, 3>}, {pipeline_mode = #tpu.pipeline_mode<synchronous>, transform_indices = @transform_2, window_bounds = array<i64: 9, 192>}, {pipeline_mode = #tpu.pipeline_mode<synchronous>, transform_indices = @transform_3, window_bounds = array<i64: 1, 64>}, {pipeline_mode = #tpu.pipeline_mode<synchronous>, transform_indices = @transform_4, window_bounds = array<i64: 192, 192>}, {pipeline_mode = #tpu.pipeline_mode<synchronous>, transform_indices = @transform_5, window_bounds = array<i64: 1, 64>}, {transform_indices = @transform_6, window_bounds = array<i64: 1, 1, 4, 512>}]} {
    %c8_i32 = arith.constant 8 : i32
    %0 = arith.muli %arg1, %c8_i32 : i32
    %c0 = arith.constant 0 : index
    %c0_0 = arith.constant 0 : index
    %c0_1 = arith.constant 0 : index
    %c0_2 = arith.constant 0 : index
    %1 = vector.load %arg2[%c0, %c0_0, %c0_1, %c0_2] : memref<1x8x16x3xbf16, #tpu.memory_space<vmem>>, vector<1x8x16x3xbf16>
    %2 = vector.shape_cast %1 : vector<1x8x16x3xbf16> to vector<8x16x3xbf16>
    %c0_3 = arith.constant 0 : index
    %c0_4 = arith.constant 0 : index
    %c0_5 = arith.constant 0 : index
    %c0_6 = arith.constant 0 : index
    %c0_7 = arith.constant 0 : index
    %3 = vector.load %arg3[%c0_3, %c0_4, %c0_5, %c0_6, %c0_7] : memref<1x1x4x16x3xbf16, #tpu.memory_space<vmem>>, vector<1x1x4x16x3xbf16>
    %4 = vector.shape_cast %3 : vector<1x1x4x16x3xbf16> to vector<4x16x3xbf16>
    %5 = vector.extract_strided_slice %4 {offsets = [0, 0, 0], sizes = [2, 16, 3], strides = [1, 1, 1]} : vector<4x16x3xbf16> to vector<2x16x3xbf16>
    %6 = vector.extract_strided_slice %4 {offsets = [2, 0, 0], sizes = [2, 16, 3], strides = [1, 1, 1]} : vector<4x16x3xbf16> to vector<2x16x3xbf16>
    %7 = tpu.concatenate %5, %2, %6 in 0 : vector<2x16x3xbf16>, vector<8x16x3xbf16>, vector<2x16x3xbf16> -> vector<12x16x3xbf16>
    %c0_8 = arith.constant 0 : index
    %c0_9 = arith.constant 0 : index
    %8 = vector.load %arg4[%c0_8, %c0_9] : memref<9x192xbf16, #tpu.memory_space<vmem>>, vector<9x192xbf16>
    %c0_10 = arith.constant 0 : index
    %c0_11 = arith.constant 0 : index
    %9 = vector.load %arg5[%c0_10, %c0_11] : memref<1x64xf32, #tpu.memory_space<vmem>>, vector<1x64xf32>
    %10 = vector.extract_strided_slice %7 {offsets = [0, 0, 0], sizes = [10, 16, 3], strides = [1, 1, 1]} : vector<12x16x3xbf16> to vector<10x16x3xbf16>
    %11 = vector.extract_strided_slice %7 {offsets = [1, 0, 0], sizes = [10, 16, 3], strides = [1, 1, 1]} : vector<12x16x3xbf16> to vector<10x16x3xbf16>
    %12 = vector.extract_strided_slice %7 {offsets = [2, 0, 0], sizes = [10, 16, 3], strides = [1, 1, 1]} : vector<12x16x3xbf16> to vector<10x16x3xbf16>
    %13 = tpu.concatenate %10, %11, %12 in 2 : vector<10x16x3xbf16>, vector<10x16x3xbf16>, vector<10x16x3xbf16> -> vector<10x16x9xbf16>
    %14 = vector.shape_cast %13 : vector<10x16x9xbf16> to vector<160x9xbf16>
    %cst = arith.constant dense<0.000000e+00> : vector<160x192xf32>
    %15 = tpu.matmul %14, %8, %cst {dimension_numbers = #tpu.dot_dimension_numbers<[1], [0], [0], [1], [0, 0, 1, 1], [], []>} : vector<160x9xbf16>, vector<9x192xbf16>, vector<160x192xf32> -> vector<160x192xf32>
    %16 = vector.shape_cast %15 : vector<160x192xf32> to vector<10x16x192xf32>
    %cst_12 = arith.constant 0.000000e+00 : f32
    %17 = vector.broadcast %cst_12 : f32 to vector<10x1x64xf32>
    %18 = vector.extract_strided_slice %16 {offsets = [0, 0, 0], sizes = [10, 15, 64], strides = [1, 1, 1]} : vector<10x16x192xf32> to vector<10x15x64xf32>
    %19 = tpu.concatenate %17, %18 in 1 : vector<10x1x64xf32>, vector<10x15x64xf32> -> vector<10x16x64xf32>
    %20 = vector.extract_strided_slice %16 {offsets = [0, 0, 64], sizes = [10, 16, 64], strides = [1, 1, 1]} : vector<10x16x192xf32> to vector<10x16x64xf32>
    %21 = vector.extract_strided_slice %16 {offsets = [0, 1, 128], sizes = [10, 15, 64], strides = [1, 1, 1]} : vector<10x16x192xf32> to vector<10x15x64xf32>
    %22 = tpu.concatenate %21, %17 in 1 : vector<10x15x64xf32>, vector<10x1x64xf32> -> vector<10x16x64xf32>
    %23 = arith.addf %19, %20 : vector<10x16x64xf32>
    %24 = arith.addf %23, %22 : vector<10x16x64xf32>
    %25 = vector.shape_cast %9 : vector<1x64xf32> to vector<1x1x64xf32>
    %26 = vector.broadcast %25 : vector<1x1x64xf32> to vector<10x16x64xf32>
    %27 = arith.addf %24, %26 : vector<10x16x64xf32>
    %cst_13 = arith.constant 0.000000e+00 : f32
    %28 = vector.broadcast %cst_13 : f32 to vector<10x16x64xf32>
    %29 = arith.maximumf %27, %28 : vector<10x16x64xf32>
    %30 = tpu.iota {dimensions = array<i32: 0>} : vector<10x1x1xi32>
    %c1_i32 = arith.constant 1 : i32
    %31 = arith.subi %0, %c1_i32 : i32
    %32 = vector.broadcast %31 : i32 to vector<10x1x1xi32>
    %33 = arith.addi %30, %32 : vector<10x1x1xi32>
    %c0_i32 = arith.constant 0 : i32
    %34 = vector.broadcast %c0_i32 : i32 to vector<10x1x1xi32>
    %35 = arith.cmpi sge, %33, %34 : vector<10x1x1xi32>
    %c16_i32 = arith.constant 16 : i32
    %36 = vector.broadcast %c16_i32 : i32 to vector<10x1x1xi32>
    %37 = arith.cmpi slt, %33, %36 : vector<10x1x1xi32>
    %38 = arith.andi %35, %37 : vector<10x1x1xi1>
    %cst_14 = arith.constant 0.000000e+00 : f32
    %39 = vector.shape_cast %38 : vector<10x1x1xi1> to vector<10x1x1xi1>
    %40 = vector.broadcast %39 : vector<10x1x1xi1> to vector<10x16x64xi1>
    %41 = vector.broadcast %cst_14 : f32 to vector<10x16x64xf32>
    %42 = arith.select %40, %29, %41 : vector<10x16x64xi1>, vector<10x16x64xf32>
    %43 = arith.truncf %42 : vector<10x16x64xf32> to vector<10x16x64xbf16>
    %c0_15 = arith.constant 0 : index
    %c0_16 = arith.constant 0 : index
    %44 = vector.load %arg6[%c0_15, %c0_16] : memref<192x192xbf16, #tpu.memory_space<vmem>>, vector<192x192xbf16>
    %c0_17 = arith.constant 0 : index
    %c0_18 = arith.constant 0 : index
    %45 = vector.load %arg7[%c0_17, %c0_18] : memref<1x64xf32, #tpu.memory_space<vmem>>, vector<1x64xf32>
    %46 = vector.extract_strided_slice %43 {offsets = [0, 0, 0], sizes = [8, 16, 64], strides = [1, 1, 1]} : vector<10x16x64xbf16> to vector<8x16x64xbf16>
    %47 = vector.extract_strided_slice %43 {offsets = [1, 0, 0], sizes = [8, 16, 64], strides = [1, 1, 1]} : vector<10x16x64xbf16> to vector<8x16x64xbf16>
    %48 = vector.extract_strided_slice %43 {offsets = [2, 0, 0], sizes = [8, 16, 64], strides = [1, 1, 1]} : vector<10x16x64xbf16> to vector<8x16x64xbf16>
    %49 = tpu.concatenate %46, %47, %48 in 2 : vector<8x16x64xbf16>, vector<8x16x64xbf16>, vector<8x16x64xbf16> -> vector<8x16x192xbf16>
    %50 = vector.shape_cast %49 : vector<8x16x192xbf16> to vector<128x192xbf16>
    %cst_19 = arith.constant dense<0.000000e+00> : vector<128x192xf32>
    %51 = tpu.matmul %50, %44, %cst_19 {dimension_numbers = #tpu.dot_dimension_numbers<[1], [0], [0], [1], [0, 0, 1, 1], [], []>} : vector<128x192xbf16>, vector<192x192xbf16>, vector<128x192xf32> -> vector<128x192xf32>
    %52 = vector.shape_cast %51 : vector<128x192xf32> to vector<8x16x192xf32>
    %cst_20 = arith.constant 0.000000e+00 : f32
    %53 = vector.broadcast %cst_20 : f32 to vector<8x1x64xf32>
    %54 = vector.extract_strided_slice %52 {offsets = [0, 0, 0], sizes = [8, 15, 64], strides = [1, 1, 1]} : vector<8x16x192xf32> to vector<8x15x64xf32>
    %55 = tpu.concatenate %53, %54 in 1 : vector<8x1x64xf32>, vector<8x15x64xf32> -> vector<8x16x64xf32>
    %56 = vector.extract_strided_slice %52 {offsets = [0, 0, 64], sizes = [8, 16, 64], strides = [1, 1, 1]} : vector<8x16x192xf32> to vector<8x16x64xf32>
    %57 = vector.extract_strided_slice %52 {offsets = [0, 1, 128], sizes = [8, 15, 64], strides = [1, 1, 1]} : vector<8x16x192xf32> to vector<8x15x64xf32>
    %58 = tpu.concatenate %57, %53 in 1 : vector<8x15x64xf32>, vector<8x1x64xf32> -> vector<8x16x64xf32>
    %59 = arith.addf %55, %56 : vector<8x16x64xf32>
    %60 = arith.addf %59, %58 : vector<8x16x64xf32>
    %61 = vector.shape_cast %45 : vector<1x64xf32> to vector<1x1x64xf32>
    %62 = vector.broadcast %61 : vector<1x1x64xf32> to vector<8x16x64xf32>
    %63 = arith.addf %60, %62 : vector<8x16x64xf32>
    %cst_21 = arith.constant 0.000000e+00 : f32
    %64 = vector.broadcast %cst_21 : f32 to vector<8x16x64xf32>
    %65 = arith.maximumf %63, %64 : vector<8x16x64xf32>
    %66 = arith.truncf %65 : vector<8x16x64xf32> to vector<8x16x64xbf16>
    %67 = vector.shape_cast %66 : vector<8x16x64xbf16> to vector<4x2x8x2x64xbf16>
    %cst_22 = arith.constant dense<0xFF80> : vector<4x8x64xbf16>
    %68 = vector.multi_reduction <maximumf>, %67, %cst_22 [1, 3] : vector<4x2x8x2x64xbf16> to vector<4x8x64xbf16>
    %69 = vector.shape_cast %68 : vector<4x8x64xbf16> to vector<1x1x4x512xbf16>
    %c0_23 = arith.constant 0 : index
    %c0_24 = arith.constant 0 : index
    %c0_25 = arith.constant 0 : index
    %c0_26 = arith.constant 0 : index
    %70 = vector.load %arg8[%c0_23, %c0_24, %c0_25, %c0_26] : memref<1x1x4x512xbf16, #tpu.memory_space<vmem>>, vector<1x1x4x512xbf16>
    tpu.vector_store %arg8[%c0_23, %c0_24, %c0_25, %c0_26], %69 {strides = array<i32>} : memref<1x1x4x512xbf16, #tpu.memory_space<vmem>>, vector<1x1x4x512xbf16>,
    return
  }
  func.func @transform_0(%arg0: i32, %arg1: i32) -> (i32, i32, i32, i32) {
    %c0_i32 = arith.constant 0 : i32
    %c0_i32_0 = arith.constant 0 : i32
    %c0_i32_1 = arith.constant 0 : i32
    return %arg0, %arg1, %c0_i32, %c0_i32_0 : i32, i32, i32, i32
  }
  func.func @transform_1(%arg0: i32, %arg1: i32) -> (i32, i32, i32, i32, i32) {
    %c0_i32 = arith.constant 0 : i32
    %c0_i32_0 = arith.constant 0 : i32
    %c0_i32_1 = arith.constant 0 : i32
    %c0_i32_2 = arith.constant 0 : i32
    return %arg0, %arg1, %c0_i32, %c0_i32_0, %c0_i32_1 : i32, i32, i32, i32, i32
  }
  func.func @transform_2(%arg0: i32, %arg1: i32) -> (i32, i32) {
    %c0_i32 = arith.constant 0 : i32
    %c0_i32_0 = arith.constant 0 : i32
    %c0_i32_1 = arith.constant 0 : i32
    return %c0_i32, %c0_i32_0 : i32, i32
  }
  func.func @transform_3(%arg0: i32, %arg1: i32) -> (i32, i32) {
    %c0_i32 = arith.constant 0 : i32
    %c0_i32_0 = arith.constant 0 : i32
    %c0_i32_1 = arith.constant 0 : i32
    return %c0_i32, %c0_i32_0 : i32, i32
  }
  func.func @transform_4(%arg0: i32, %arg1: i32) -> (i32, i32) {
    %c0_i32 = arith.constant 0 : i32
    %c0_i32_0 = arith.constant 0 : i32
    %c0_i32_1 = arith.constant 0 : i32
    return %c0_i32, %c0_i32_0 : i32, i32
  }
  func.func @transform_5(%arg0: i32, %arg1: i32) -> (i32, i32) {
    %c0_i32 = arith.constant 0 : i32
    %c0_i32_0 = arith.constant 0 : i32
    %c0_i32_1 = arith.constant 0 : i32
    return %c0_i32, %c0_i32_0 : i32, i32
  }
  func.func @transform_6(%arg0: i32, %arg1: i32) -> (i32, i32, i32, i32) {
    %c0_i32 = arith.constant 0 : i32
    %c0_i32_0 = arith.constant 0 : i32
    %c0_i32_1 = arith.constant 0 : i32
    return %arg0, %arg1, %c0_i32, %c0_i32_0 : i32, i32, i32, i32
  }
}

module attributes {stable_mosaic.version = 11 : i64} {
  func.func @_stage2_kernel(%arg0: i32, %arg1: i32, %arg2: memref<1x4x8x64xbf16, #tpu.memory_space<vmem>>, %arg3: memref<1x1x4x8x64xbf16, #tpu.memory_space<vmem>>, %arg4: memref<192x384xbf16, #tpu.memory_space<vmem>>, %arg5: memref<1x128xf32, #tpu.memory_space<vmem>>, %arg6: memref<384x384xbf16, #tpu.memory_space<vmem>>, %arg7: memref<1x128xf32, #tpu.memory_space<vmem>>, %arg8: memref<1x1x4x1024xf32, #tpu.memory_space<vmem>>) attributes {dimension_semantics = [#tpu.dimension_semantics<parallel>, #tpu.dimension_semantics<parallel>], iteration_bounds = array<i64: 2, 2>, scalar_prefetch = 0 : i64, scratch_operands = 0 : i64, tpu.core_type = #tpu.core_type<tc>, window_params = [{transform_indices = @transform_0, window_bounds = array<i64: 1, 4, 8, 64>}, {transform_indices = @transform_1, window_bounds = array<i64: 1, 1, 4, 8, 64>}, {pipeline_mode = #tpu.pipeline_mode<synchronous>, transform_indices = @transform_2, window_bounds = array<i64: 192, 384>}, {pipeline_mode = #tpu.pipeline_mode<synchronous>, transform_indices = @transform_3, window_bounds = array<i64: 1, 128>}, {pipeline_mode = #tpu.pipeline_mode<synchronous>, transform_indices = @transform_4, window_bounds = array<i64: 384, 384>}, {pipeline_mode = #tpu.pipeline_mode<synchronous>, transform_indices = @transform_5, window_bounds = array<i64: 1, 128>}, {transform_indices = @transform_6, window_bounds = array<i64: 1, 1, 4, 1024>}]} {
    %c4_i32 = arith.constant 4 : i32
    %0 = arith.muli %arg1, %c4_i32 : i32
    %c0 = arith.constant 0 : index
    %c0_0 = arith.constant 0 : index
    %c0_1 = arith.constant 0 : index
    %c0_2 = arith.constant 0 : index
    %c0_3 = arith.constant 0 : index
    %1 = vector.load %arg3[%c0, %c0_0, %c0_1, %c0_2, %c0_3] : memref<1x1x4x8x64xbf16, #tpu.memory_space<vmem>>, vector<1x1x4x8x64xbf16>
    %2 = vector.shape_cast %1 : vector<1x1x4x8x64xbf16> to vector<4x8x64xbf16>
    %3 = vector.extract_strided_slice %2 {offsets = [0, 0, 0], sizes = [2, 8, 64], strides = [1, 1, 1]} : vector<4x8x64xbf16> to vector<2x8x64xbf16>
    %c0_4 = arith.constant 0 : index
    %c0_5 = arith.constant 0 : index
    %c0_6 = arith.constant 0 : index
    %c0_7 = arith.constant 0 : index
    %4 = vector.load %arg2[%c0_4, %c0_5, %c0_6, %c0_7] : memref<1x4x8x64xbf16, #tpu.memory_space<vmem>>, vector<1x4x8x64xbf16>
    %5 = vector.shape_cast %4 : vector<1x4x8x64xbf16> to vector<4x8x64xbf16>
    %c0_8 = arith.constant 0 : index
    %c0_9 = arith.constant 0 : index
    %c0_10 = arith.constant 0 : index
    %c0_11 = arith.constant 0 : index
    %c0_12 = arith.constant 0 : index
    %6 = vector.load %arg3[%c0_8, %c0_9, %c0_10, %c0_11, %c0_12] : memref<1x1x4x8x64xbf16, #tpu.memory_space<vmem>>, vector<1x1x4x8x64xbf16>
    %7 = vector.shape_cast %6 : vector<1x1x4x8x64xbf16> to vector<4x8x64xbf16>
    %8 = vector.extract_strided_slice %7 {offsets = [2, 0, 0], sizes = [2, 8, 64], strides = [1, 1, 1]} : vector<4x8x64xbf16> to vector<2x8x64xbf16>
    %9 = tpu.concatenate %3, %5, %8 in 0 : vector<2x8x64xbf16>, vector<4x8x64xbf16>, vector<2x8x64xbf16> -> vector<8x8x64xbf16>
    %c0_13 = arith.constant 0 : index
    %c0_14 = arith.constant 0 : index
    %10 = vector.load %arg4[%c0_13, %c0_14] : memref<192x384xbf16, #tpu.memory_space<vmem>>, vector<192x384xbf16>
    %c0_15 = arith.constant 0 : index
    %c0_16 = arith.constant 0 : index
    %11 = vector.load %arg5[%c0_15, %c0_16] : memref<1x128xf32, #tpu.memory_space<vmem>>, vector<1x128xf32>
    %12 = vector.extract_strided_slice %9 {offsets = [0, 0, 0], sizes = [6, 8, 64], strides = [1, 1, 1]} : vector<8x8x64xbf16> to vector<6x8x64xbf16>
    %13 = vector.extract_strided_slice %9 {offsets = [1, 0, 0], sizes = [6, 8, 64], strides = [1, 1, 1]} : vector<8x8x64xbf16> to vector<6x8x64xbf16>
    %14 = vector.extract_strided_slice %9 {offsets = [2, 0, 0], sizes = [6, 8, 64], strides = [1, 1, 1]} : vector<8x8x64xbf16> to vector<6x8x64xbf16>
    %15 = tpu.concatenate %12, %13, %14 in 2 : vector<6x8x64xbf16>, vector<6x8x64xbf16>, vector<6x8x64xbf16> -> vector<6x8x192xbf16>
    %16 = vector.shape_cast %15 : vector<6x8x192xbf16> to vector<48x192xbf16>
    %cst = arith.constant dense<0.000000e+00> : vector<48x384xf32>
    %17 = tpu.matmul %16, %10, %cst {dimension_numbers = #tpu.dot_dimension_numbers<[1], [0], [0], [1], [0, 0, 1, 1], [], []>} : vector<48x192xbf16>, vector<192x384xbf16>, vector<48x384xf32> -> vector<48x384xf32>
    %18 = vector.shape_cast %17 : vector<48x384xf32> to vector<6x8x384xf32>
    %cst_17 = arith.constant 0.000000e+00 : f32
    %19 = vector.broadcast %cst_17 : f32 to vector<6x1x128xf32>
    %20 = vector.extract_strided_slice %18 {offsets = [0, 0, 0], sizes = [6, 7, 128], strides = [1, 1, 1]} : vector<6x8x384xf32> to vector<6x7x128xf32>
    %21 = tpu.concatenate %19, %20 in 1 : vector<6x1x128xf32>, vector<6x7x128xf32> -> vector<6x8x128xf32>
    %22 = vector.extract_strided_slice %18 {offsets = [0, 0, 128], sizes = [6, 8, 128], strides = [1, 1, 1]} : vector<6x8x384xf32> to vector<6x8x128xf32>
    %23 = vector.extract_strided_slice %18 {offsets = [0, 1, 256], sizes = [6, 7, 128], strides = [1, 1, 1]} : vector<6x8x384xf32> to vector<6x7x128xf32>
    %24 = tpu.concatenate %23, %19 in 1 : vector<6x7x128xf32>, vector<6x1x128xf32> -> vector<6x8x128xf32>
    %25 = arith.addf %21, %22 : vector<6x8x128xf32>
    %26 = arith.addf %25, %24 : vector<6x8x128xf32>
    %27 = vector.shape_cast %11 : vector<1x128xf32> to vector<1x1x128xf32>
    %28 = vector.broadcast %27 : vector<1x1x128xf32> to vector<6x8x128xf32>
    %29 = arith.addf %26, %28 : vector<6x8x128xf32>
    %cst_18 = arith.constant 0.000000e+00 : f32
    %30 = vector.broadcast %cst_18 : f32 to vector<6x8x128xf32>
    %31 = arith.maximumf %29, %30 : vector<6x8x128xf32>
    %32 = tpu.iota {dimensions = array<i32: 0>} : vector<6x1x1xi32>
    %c1_i32 = arith.constant 1 : i32
    %33 = arith.subi %0, %c1_i32 : i32
    %34 = vector.broadcast %33 : i32 to vector<6x1x1xi32>
    %35 = arith.addi %32, %34 : vector<6x1x1xi32>
    %c0_i32 = arith.constant 0 : i32
    %36 = vector.broadcast %c0_i32 : i32 to vector<6x1x1xi32>
    %37 = arith.cmpi sge, %35, %36 : vector<6x1x1xi32>
    %c8_i32 = arith.constant 8 : i32
    %38 = vector.broadcast %c8_i32 : i32 to vector<6x1x1xi32>
    %39 = arith.cmpi slt, %35, %38 : vector<6x1x1xi32>
    %40 = arith.andi %37, %39 : vector<6x1x1xi1>
    %cst_19 = arith.constant 0.000000e+00 : f32
    %41 = vector.shape_cast %40 : vector<6x1x1xi1> to vector<6x1x1xi1>
    %42 = vector.broadcast %41 : vector<6x1x1xi1> to vector<6x8x128xi1>
    %43 = vector.broadcast %cst_19 : f32 to vector<6x8x128xf32>
    %44 = arith.select %42, %31, %43 : vector<6x8x128xi1>, vector<6x8x128xf32>
    %45 = arith.truncf %44 : vector<6x8x128xf32> to vector<6x8x128xbf16>
    %c0_20 = arith.constant 0 : index
    %c0_21 = arith.constant 0 : index
    %46 = vector.load %arg6[%c0_20, %c0_21] : memref<384x384xbf16, #tpu.memory_space<vmem>>, vector<384x384xbf16>
    %c0_22 = arith.constant 0 : index
    %c0_23 = arith.constant 0 : index
    %47 = vector.load %arg7[%c0_22, %c0_23] : memref<1x128xf32, #tpu.memory_space<vmem>>, vector<1x128xf32>
    %48 = vector.extract_strided_slice %45 {offsets = [0, 0, 0], sizes = [4, 8, 128], strides = [1, 1, 1]} : vector<6x8x128xbf16> to vector<4x8x128xbf16>
    %49 = vector.extract_strided_slice %45 {offsets = [1, 0, 0], sizes = [4, 8, 128], strides = [1, 1, 1]} : vector<6x8x128xbf16> to vector<4x8x128xbf16>
    %50 = vector.extract_strided_slice %45 {offsets = [2, 0, 0], sizes = [4, 8, 128], strides = [1, 1, 1]} : vector<6x8x128xbf16> to vector<4x8x128xbf16>
    %51 = tpu.concatenate %48, %49, %50 in 2 : vector<4x8x128xbf16>, vector<4x8x128xbf16>, vector<4x8x128xbf16> -> vector<4x8x384xbf16>
    %52 = vector.shape_cast %51 : vector<4x8x384xbf16> to vector<32x384xbf16>
    %cst_24 = arith.constant dense<0.000000e+00> : vector<32x384xf32>
    %53 = tpu.matmul %52, %46, %cst_24 {dimension_numbers = #tpu.dot_dimension_numbers<[1], [0], [0], [1], [0, 0, 1, 1], [], []>} : vector<32x384xbf16>, vector<384x384xbf16>, vector<32x384xf32> -> vector<32x384xf32>
    %54 = vector.shape_cast %53 : vector<32x384xf32> to vector<4x8x384xf32>
    %cst_25 = arith.constant 0.000000e+00 : f32
    %55 = vector.broadcast %cst_25 : f32 to vector<4x1x128xf32>
    %56 = vector.extract_strided_slice %54 {offsets = [0, 0, 0], sizes = [4, 7, 128], strides = [1, 1, 1]} : vector<4x8x384xf32> to vector<4x7x128xf32>
    %57 = tpu.concatenate %55, %56 in 1 : vector<4x1x128xf32>, vector<4x7x128xf32> -> vector<4x8x128xf32>
    %58 = vector.extract_strided_slice %54 {offsets = [0, 0, 128], sizes = [4, 8, 128], strides = [1, 1, 1]} : vector<4x8x384xf32> to vector<4x8x128xf32>
    %59 = vector.extract_strided_slice %54 {offsets = [0, 1, 256], sizes = [4, 7, 128], strides = [1, 1, 1]} : vector<4x8x384xf32> to vector<4x7x128xf32>
    %60 = tpu.concatenate %59, %55 in 1 : vector<4x7x128xf32>, vector<4x1x128xf32> -> vector<4x8x128xf32>
    %61 = arith.addf %57, %58 : vector<4x8x128xf32>
    %62 = arith.addf %61, %60 : vector<4x8x128xf32>
    %63 = vector.shape_cast %47 : vector<1x128xf32> to vector<1x1x128xf32>
    %64 = vector.broadcast %63 : vector<1x1x128xf32> to vector<4x8x128xf32>
    %65 = arith.addf %62, %64 : vector<4x8x128xf32>
    %cst_26 = arith.constant 0.000000e+00 : f32
    %66 = vector.broadcast %cst_26 : f32 to vector<4x8x128xf32>
    %67 = arith.maximumf %65, %66 : vector<4x8x128xf32>
    %68 = vector.shape_cast %67 : vector<4x8x128xf32> to vector<1x1x4x1024xf32>
    %c0_27 = arith.constant 0 : index
    %c0_28 = arith.constant 0 : index
    %c0_29 = arith.constant 0 : index
    %c0_30 = arith.constant 0 : index
    %69 = vector.load %arg8[%c0_27, %c0_28, %c0_29, %c0_30] : memref<1x1x4x1024xf32, #tpu.memory_space<vmem>>, vector<1x1x4x1024xf32>
    tpu.vector_store %arg8[%c0_27, %c0_28, %c0_29, %c0_30], %68 {strides = array<i32>} : memref<1x1x4x1024xf32, #tpu.memory_space<vmem>>, vector<1x1x4x1024xf32>,
    return
  }
  func.func @transform_0(%arg0: i32, %arg1: i32) -> (i32, i32, i32, i32) {
    %c0_i32 = arith.constant 0 : i32
    %c0_i32_0 = arith.constant 0 : i32
    %c0_i32_1 = arith.constant 0 : i32
    return %arg0, %arg1, %c0_i32, %c0_i32_0 : i32, i32, i32, i32
  }
  func.func @transform_1(%arg0: i32, %arg1: i32) -> (i32, i32, i32, i32, i32) {
    %c0_i32 = arith.constant 0 : i32
    %c0_i32_0 = arith.constant 0 : i32
    %c0_i32_1 = arith.constant 0 : i32
    %c0_i32_2 = arith.constant 0 : i32
    return %arg0, %arg1, %c0_i32, %c0_i32_0, %c0_i32_1 : i32, i32, i32, i32, i32
  }
  func.func @transform_2(%arg0: i32, %arg1: i32) -> (i32, i32) {
    %c0_i32 = arith.constant 0 : i32
    %c0_i32_0 = arith.constant 0 : i32
    %c0_i32_1 = arith.constant 0 : i32
    return %c0_i32, %c0_i32_0 : i32, i32
  }
  func.func @transform_3(%arg0: i32, %arg1: i32) -> (i32, i32) {
    %c0_i32 = arith.constant 0 : i32
    %c0_i32_0 = arith.constant 0 : i32
    %c0_i32_1 = arith.constant 0 : i32
    return %c0_i32, %c0_i32_0 : i32, i32
  }
  func.func @transform_4(%arg0: i32, %arg1: i32) -> (i32, i32) {
    %c0_i32 = arith.constant 0 : i32
    %c0_i32_0 = arith.constant 0 : i32
    %c0_i32_1 = arith.constant 0 : i32
    return %c0_i32, %c0_i32_0 : i32, i32
  }
  func.func @transform_5(%arg0: i32, %arg1: i32) -> (i32, i32) {
    %c0_i32 = arith.constant 0 : i32
    %c0_i32_0 = arith.constant 0 : i32
    %c0_i32_1 = arith.constant 0 : i32
    return %c0_i32, %c0_i32_0 : i32, i32
  }
  func.func @transform_6(%arg0: i32, %arg1: i32) -> (i32, i32, i32, i32) {
    %c0_i32 = arith.constant 0 : i32
    %c0_i32_0 = arith.constant 0 : i32
    %c0_i32_1 = arith.constant 0 : i32
    return %arg0, %arg1, %c0_i32, %c0_i32_0 : i32, i32, i32, i32
  }
}

</mosaic_0001>

<bundles_post_ra>
// kernel: feature_extractor.2
= control target key start
LH: loop header
LB: loop body
LE: loop exit
PB: predicated region body
PF: predicated region fallthrough
CT: control target
= control target key end

     0   :  { %s3180_s21 = smov 0   ;;  %s3182_s22 = smov 0   ;;  %s4490_s0 = inlined_call_operand.vmem [shape: bf16[2,16,16,3], index: 0, kind: input, shape index: {}]   ;;  %s4491_s1 = inlined_call_operand.vmem [shape: bf16[2,2,4,16,3], index: 1, kind: input, shape index: {}]   ;;  %s4492_s2 = inlined_call_operand.vmem [shape: bf16[9,192], index: 2, kind: input, shape index: {}]   ;;  %s4493_s3 = inlined_call_operand.vmem [shape: f32[1,64], index: 3, kind: input, shape index: {}]   ;;  %s4494_s4 = inlined_call_operand.vmem [shape: bf16[192,192], index: 4, kind: input, shape index: {}]   ;;  %s4495_s5 = inlined_call_operand.vmem [shape: f32[1,64], index: 5, kind: input, shape index: {}]   ;;  %s4496_s6 = inlined_call_operand.vmem [shape: bf16[2,2,4,512], index: 6, kind: output, shape index: {}]  }
   0x1   :  { %s3184_s23 = smov 0   ;;  %s3186_s24 = smov 0  }
   0x2   :  { %s3188_s25 = smov 0  }
   0x3 LB: > { %s25_s26 = sadd.s32 1, %s3129_s23  ;;  %s28_s27 = sadd.s32 1, %s3133_s24  ;;  %s3137_s25 = sphi %s3188_s25, %s16_s25   ;;  %s3133_s24 = sphi %s3186_s24, %s4514_s24   ;;  %s3129_s23 = sphi %s3184_s23, %s4513_s23   ;;  %s3125_s22 = sphi %s3182_s22, %s4512_s22   ;;  %s3121_s21 = sphi %s3180_s21, %s4511_s21  }
   0x4   : > { %p26_p0 = scmp.ge.s32.totalorder %s25_s26, 2  ;;  %p2797_p1 = scmp.ge.s32.totalorder %s3137_s25, 1 }
   0x5   : > { %p250_p2 = scmp.lt.s32.totalorder %s3137_s25, 5 }
   0x6   : > { %s4516_s26 = smov (%p26_p0, %s25_s26), 0  ;;  %s4518_s27 = smov (!%p26_p0, %s28_s27), %s3133_s24 }
   0x7   : > { %p251_p3 = pnand %p2797_p1, %p250_p2  ;;  %p30_p4 = scmp.ge.s32.totalorder %s4518_s27, 2 }
   0x8   : > { %p299_p5 = scmp.lt.s32.totalorder (!%p251_p3), %s3125_s22, 1  ;;  %p311_p6 = scmp.lt.s32.totalorder (!%p251_p3), %s3121_s21, 1 }
   0x9   : > { %s4520_s27 = smov (%p30_p4, %s4518_s27), 0  ;;  %254 = sbr.rel (%p251_p3) target bundleno = 1297 (0x511), region = 44 }
   0xa   : > { %s3210_s28 = sshll.u32 (!%p251_p3), %s3121_s21, 3  ;;  %s3139_s14 = smov (!%p251_p3), 3  }
   0xb   : > { %p301_p7 = scmp.lt.s32.totalorder (!%p251_p3), %s3210_s28, 15 }
   0xe   : > { %s4522_s22 = smov (!%p299_p5, %s3125_s22), 1  ;;  %s4524_s21 = smov (!%p311_p6, %s3121_s21), 1  ;;  %v2859_v9 = vld [vmem:[%s4492_s2] sm:$0xf]  ;;  %v3013_v10 = vld [vmem:[%s4492_s2 + $0x4] sm:$0x10] }
   0xf   : > { %s2803_s29 = sshll.u32 %s4522_s22, 4  ;;  %s2802_s30 = sshll.u32 %s4524_s21, 3  ;;  %vm537_vm0 = vcmask 1043456   ;;  %v2860_v11 = vor.u32 %v3013_v10, %v2859_v9  ;;  %vm538_vm1 = vcmask 1044480   ;;  %v3012_v12 = vld [vmem:[%s4492_s2 + $0x4] sm:$0xf] }
  0x10   : > { %s315_s7 = sadd.s32 %s2803_s29, %s2802_s30  ;;  %s2800_s12 = sshll.u32 %s4522_s22, 5  ;;  %v2861_v13 = vld [vmem:[%s4492_s2 + $0x8] sm:$0x10]  ;;  %v3141_v14 = vmov 65535   ;;  %vm456_vm2 = vcmask 23552   ;;  %vm487_vm3 = vcmask 48128  }
  0x11   : > { %s2804_s8 = sshll.u32 %s315_s7, 2  ;;  %s3140_s29 = smov 6   ;;  %v539_v15 = vsel %vm537_vm0, 4294967295, %v3141_v14  ;;  %v2864_v16 = vor.u32 %v3012_v12, %v2861_v13  ;;  %vm516_vm4 = vcmask 72704   ;;  %vm766_vm5 = vcmask 1046528  }
  0x12   : > { %s3222_s11 = scalar_lea.vmem %s4491_s1, %s2804_s8  ;;  %v540_v17 = vsel %vm538_vm1, %v539_v15, 0  ;;  %vm685_vm6 = vcmask 1040384   ;;  %vm1162_vm13 = vcmask 523264   ;;  %s2805_s30 = sshll.u32 %s4524_s21, 2 }
  0x13   : > { %v3226_v0 = vld [vmem:[%s3222_s11 + $0x8] sm:$0xff]  ;;  %s302_s13 = scalar_select %p301_p7, %s3210_s28, 15  ;;  %v542_v18 = vand.u32 %v2860_v11, %v540_v17  ;;  %v545_v19 = vand.u32 %v2864_v16, %v540_v17  ;;  %v3008_v21 = vld [vmem:[%s3222_s11] sm:$0xff]  ;;  %v3010_v25 = vld [vmem:[%s3222_s11 + $0x10] sm:$0xff] }
  0x14   : > { %411 = vrot.lane.b32.xlu0 %v3226_v0, %s3139_s14  ;;  %v3011_v26 = vld [vmem:[%s3222_s11 + $0x18] sm:$0xff]  ;;  %s3142_s11 = smov 64   ;;  %s2806_s7 = sshll.u32 %s4522_s22, 3 }
  0x15   : > { %s2799_s15 = sshll.u32 %s302_s13, 1  ;;  %554 = vmatpush.bf16.msra.mxu0 %v542_v18  ;;  %613 = vmatpush.bf16.msra.mxu1 %v545_v19  ;;  %s324_s8 = sadd.s32 %s2806_s7, %s2805_s30 }
  0x16   : > { %s305_s16 = sadd.s32 %s2800_s12, %s2799_s15  ;;  %s2807_s9 = sshll.u32 %s324_s8, 1 }
  0x17   : > { %s2801_s17 = sshll.u32 %s305_s16, 2  ;;  %s2885_s16 = sadd.s32 4294967295, %s3210_s28 }
  0x18   : > { %s307_s20 = scalar_lea.vmem %s4490_s0, %s2801_s17  ;;  %s326_s12 = scalar_lea.vmem %s4496_s6, %s2807_s9 }
  0x19   : > { %v3234_v1 = vld [vmem:[%s307_s20] sm:$0xff]  ;;  %v3236_v2 = vld [vmem:[%s307_s20 + $0x8] sm:$0xff]  ;;  %v3244_v3 = vld [vmem:[%s307_s20 + $0x10] sm:$0xff] }
  0x1a   : > { %413 = vrot.lane.b32.xlu1 %v3234_v1, %s3139_s14  ;;  %415 = vrot.lane.b32.xlu2 %v3236_v2, %s3139_s14  ;;  %v3252_v4 = vld [vmem:[%s307_s20 + $0x18] sm:$0xff]  ;;  %v3254_v5 = vld [vmem:[%s307_s20 + $0x20] sm:$0xff] }
  0x1b   : > { %v3262_v6 = vld [vmem:[%s307_s20 + $0x28] sm:$0xff]  ;;  %v3270_v7 = vld [vmem:[%s307_s20 + $0x30] sm:$0xff]  ;;  %v3276_v8 = vld [vmem:[%s307_s20 + $0x38] sm:$0xff] }
  0x1c   : > { %436 = vrot.lane.b32.xlu0 %v3234_v1, %s3140_s29 }
  0x22   : > { %438 = vrot.lane.b32.xlu1 %v3236_v2, %s3140_s29  ;;  %440 = vrot.lane.b32.xlu2 %v3244_v3, %s3140_s29 }
  0x24   : > { %417 = vrot.lane.b32.xlu0 %v3244_v3, %s3139_s14 }
  0x2a   : > { %442 = vrot.lane.b32.xlu1 %v3252_v4, %s3140_s29  ;;  %419 = vrot.lane.b32.xlu2 %v3252_v4, %s3139_s14 }
  0x2c   : > { %444 = vrot.lane.b32.xlu0 %v3254_v5, %s3140_s29 }
  0x32   : > { %421 = vrot.lane.b32.xlu1 %v3254_v5, %s3139_s14  ;;  %446 = vrot.lane.b32.xlu2 %v3262_v6, %s3140_s29 }
  0x34   : > { %423 = vrot.lane.b32.xlu0 %v3262_v6, %s3139_s14 }
  0x3a   : > { %448 = vrot.lane.b32.xlu1 %v3270_v7, %s3140_s29  ;;  %425 = vrot.lane.b32.xlu2 %v3270_v7, %s3139_s14 }
  0x3c   : > { %450 = vrot.lane.b32.xlu0 %v3276_v8, %s3140_s29 }
  0x42   : > { %427 = vrot.lane.b32.xlu1 %v3276_v8, %s3139_s14  ;;  %452 = vrot.lane.b32.xlu2 %v3010_v25, %s3140_s29 }
  0x44   : > { %429 = vrot.lane.b32.xlu0 %v3010_v25, %s3139_s14 }
  0x4a   : > { %454 = vrot.lane.b32.xlu1 %v3011_v26, %s3140_s29 }
  0x74   : > { %v416_v31 = vpop.permute.xlu2 %415 }
  0x75   : > { %v465_v32 = vsel %vm456_vm2, %v3234_v1, %v416_v31 }
  0x7c   : > { %v441_v33 = vpop.permute.xlu2 %440 }
  0x7d   : > { %v493_v34 = vsel %vm487_vm3, %v465_v32, %v441_v33 }
  0x84   : > { %v420_v39 = vpop.permute.xlu2 %419 }
  0x85   : > { %v471_v40 = vsel %vm456_vm2, %v3244_v3, %v420_v39 }
  0x86   : > { %v412_v20 = vpop.permute.xlu0 %411 }
  0x87   : > { %v459_v22 = vsel %vm456_vm2, %v3008_v21, %v412_v20 }
  0x8c   : > { %v414_v27 = vpop.permute.xlu1 %413  ;;  %v447_v45 = vpop.permute.xlu2 %446 }
  0x8d   : > { %v462_v28 = vsel %vm456_vm2, %v3226_v0, %v414_v27 }
  0x8e   : > { %v437_v23 = vpop.permute.xlu0 %436 }
  0x8f   : > { %v489_v24 = vsel %vm487_vm3, %v459_v22, %v437_v23 }
  0x90   : > { %2865 = vmatmul.msk.bf16.vlgmr.msra.gmra.mxu0 %vm516_vm4, %v489_v24  ;;  %2875 = vmatmul.msk.bf16.vlgmr.msra.gmra.mxu1 %vm516_vm4, %v489_v24 }
  0x94   : > { %v439_v29 = vpop.permute.xlu1 %438  ;;  %v426_v51 = vpop.permute.xlu2 %425 }
  0x95   : > { %v491_v30 = vsel %vm487_vm3, %v462_v28, %v439_v29  ;;  %v480_v52 = vsel %vm456_vm2, %v3262_v6, %v426_v51 }
  0x96   : > { %v418_v35 = vpop.permute.xlu0 %417 }
  0x97   : > { %v468_v36 = vsel %vm456_vm2, %v3236_v2, %v418_v35 }
  0x9c   : > { %v443_v37 = vpop.permute.xlu1 %442  ;;  %v453_v57 = vpop.permute.xlu2 %452 }
  0x9d   : > { %v495_v38 = vsel %vm487_vm3, %v468_v36, %v443_v37 }
  0x9e   : > { %v445_v41 = vpop.permute.xlu0 %444 }
  0x9f   : > { %v497_v42 = vsel %vm487_vm3, %v471_v40, %v445_v41 }
  0xa0   : > { %2866 = vmatmul.msk.bf16.gmra.mxu0 %vm516_vm4, %v491_v30  ;;  %2876 = vmatmul.msk.bf16.gmra.mxu1 %vm516_vm4, %v491_v30 }
  0xa4   : > { %v422_v43 = vpop.permute.xlu1 %421 }
  0xa5   : > { %v474_v44 = vsel %vm456_vm2, %v3252_v4, %v422_v43 }
  0xa6   : > { %v499_v46 = vsel %vm487_vm3, %v474_v44, %v447_v45  ;;  %v424_v47 = vpop.permute.xlu0 %423 }
  0xa7   : > { %v477_v48 = vsel %vm456_vm2, %v3254_v5, %v424_v47 }
  0xac   : > { %v449_v49 = vpop.permute.xlu1 %448 }
  0xad   : > { %v501_v50 = vsel %vm487_vm3, %v477_v48, %v449_v49 }
  0xae   : > { %v451_v53 = vpop.permute.xlu0 %450 }
  0xaf   : > { %v503_v54 = vsel %vm487_vm3, %v480_v52, %v451_v53 }
  0xb0   : > { %2867 = vmatmul.msk.bf16.gmra.mxu0 %vm516_vm4, %v493_v34  ;;  %2877 = vmatmul.msk.bf16.gmra.mxu1 %vm516_vm4, %v493_v34 }
  0xb4   : > { %v428_v55 = vpop.permute.xlu1 %427 }
  0xb5   : > { %v483_v56 = vsel %vm456_vm2, %v3270_v7, %v428_v55  ;;  %v2976_v55 = vld [vmem:[%s4494_s4 + $0xb0] sm:$0xf] }
  0xb6   : > { %v505_v60 = vsel %vm487_vm3, %v483_v56, %v453_v57  ;;  %v430_v63 = vpop.permute.xlu0 %429  ;;  %v3037_v56 = vld [vmem:[%s4494_s4 + $0xb4] sm:$0xf0] }
  0xb7   : > { %v486_v0 = vsel %vm456_vm2, %v3276_v8, %v430_v63  ;;  %v2977_v57 = vor.u32 %v3037_v56, %v2976_v55  ;;  %v3035_v63 = vld [vmem:[%s4494_s4 + $0xa4] sm:$0xf0] }
  0xb9   : > { %3046 = vmatpush.bf16.msra.mxu3 %v2977_v57  ;;  %1386 = vmatpush.bf16.msrb.mxu1 %v2977_v57 }
  0xbc   : > { %v455_v1 = vpop.permute.xlu1 %454 }
  0xbd   : > { %v507_v4 = vsel %vm487_vm3, %v486_v0, %v455_v1 }
  0xc0   : > { %2868 = vmatmul.msk.bf16.gmra.mxu0 %vm516_vm4, %v495_v38  ;;  %2878 = vmatmul.msk.bf16.gmra.mxu1 %vm516_vm4, %v495_v38 }
  0xd0   : > { %2869 = vmatmul.msk.bf16.gmra.mxu0 %vm516_vm4, %v497_v42  ;;  %2879 = vmatmul.msk.bf16.gmra.mxu1 %vm516_vm4, %v497_v42 }
  0xe0   : > { %2870 = vmatmul.msk.bf16.gmra.mxu0 %vm516_vm4, %v499_v46  ;;  %2880 = vmatmul.msk.bf16.gmra.mxu1 %vm516_vm4, %v499_v46 }
  0xf0   : > { %2871 = vmatmul.msk.bf16.gmra.mxu0 %vm516_vm4, %v501_v50  ;;  %2881 = vmatmul.msk.bf16.gmra.mxu1 %vm516_vm4, %v501_v50 }
 0x100   : > { %2872 = vmatmul.msk.bf16.gmra.mxu0 %vm516_vm4, %v503_v54  ;;  %2882 = vmatmul.msk.bf16.gmra.mxu1 %vm516_vm4, %v503_v54 }
 0x10d   : > { %v3342_v58 = vpop.f32.mrf.mxu0  ;;  %v3344_v59 = vpop.f32.mrf.mxu1 }
 0x110   : > { %2873 = vmatmul.msk.bf16.gmra.mxu0 %vm516_vm4, %v505_v60  ;;  %2883 = vmatmul.msk.bf16.gmra.mxu1 %vm516_vm4, %v505_v60  ;;  %v2968_v60 = vld [vmem:[%s4494_s4 + $0xa0] sm:$0xf] }
 0x111   : > { %v2969_v0 = vor.u32 %v3035_v63, %v2968_v60 }
 0x113   : > { %3047 = vmatpush.bf16.msra.mxu3 %v2969_v0  ;;  %1387 = vmatpush.bf16.msrb.mxu1 %v2969_v0 }
 0x115   : > { %v3349_v61 = vpop.f32.mrf.mxu0  ;;  %v3351_v62 = vpop.f32.mrf.mxu1 }
 0x11d   : > { %v3355_v2 = vpop.f32.mrf.mxu0  ;;  %v620_v3 = vpop.f32.mrf.mxu1 }
 0x11e   : > { %v770_v7 = vrot.slane %v620_v3, 1  ;;  %v2960_v3 = vld [vmem:[%s4494_s4 + $0x90] sm:$0xf] }
 0x120   : > { %2874 = vmatmul.msk.bf16.gmra.mxu0 %vm516_vm4, %v507_v4  ;;  %2884 = vmatmul.msk.bf16.gmra.mxu1 %vm516_vm4, %v507_v4  ;;  %v3033_v4 = vld [vmem:[%s4494_s4 + $0x94] sm:$0xf0] }
 0x125   : > { %v3360_v5 = vpop.f32.mrf.mxu0  ;;  %v3362_v6 = vpop.f32.mrf.mxu1 }
 0x126   : > { %v771_v9 = vrot.slane %v3362_v6, 1 }
 0x128   : > { %v3368_v8 = vsel %vm766_vm5, %v770_v7, %v771_v9  ;;  %v2961_v7 = vor.u32 %v3033_v4, %v2960_v3 }
 0x12a   : > { %3048 = vmatpush.bf16.msra.mxu3 %v2961_v7  ;;  %1388 = vmatpush.bf16.msrb.mxu1 %v2961_v7 }
 0x12d   : > { %v3370_v10 = vpop.f32.mrf.mxu0  ;;  %v625_v11 = vpop.f32.mrf.mxu1 }
 0x12e   : > { %v773_v14 = vrot.slane %v625_v11, 1  ;;  %v2952_v11 = vld [vmem:[%s4494_s4 + $0x80] sm:$0xf] }
 0x135   : > { %v3372_v12 = vpop.f32.mrf.mxu0  ;;  %v3374_v13 = vpop.f32.mrf.mxu1 }
 0x136   : > { %v774_v15 = vrot.slane %v3374_v13, 1 }
 0x138   : > { %v3380_v16 = vsel %vm766_vm5, %v773_v14, %v774_v15  ;;  %v3031_v14 = vld [vmem:[%s4494_s4 + $0x84] sm:$0xf0] }
 0x13d   : > { %v3382_v17 = vpop.f32.mrf.mxu0  ;;  %v630_v18 = vpop.f32.mrf.mxu1 }
 0x13e   : > { %v776_v21 = vrot.slane %v630_v18, 1  ;;  %v2953_v18 = vor.u32 %v3031_v14, %v2952_v11 }
 0x140   : > { %3049 = vmatpush.bf16.msra.mxu3 %v2953_v18  ;;  %1389 = vmatpush.bf16.msrb.mxu1 %v2953_v18 }
 0x145   : > { %v3384_v19 = vpop.f32.mrf.mxu0  ;;  %v3386_v20 = vpop.f32.mrf.mxu1 }
 0x146   : > { %v777_v22 = vrot.slane %v3386_v20, 1 }
 0x148   : > { %v3392_v23 = vsel %vm766_vm5, %v776_v21, %v777_v22 }
 0x14d   : > { %v3394_v24 = vpop.f32.mrf.mxu0  ;;  %v635_v25 = vpop.f32.mrf.mxu1 }
 0x14e   : > { %v698_v28 = vrot.slane %v3394_v24, 7  ;;  %v779_v29 = vrot.slane %v635_v25, 1 }
 0x150   : > { %v740_v0 = vsel %vm685_vm6, 0.0, %v698_v28 }
 0x155   : > { %v578_v26 = vpop.f32.mrf.mxu0  ;;  %v3396_v27 = vpop.f32.mrf.mxu1 }
 0x156   : > { %v699_v30 = vrot.slane %v578_v26, 7  ;;  %v780_v31 = vrot.slane %v3396_v27, 1 }
 0x158   : > { %v3403_v32 = vsel %vm766_vm5, %v779_v29, %v780_v31  ;;  %v3408_v33 = vsel %vm685_vm6, %v698_v28, %v699_v30 }
 0x15d   : > { %v3410_v34 = vpop.f32.mrf.mxu0  ;;  %v640_v52 = vpop.f32.mrf.mxu1 }
 0x15e   : > { %847 = vrot.lane.b32.xlu2 %v3410_v34, %s3142_s11  ;;  %v701_v36 = vrot.slane %v3410_v34, 7 }
 0x160   : > { %v741_v34 = vsel %vm685_vm6, 0.0, %v701_v36 }
 0x165   : > { %v583_v35 = vpop.f32.mrf.mxu0  ;;  %v642_v54 = vpop.f32.mrf.mxu1 }
 0x166   : > { %v702_v37 = vrot.slane %v583_v35, 7  ;;  %849 = vrot.lane.b32.xlu0 %v583_v35, %s3142_s11 }
 0x168   : > { %v3417_v38 = vsel %vm685_vm6, %v701_v36, %v702_v37  ;;  %v782_v37 = vrot.slane %v640_v52, 1 }
 0x16d   : > { %v3419_v39 = vpop.f32.mrf.mxu0  ;;  %v3481_v1 = vpop.f32.mrf.mxu1 }
 0x16e   : > { %851 = vrot.lane.b32.xlu1 %v3419_v39, %s3142_s11  ;;  %v704_v41 = vrot.slane %v3419_v39, 7 }
 0x175   : > { %v588_v40 = vpop.f32.mrf.mxu0  ;;  %v647_v21 = vpop.f32.mrf.mxu1 }
 0x176   : > { %v705_v42 = vrot.slane %v588_v40, 7  ;;  %853 = vrot.lane.b32.xlu2 %v588_v40, %s3142_s11  ;;  %v3498_v40 = vstv %s2885_s16  ;;  %v786_v55 = vrot.slane %v647_v21, 1 }
 0x177   : > { %v976_v52 = vadd.s32 5, %v3498_v40 }
 0x178   : > { %v3428_v43 = vsel %vm685_vm6, %v704_v41, %v705_v42  ;;  %v823_v60 = vsel %vm766_vm5, %v786_v55, 0.0 }
 0x179   : > { %vm986_vm7 = vcmp.ge.s32.totalorder %v976_v52, 0  ;;  %vm996_vm8 = vcmp.lt.s32.totalorder %v976_v52, 16 }
 0x17a   : > { %vm3522_vm9 = vmand %vm986_vm7, %vm996_vm8 }
 0x17d   : > { %v3430_v44 = vpop.f32.mrf.mxu0  ;;  %v3511_v36 = vpop.f32.mrf.mxu1 }
 0x17e   : > { %843 = vrot.lane.b32.xlu2 %v3394_v24, %s3142_s11  ;;  %855 = vrot.lane.b32.xlu0 %v3430_v44, %s3142_s11  ;;  %v707_v46 = vrot.slane %v3430_v44, 7 }
 0x185   : > { %v593_v45 = vpop.f32.mrf.mxu0  ;;  %v3528_v24 = vpop.f32.mrf.mxu1 }
 0x186   : > { %v708_v47 = vrot.slane %v593_v45, 7  ;;  %845 = vrot.lane.b32.xlu0 %v578_v26, %s3142_s11  ;;  %857 = vrot.lane.b32.xlu1 %v593_v45, %s3142_s11  ;;  %v783_v26 = vrot.slane %v642_v54, 1  ;;  %v3509_v54 = vld [vmem:[%s4493_s3] ss:$0 sm:$0xff]  ;;  %v789_v21 = vrot.slane %v3528_v24, 1  ;;  %v975_v24 = vadd.s32 4, %v3498_v40 }
 0x188   : > { %v3442_v48 = vsel %vm685_vm6, %v707_v46, %v708_v47  ;;  %v784_v42 = vsel %vm766_vm5, %v782_v37, %v783_v26  ;;  %v822_v18 = vsel %vm766_vm5, %v783_v26, 0.0  ;;  %vm985_vm14 = vcmp.ge.s32.totalorder %v975_v24, 0 }
 0x189   : > { %vm995_vm15 = vcmp.lt.s32.totalorder %v975_v24, 16 }
 0x18a   : > { %vm3572_vm3 = vmand %vm985_vm14, %vm995_vm15 }
 0x18d   : > { %v3444_v49 = vpop.f32.mrf.mxu0 }
 0x18e   : > { %859 = vrot.lane.b32.xlu1 %v3444_v49, %s3142_s11  ;;  %v710_v29 = vrot.slane %v3444_v49, 7 }
 0x190   : > { %v744_v6 = vsel %vm685_vm6, 0.0, %v710_v29 }
 0x195   : > { %v598_v50 = vpop.f32.mrf.mxu0 }
 0x196   : > { %831 = vrot.lane.b32.xlu1 %v3355_v2, %s3142_s11  ;;  %861 = vrot.lane.b32.xlu2 %v598_v50, %s3142_s11  ;;  %v711_v30 = vrot.slane %v598_v50, 7 }
 0x198   : > { %v3504_v47 = vsel %vm685_vm6, %v710_v29, %v711_v30 }
 0x19d   : > { %v3455_v51 = vpop.f32.mrf.mxu0 }
 0x19e   : > { %835 = vrot.lane.b32.xlu1 %v3370_v10, %s3142_s11  ;;  %833 = vrot.lane.b32.xlu2 %v3360_v5, %s3142_s11 }
 0x1a5   : > { %v3461_v53 = vpop.f32.mrf.mxu0 }
 0x1a6   : > { %837 = vrot.lane.b32.xlu2 %v3372_v12, %s3142_s11  ;;  %863 = vrot.lane.b32.xlu1 %v3455_v51, %s3142_s11 }
 0x1ae   : > { %841 = vrot.lane.b32.xlu1 %v3384_v19, %s3142_s11  ;;  %865 = vrot.lane.b32.xlu2 %v3461_v53, %s3142_s11 }
 0x1b6   : > { %829 = vrot.lane.b32.xlu1 %v3349_v61, %s3142_s11 }
 0x1b8   : > { %v848_v25 = vpop.permute.xlu2 %847 }
 0x1b9   : > { %v897_v35 = vadd.f32 %v848_v25, %v741_v34 }
 0x1bb   : > { %v917_v50 = vadd.f32 %v897_v35, %v784_v42  ;;  %v785_v35 = vrot.slane %v3481_v1, 1 }
 0x1bd   : > { %v940_v56 = vadd.f32 %v3509_v54, %v917_v50 }
 0x1bf   : > { %v960_v4 = vmax.f32 %v940_v56, 0.0 }
 0x1c1   : > { %v1041_v28 = vsel %vm3522_vm9, %v960_v4, 0.0 }
 0x1c2   : > { %v1061_v37 = vpack.c.bf16 %v1041_v28, %v1041_v28  ;;  %v788_v28 = vrot.slane %v3511_v36, 1 }
 0x1d0   : > { %v854_v45 = vpop.permute.xlu2 %853 }
 0x1d1   : > { %v900_v57 = vadd.f32 %v854_v45, %v3428_v43  ;;  %v977_v43 = vadd.s32 6, %v3498_v40 }
 0x1d3   : > { %v920_v7 = vadd.f32 %v900_v57, %v823_v60  ;;  %vm987_vm10 = vcmp.ge.s32.totalorder %v977_v43, 0  ;;  %vm997_vm11 = vcmp.lt.s32.totalorder %v977_v43, 16  ;;  %v787_v57 = vsel %vm766_vm5, %v785_v35, %v786_v55 }
 0x1d4   : > { %vm1007_vm12 = vmand %vm987_vm10, %vm997_vm11 }
 0x1d5   : > { %v943_v34 = vadd.f32 %v3509_v54, %v920_v7 }
 0x1d7   : > { %v963_v45 = vmax.f32 %v943_v34, 0.0 }
 0x1d8   : > { %v850_v63 = vpop.permute.xlu0 %849  ;;  %v844_v3 = vpop.permute.xlu2 %843 }
 0x1d9   : > { %v898_v11 = vadd.f32 %v850_v63, %v3417_v38  ;;  %v895_v14 = vadd.f32 %v844_v3, %v740_v0  ;;  %v1122_v63 = vunpack.c.l.b16 %v1061_v37  ;;  %v3541_v3 = vpop.f32.mrf.mxu1  ;;  %v1044_v1 = vsel %vm1007_vm12, %v963_v45, 0.0 }
 0x1da   : > { %v1064_v7 = vpack.c.bf16 %v1044_v1, %v1044_v1 }
 0x1db   : > { %v918_v25 = vadd.f32 %v898_v11, %v822_v18  ;;  %v915_v30 = vadd.f32 %v895_v14, %v3403_v32  ;;  %v742_v32 = vsel %vm685_vm6, 0.0, %v704_v41 }
 0x1dc   : > { %v1125_v14 = vunpack.c.l.b16 %v1064_v7  ;;  %v824_v7 = vsel %vm766_vm5, %v789_v21, 0.0 }
 0x1dd   : > { %v941_v38 = vadd.f32 %v3509_v54, %v918_v25  ;;  %v938_v36 = vadd.f32 %v3509_v54, %v915_v30 }
 0x1df   : > { %v961_v26 = vmax.f32 %v941_v38, 0.0  ;;  %v743_v38 = vsel %vm685_vm6, 0.0, %v707_v46  ;;  %v690_v46 = vrot.slane %v3360_v5, 7  ;;  %v821_v5 = vsel %vm766_vm5, %v780_v31, 0.0 }
 0x1e0   : > { %v852_v42 = vpop.permute.xlu1 %851 }
 0x1e1   : > { %v1042_v50 = vsel %vm3522_vm9, %v961_v26, 0.0  ;;  %v899_v52 = vadd.f32 %v852_v42, %v742_v32  ;;  %v3551_v43 = vpop.f32.mrf.mxu1  ;;  %v790_v42 = vsel %vm766_vm5, %v788_v28, %v789_v21  ;;  %v978_v32 = vadd.s32 7, %v3498_v40 }
 0x1e2   : > { %v1062_v56 = vpack.c.bf16 %v1042_v50, %v1042_v50  ;;  %v792_v35 = vrot.slane %v3551_v43, 1 }
 0x1e3   : > { %v919_v60 = vadd.f32 %v899_v52, %v787_v57  ;;  %vm988_vm1 = vcmp.ge.s32.totalorder %v978_v32, 0  ;;  %vm998_vm2 = vcmp.lt.s32.totalorder %v978_v32, 16 }
 0x1e4   : > { %v1123_v0 = vunpack.c.l.b16 %v1062_v56  ;;  %v825_v52 = vsel %vm766_vm5, %v792_v35, 0.0  ;;  %v958_v56 = vmax.f32 %v938_v36, 0.0  ;;  %vm3585_vm4 = vmand %vm988_vm1, %vm998_vm2 }
 0x1e5   : > { %v942_v4 = vadd.f32 %v3509_v54, %v919_v60 }
 0x1e6   : > { %v3544_v39 = vpack.c.b16 %v1123_v0, %v1122_v63 }
 0x1e7   : > { %v962_v41 = vmax.f32 %v942_v4, 0.0 }
 0x1e8   : > { %2985 = vmatmul.msk.bf16.vlgmr.msra.gmra.mxu3 %vm1162_vm13, %v3544_v39  ;;  %1149 = vrot.lane.b32.xlu0 %v3544_v39, %s3142_s11 }
 0x1e9   : > { %v1043_v55 = vsel %vm1007_vm12, %v962_v41, 0.0  ;;  %v689_v41 = vrot.slane %v3355_v2, 7  ;;  %v3598_v28 = vpop.f32.mrf.mxu1 }
 0x1ea   : > { %v1063_v11 = vpack.c.bf16 %v1043_v55, %v1043_v55  ;;  %v713_v55 = vrot.slane %v3455_v51, 7 }
 0x1eb   : > { %v691_v27 = vsel %vm685_vm6, %v689_v41, %v690_v46 }
 0x1ec   : > { %v1124_v18 = vunpack.c.l.b16 %v1063_v11 }
 0x1ee   : > { %v3553_v25 = vpack.c.b16 %v1125_v14, %v1124_v18 }
 0x1f0   : > { %1151 = vrot.lane.b32.xlu0 %v3553_v25, %s3142_s11  ;;  %v856_v34 = vpop.permute.xlu0 %855  ;;  %v862_v26 = vpop.permute.xlu2 %861 }
 0x1f1   : > { %v901_v37 = vadd.f32 %v856_v34, %v743_v38  ;;  %v904_v50 = vadd.f32 %v862_v26, %v3504_v47  ;;  %v818_v34 = vsel %vm766_vm5, %v771_v9, 0.0  ;;  %v692_v38 = vrot.slane %v3370_v10, 7 }
 0x1f2   : > { %v693_v26 = vrot.slane %v3372_v12, 7 }
 0x1f3   : > { %v921_v45 = vadd.f32 %v901_v37, %v790_v42  ;;  %v924_v57 = vadd.f32 %v904_v50, %v825_v52  ;;  %v791_v37 = vrot.slane %v3541_v3, 1 }
 0x1f4   : > { %v694_v29 = vsel %vm685_vm6, %v692_v38, %v693_v26 }
 0x1f5   : > { %v944_v44 = vadd.f32 %v3509_v54, %v921_v45  ;;  %v947_v2 = vadd.f32 %v3509_v54, %v924_v57  ;;  %v793_v57 = vsel %vm766_vm5, %v791_v37, %v792_v35 }
 0x1f7   : > { %v964_v47 = vmax.f32 %v944_v44, 0.0  ;;  %v967_v36 = vmax.f32 %v947_v2, 0.0  ;;  %v3633_v2 = vpop.f32.mrf.mxu1 }
 0x1f8   : > { %2986 = vmatmul.msk.bf16.gmra.mxu3 %vm1162_vm13, %v3553_v25  ;;  %v846_v60 = vpop.permute.xlu0 %845  ;;  %v858_v63 = vpop.permute.xlu1 %857  ;;  %v795_v13 = vrot.slane %v3633_v2, 1  ;;  %v794_v2 = vrot.slane %v3598_v28, 1  ;;  %v745_v28 = vsel %vm685_vm6, 0.0, %v713_v55 }
 0x1f9   : > { %v896_v0 = vadd.f32 %v846_v60, %v3408_v33  ;;  %v902_v1 = vadd.f32 %v858_v63, %v3442_v48  ;;  %v834_v4 = vpop.permute.xlu2 %833  ;;  %v979_v33 = vadd.s32 8, %v3498_v40  ;;  %v1039_v48 = vsel %vm3572_vm3, %v958_v56, 0.0 }
 0x1fa   : > { %v1045_v31 = vsel %vm3585_vm4, %v964_v47, 0.0  ;;  %v890_v43 = vadd.f32 %v834_v4, %v691_v27  ;;  %v1059_v32 = vpack.c.bf16 %v1039_v48, %v1039_v48  ;;  %v972_v63 = vadd.s32 1, %v3498_v40 }
 0x1fb   : > { %v916_v11 = vadd.f32 %v896_v0, %v821_v5  ;;  %v922_v14 = vadd.f32 %v902_v1, %v824_v7  ;;  %vm989_vm7 = vcmp.ge.s32.totalorder %v979_v33, 0  ;;  %vm999_vm8 = vcmp.lt.s32.totalorder %v979_v33, 16 }
 0x1fc   : > { %v1065_v45 = vpack.c.bf16 %v1045_v31, %v1045_v31  ;;  %v910_v52 = vadd.f32 %v890_v43, %v818_v34  ;;  %vm3615_vm9 = vmand %vm989_vm7, %vm999_vm8  ;;  %v1120_v30 = vunpack.c.l.b16 %v1059_v32  ;;  %vm982_vm10 = vcmp.ge.s32.totalorder %v972_v63, 0 }
 0x1fd   : > { %v939_v18 = vadd.f32 %v3509_v54, %v916_v11  ;;  %v945_v21 = vadd.f32 %v3509_v54, %v922_v14  ;;  %v1048_v7 = vsel %vm3615_vm9, %v967_v36, 0.0  ;;  %v714_v11 = vrot.slane %v3461_v53, 7 }
 0x1fe   : > { %v1126_v47 = vunpack.c.l.b16 %v1065_v45  ;;  %v933_v4 = vadd.f32 %v3509_v54, %v910_v52  ;;  %vm992_vm11 = vcmp.lt.s32.totalorder %v972_v63, 16  ;;  %v819_v27 = vsel %vm766_vm5, %v774_v15, 0.0  ;;  %v2904_v63 = vld [vmem:[%s4494_s4 + $0x20] sm:$0xf] }
 0x1ff   : > { %v959_v24 = vmax.f32 %v939_v18, 0.0  ;;  %v965_v42 = vmax.f32 %v945_v21, 0.0  ;;  %v737_v53 = vsel %vm685_vm6, 0.0, %v689_v41  ;;  %v1068_v18 = vpack.c.bf16 %v1048_v7, %v1048_v7  ;;  %vm3651_vm12 = vmand %vm982_vm10, %vm992_vm11 }
 0x200   : > { %v860_v50 = vpop.permute.xlu1 %859  ;;  %v953_v21 = vmax.f32 %v933_v4, 0.0  ;;  %v715_v15 = vsel %vm685_vm6, %v713_v55, %v714_v11  ;;  %v826_v52 = vsel %vm766_vm5, %v795_v13, 0.0  ;;  %v3029_v4 = vld [vmem:[%s4494_s4 + $0x74] sm:$0xf0]  ;;  %v796_v51 = vsel %vm766_vm5, %v794_v2, %v795_v13  ;;  %v3023_v13 = vld [vmem:[%s4494_s4 + $0x44] sm:$0xf0] }
 0x201   : > { %v1040_v9 = vsel %vm3572_vm3, %v959_v24, 0.0  ;;  %v1046_v12 = vsel %vm3585_vm4, %v965_v42, 0.0  ;;  %v903_v3 = vadd.f32 %v860_v50, %v744_v6  ;;  %v838_v44 = vpop.permute.xlu2 %837  ;;  %v973_v42 = vadd.s32 2, %v3498_v40 }
 0x202   : > { %v1060_v46 = vpack.c.bf16 %v1040_v9, %v1040_v9  ;;  %v1066_v56 = vpack.c.bf16 %v1046_v12, %v1046_v12  ;;  %v892_v5 = vadd.f32 %v838_v44, %v694_v29  ;;  %v1139_v36 = vunpack.c.l.b16 %v1068_v18 }
 0x203   : > { %v923_v49 = vadd.f32 %v903_v3, %v793_v57  ;;  %v1034_v12 = vsel %vm3651_vm12, %v953_v21, 0.0  ;;  %vm983_vm14 = vcmp.ge.s32.totalorder %v973_v42, 0  ;;  %vm993_vm15 = vcmp.lt.s32.totalorder %v973_v42, 16 }
 0x204   : > { %v1121_v0 = vunpack.c.l.b16 %v1060_v46  ;;  %v1127_v1 = vunpack.c.l.b16 %v1066_v56  ;;  %v912_v43 = vadd.f32 %v892_v5, %v819_v27  ;;  %v1054_v56 = vpack.c.bf16 %v1034_v12, %v1034_v12  ;;  %vm3673_vm1 = vmand %vm983_vm14, %vm993_vm15 }
 0x205   : > { %v946_v35 = vadd.f32 %v3509_v54, %v923_v49  ;;  %vm981_vm10 = vcmp.ge.s32.totalorder %v3498_v40, 0  ;;  %vm991_vm11 = vcmp.lt.s32.totalorder %v3498_v40, 16  ;;  %vm1823_vm14 = vcmask 1041409  }
 0x206   : > { %v3629_v14 = vpack.c.b16 %v1127_v1, %v1126_v47  ;;  %v3631_v33 = vpack.c.b16 %v1121_v0, %v1120_v30  ;;  %v935_v50 = vadd.f32 %v3509_v54, %v912_v43  ;;  %v1115_v0 = vunpack.c.l.b16 %v1054_v56  ;;  %v2944_v1 = vld [vmem:[%s4494_s4 + $0x70] sm:$0xf] }
 0x207   : > { %v966_v48 = vmax.f32 %v946_v35, 0.0  ;;  %v2936_v35 = vld [vmem:[%s4494_s4 + $0x60] sm:$0xf]  ;;  %v2945_v11 = vor.u32 %v3029_v4, %v2944_v1  ;;  %v2928_v43 = vld [vmem:[%s4494_s4 + $0x50] sm:$0xf]  ;;  %vm1827_vm15 = vcmask 1042434  }
 0x208   : > { %1153 = vrot.lane.b32.xlu0 %v3629_v14, %s3142_s11  ;;  %2987 = vmatmul.msk.bf16.gmra.mxu3 %vm1162_vm13, %v3629_v14  ;;  %v832_v31 = vpop.permute.xlu1 %831  ;;  %v955_v57 = vmax.f32 %v935_v50, 0.0  ;;  %v2888_v4 = vld [vmem:[%s4494_s4] sm:$0xf] }
 0x209   : > { %v889_v34 = vadd.f32 %v832_v31, %v737_v53  ;;  %v1047_v26 = vsel %vm3615_vm9, %v966_v48, 0.0  ;;  %v866_v37 = vpop.permute.xlu2 %865  ;;  %v3027_v48 = vld [vmem:[%s4494_s4 + $0x64] sm:$0xf0]  ;;  %3038 = vmatpush.bf16.msra.mxu2 %v2945_v11  ;;  %1333 = vmatpush.bf16.msrb.mxu0 %v2945_v11  ;;  %v2946_v11 = vld [vmem:[%s4494_s4 + $0x78] sm:$0xf0] }
 0x20a   : > { %v1067_v24 = vpack.c.bf16 %v1047_v26, %v1047_v26  ;;  %v906_v9 = vadd.f32 %v866_v37, %v715_v15  ;;  %v1036_v5 = vsel %vm3673_vm1, %v955_v57, 0.0  ;;  %v2937_v31 = vor.u32 %v3027_v48, %v2936_v35  ;;  %v3015_v35 = vld [vmem:[%s4494_s4 + $0x4] sm:$0xf0] }
 0x20b   : > { %v909_v32 = vadd.f32 %v889_v34, %v3368_v8  ;;  %v738_v8 = vsel %vm685_vm6, 0.0, %v692_v38  ;;  %v980_v38 = vadd.s32 9, %v3498_v40  ;;  %v1056_v18 = vpack.c.bf16 %v1036_v5, %v1036_v5  ;;  %v3025_v34 = vld [vmem:[%s4494_s4 + $0x54] sm:$0xf0] }
 0x20c   : > { %v1138_v45 = vunpack.c.l.b16 %v1067_v24  ;;  %v926_v60 = vadd.f32 %v906_v9, %v826_v52  ;;  %v2929_v42 = vor.u32 %v3025_v34, %v2928_v43  ;;  %v2889_v5 = vor.u32 %v3015_v35, %v2888_v4  ;;  %v3022_v34 = vld [vmem:[%s4494_s4 + $0x44] sm:$0xf] }
 0x20d   : > { %v932_v6 = vadd.f32 %v3509_v54, %v909_v32  ;;  %vm990_vm2 = vcmp.ge.s32.totalorder %v980_v38, 0  ;;  %vm1000_vm3 = vcmp.lt.s32.totalorder %v980_v38, 16  ;;  %3039 = vmatpush.bf16.msra.mxu2 %v2937_v31  ;;  %1334 = vmatpush.bf16.msrb.mxu0 %v2937_v31  ;;  %v1117_v32 = vunpack.c.l.b16 %v1056_v18  ;;  %v2938_v31 = vld [vmem:[%s4494_s4 + $0x68] sm:$0xf0] }
 0x20e   : > { %v3662_v3 = vpack.c.b16 %v1139_v36, %v1138_v45  ;;  %vm3718_vm4 = vmand %vm990_vm2, %vm1000_vm3  ;;  %v2920_v36 = vld [vmem:[%s4494_s4 + $0x40] sm:$0xf]  ;;  %v687_v35 = vrot.slane %v3349_v61, 7  ;;  %v768_v61 = vrot.slane %v3351_v62, 1  ;;  %vm2143_vm2 = vcmask 517120  }
 0x20f   : > { %v952_v44 = vmax.f32 %v932_v6, 0.0  ;;  %v2921_v52 = vor.u32 %v3023_v13, %v2920_v36  ;;  %v3018_v36 = vld [vmem:[%s4494_s4 + $0x24] sm:$0xf]  ;;  %v2906_v13 = vld [vmem:[%s4494_s4 + $0x28] sm:$0xf0]  ;;  %vm2531_vm3 = vcmask 1044484  }
 0x210   : > { %839 = vrot.lane.b32.xlu0 %v3382_v17, %s3142_s11  ;;  %v836_v46 = vpop.permute.xlu1 %835  ;;  %1155 = vrot.lane.b32.xlu2 %v3662_v3, %s3142_s11 }
 0x211   : > { %v891_v49 = vadd.f32 %v836_v46, %v738_v8  ;;  %v1033_v29 = vsel %vm3651_vm12, %v952_v44, 0.0  ;;  %3040 = vmatpush.bf16.msra.mxu2 %v2929_v42  ;;  %1335 = vmatpush.bf16.msrb.mxu0 %v2929_v42  ;;  %v2912_v8 = vld [vmem:[%s4494_s4 + $0x30] sm:$0xf]  ;;  %v3021_v46 = vld [vmem:[%s4494_s4 + $0x34] sm:$0xf0]  ;;  %vm1001_vm12 = vmand %vm981_vm10, %vm991_vm11 }
 0x212   : > { %v1053_v30 = vpack.c.bf16 %v1033_v29, %v1033_v29  ;;  %v3036_v42 = vld [vmem:[%s4494_s4 + $0xb4] sm:$0xf] }
 0x213   : > { %v911_v10 = vadd.f32 %v891_v49, %v3380_v16  ;;  %v949_v16 = vadd.f32 %v3509_v54, %v926_v60  ;;  %v2913_v60 = vor.u32 %v3021_v46, %v2912_v8  ;;  %v3016_v46 = vld [vmem:[%s4494_s4 + $0x14] sm:$0xf] }
 0x214   : > { %v1114_v47 = vunpack.c.l.b16 %v1053_v30  ;;  %v3019_v30 = vld [vmem:[%s4494_s4 + $0x24] sm:$0xf0] }
 0x215   : > { %v934_v7 = vadd.f32 %v3509_v54, %v911_v10  ;;  %v969_v26 = vmax.f32 %v949_v16, 0.0  ;;  %3041 = vmatpush.bf16.msra.mxu2 %v2921_v52  ;;  %1336 = vmatpush.bf16.msrb.mxu0 %v2921_v52  ;;  %v2905_v38 = vor.u32 %v3019_v30, %v2904_v63  ;;  %v3014_v30 = vld [vmem:[%s4494_s4 + $0x4] sm:$0xf] }
 0x216   : > { %v3696_v27 = vpack.c.b16 %v1115_v0, %v1114_v47  ;;  %v2896_v47 = vld [vmem:[%s4494_s4 + $0x10] sm:$0xf]  ;;  %v3017_v0 = vld [vmem:[%s4494_s4 + $0x14] sm:$0xf0] }
 0x217   : > { %v954_v53 = vmax.f32 %v934_v7, 0.0  ;;  %v1050_v6 = vsel %vm3718_vm4, %v969_v26, 0.0  ;;  %v2897_v1 = vor.u32 %v3017_v0, %v2896_v47  ;;  %v3028_v7 = vld [vmem:[%s4494_s4 + $0x74] sm:$0xf]  ;;  %v2922_v26 = vld [vmem:[%s4494_s4 + $0x48] sm:$0xf0] }
 0x218   : > { %827 = vrot.lane.b32.xlu0 %v3342_v58, %s3142_s11  ;;  %2988 = vmatmul.msk.bf16.gmra.mxu3 %vm1162_vm13, %v3662_v3  ;;  %v864_v21 = vpop.permute.xlu1 %863  ;;  %v1070_v44 = vpack.c.bf16 %v1050_v6, %v1050_v6  ;;  %v2949_v2 = vor.u32 %v3028_v7, %v2946_v11  ;;  %v3034_v6 = vld [vmem:[%s4494_s4 + $0xa4] sm:$0xf] }
 0x219   : > { %v1035_v37 = vsel %vm3673_vm1, %v954_v53, 0.0  ;;  %v905_v15 = vadd.f32 %v864_v21, %v745_v28  ;;  %1141 = vrot.lane.b32.xlu2 %v3696_v27, %s3142_s11  ;;  %3042 = vmatpush.bf16.msra.mxu2 %v2913_v60  ;;  %v3026_v53 = vld [vmem:[%s4494_s4 + $0x64] sm:$0xf]  ;;  %v3024_v21 = vld [vmem:[%s4494_s4 + $0x54] sm:$0xf]  ;;  %vm1831_vm1 = vcmask 1043459  }
 0x21a   : > { %v1055_v24 = vpack.c.bf16 %v1035_v37, %v1035_v37  ;;  %v1160_v29 = vunpack.c.l.b16 %v1070_v44  ;;  %1337 = vmatpush.bf16.msrb.mxu0 %v2913_v60  ;;  %1431 = vmatpush.bf16.msrb.mxu3 %v2949_v2  ;;  %v2941_v18 = vor.u32 %v3026_v53, %v2938_v31  ;;  %v2930_v28 = vld [vmem:[%s4494_s4 + $0x58] sm:$0xf0]  ;;  %v2925_v37 = vor.u32 %v3022_v34, %v2922_v26  ;;  %v3032_v60 = vld [vmem:[%s4494_s4 + $0x94] sm:$0xf]  ;;  %v3030_v47 = vld [vmem:[%s4494_s4 + $0x84] sm:$0xf] }
 0x21b   : > { %v925_v41 = vadd.f32 %v905_v15, %v796_v51  ;;  %v2933_v43 = vor.u32 %v3024_v21, %v2930_v28  ;;  %v2914_v51 = vld [vmem:[%s4494_s4 + $0x38] sm:$0xf0]  ;;  %v696_v44 = vrot.slane %v3384_v19, 7  ;;  %v695_v19 = vrot.slane %v3382_v17, 7  ;;  %v2954_v17 = vld [vmem:[%s4494_s4 + $0x88] sm:$0xf0] }
 0x21c   : > { %v1116_v45 = vunpack.c.l.b16 %v1055_v24  ;;  %v3020_v24 = vld [vmem:[%s4494_s4 + $0x34] sm:$0xf]  ;;  %v2957_v4 = vor.u32 %v3030_v47, %v2954_v17  ;;  %v686_v2 = vrot.slane %v3342_v58, 7  ;;  %v974_v31 = vadd.s32 3, %v3498_v40 }
 0x21d   : > { %v948_v50 = vadd.f32 %v3509_v54, %v925_v41  ;;  %3043 = vmatpush.bf16.msra.mxu2 %v2905_v38  ;;  %v2917_v41 = vor.u32 %v3020_v24, %v2914_v51  ;;  %v697_v63 = vsel %vm685_vm6, %v695_v19, %v696_v44  ;;  %v817_v21 = vsel %vm766_vm5, %v768_v61, 0.0 }
 0x21e   : > { %v3731_v9 = vpack.c.b16 %v1117_v32, %v1116_v45  ;;  %1338 = vmatpush.bf16.msrb.mxu0 %v2905_v38  ;;  %1432 = vmatpush.bf16.msrb.mxu3 %v2941_v18  ;;  %v2978_v32 = vld [vmem:[%s4494_s4 + $0xb8] sm:$0xf0]  ;;  %v2890_v38 = vld [vmem:[%s4494_s4 + $0x8] sm:$0xf0]  ;;  %v688_v20 = vsel %vm685_vm6, %v686_v2, %v687_v35  ;;  %vm984_vm7 = vcmp.ge.s32.totalorder %v974_v31, 0  ;;  %vm994_vm8 = vcmp.lt.s32.totalorder %v974_v31, 16 }
 0x21f   : > { %v968_v12 = vmax.f32 %v948_v50, 0.0  ;;  %v2981_v45 = vor.u32 %v3036_v42, %v2978_v32  ;;  %v2909_v50 = vor.u32 %v3018_v36, %v2906_v13  ;;  %v739_v28 = vsel %vm685_vm6, 0.0, %v695_v19  ;;  %vm1004_vm9 = vmand %vm984_vm7, %vm994_vm8 }
 0x220   : > { %1143 = vrot.lane.b32.xlu0 %v3731_v9, %s3142_s11  ;;  %2982 = vmatmul.msk.bf16.vlgmr.msrb.gmra.mxu1 %vm1162_vm13, %v3731_v9  ;;  %v842_v8 = vpop.permute.xlu1 %841  ;;  %v767_v42 = vrot.slane %v3344_v59, 1  ;;  %vm2535_vm7 = vcmask 1046534   ;;  %vm2537_vm8 = vcmask 1047559  }
 0x221   : > { %1147 = vrot.lane.b32.xlu2 %v3631_v33, %s3142_s11  ;;  %v1049_v56 = vsel %vm3718_vm4, %v968_v12, 0.0  ;;  %3044 = vmatpush.bf16.msra.mxu2 %v2897_v1  ;;  %v2970_v12 = vld [vmem:[%s4494_s4 + $0xa8] sm:$0xf0]  ;;  %v894_v0 = vadd.f32 %v842_v8, %v697_v63  ;;  %vm2533_vm4 = vcmask 1045509  }
 0x222   : > { %v1069_v57 = vpack.c.bf16 %v1049_v56, %v1049_v56  ;;  %1339 = vmatpush.bf16.msrb.mxu0 %v2897_v1  ;;  %1433 = vmatpush.bf16.msrb.mxu3 %v2933_v43  ;;  %v2973_v52 = vor.u32 %v3034_v6, %v2970_v12  ;;  %v2898_v56 = vld [vmem:[%s4494_s4 + $0x18] sm:$0xf0]  ;;  %v2893_v1 = vor.u32 %v3014_v30, %v2890_v38 }
 0x224   : > { %v1159_v49 = vunpack.c.l.b16 %v1069_v57  ;;  %v2901_v57 = vor.u32 %v3016_v46, %v2898_v56 }
 0x225   : > { %3045 = vmatpush.bf16.msra.mxu2 %v2889_v5 }
 0x226   : > { %v3753_v10 = vpack.c.b16 %v1160_v29, %v1159_v49  ;;  %1340 = vmatpush.bf16.msrb.mxu0 %v2889_v5  ;;  %1434 = vmatpush.bf16.msrb.mxu3 %v2925_v37  ;;  %v2962_v49 = vld [vmem:[%s4494_s4 + $0x98] sm:$0xf0]  ;;  %v820_v5 = vsel %vm766_vm5, %v777_v22, 0.0 }
 0x227   : > { %v2965_v29 = vor.u32 %v3032_v60, %v2962_v49  ;;  %v914_v7 = vadd.f32 %v894_v0, %v820_v5 }
 0x228   : > { %2989 = vmatmul.msk.bf16.gmra.mxu3 %vm1162_vm13, %v3753_v10  ;;  %v830_v53 = vpop.permute.xlu1 %829 }
 0x229   : > { %1484 = vmatpush.bf16.msrb.mxu2 %v2981_v45  ;;  %v937_v22 = vadd.f32 %v3509_v54, %v914_v7  ;;  %v888_v18 = vadd.f32 %v830_v53, %v688_v20  ;;  %v736_v45 = vsel %vm685_vm6, 0.0, %v686_v2 }
 0x22a   : > { %1435 = vmatpush.bf16.msrb.mxu3 %v2917_v41 }
 0x22b   : > { %v957_v58 = vmax.f32 %v937_v22, 0.0  ;;  %v908_v34 = vadd.f32 %v888_v18, %v817_v21 }
 0x22d   : > { %1485 = vmatpush.bf16.msrb.mxu2 %v2973_v52  ;;  %v931_v62 = vadd.f32 %v3509_v54, %v908_v34  ;;  %v769_v52 = vsel %vm766_vm5, %v767_v42, %v768_v61 }
 0x22e   : > { %1436 = vmatpush.bf16.msrb.mxu3 %v2909_v50 }
 0x22f   : > { %v951_v13 = vmax.f32 %v931_v62, 0.0 }
 0x231   : > { %1486 = vmatpush.bf16.msrb.mxu2 %v2965_v29  ;;  %v1032_v8 = vsel %vm1001_vm12, %v951_v13, 0.0 }
 0x232   : > { %1437 = vmatpush.bf16.msrb.mxu3 %v2901_v57  ;;  %v1052_v60 = vpack.c.bf16 %v1032_v8, %v1032_v8 }
 0x234   : > { %v1113_v29 = vunpack.c.l.b16 %v1052_v60 }
 0x235   : > { %1487 = vmatpush.bf16.msrb.mxu2 %v2957_v4 }
 0x236   : > { %1438 = vmatpush.bf16.msrb.mxu3 %v2893_v1 }
 0x25a   : > { %v1150_v16 = vpop.permute.xlu0 %1149 }
 0x25b   : > { %v3777_v48 = vsel %vm1162_vm13, %v3631_v33, %v1150_v16 }
 0x25c   : > { %1361 = vmatmul.bf16.vlgmr.msra.gmra.mxu2 %v3777_v48 }
 0x262   : > { %v1152_v15 = vpop.permute.xlu0 %1151 }
 0x263   : > { %v3806_v55 = vsel %vm1162_vm13, %v3544_v39, %v1152_v15  ;;  %v1038_v15 = vsel %vm1004_vm9, %v957_v58, 0.0 }
 0x264   : > { %v1058_v32 = vpack.c.bf16 %v1038_v15, %v1038_v15 }
 0x266   : > { %v1119_v44 = vunpack.c.l.b16 %v1058_v32 }
 0x26a   : > { %v1156_v51 = vpop.permute.xlu2 %1155 }
 0x26b   : > { %v3879_v6 = vsel %vm1162_vm13, %v3629_v14, %v1156_v51  ;;  %v3894_v1 = vpop.f32.mrf.mxu3 }
 0x26c   : > { %1366 = vmatmul.bf16.gmra.mxu2 %v3806_v55 }
 0x273   : > { %v1142_v38 = vpop.permute.xlu2 %1141  ;;  %v3898_v17 = vpop.f32.mrf.mxu3 }
 0x27a   : > { %v1154_v16 = vpop.permute.xlu0 %1153 }
 0x27b   : > { %v3860_v11 = vsel %vm1162_vm13, %v3553_v25, %v1154_v16  ;;  %v3902_v4 = vpop.f32.mrf.mxu3 }
 0x27c   : > { %1371 = vmatmul.bf16.gmra.mxu2 %v3860_v11 }
 0x282   : > { %v840_v43 = vpop.permute.xlu0 %839 }
 0x283   : > { %v893_v26 = vadd.f32 %v840_v43, %v739_v28  ;;  %v3904_v35 = vpop.f32.mrf.mxu3 }
 0x285   : > { %v913_v37 = vadd.f32 %v893_v26, %v3392_v23 }
 0x287   : > { %v936_v24 = vadd.f32 %v3509_v54, %v913_v37 }
 0x289   : > { %v956_v41 = vmax.f32 %v936_v24, 0.0 }
 0x28a   : > { %v828_v36 = vpop.permute.xlu0 %827 }
 0x28b   : > { %v1037_v50 = vsel %vm1004_vm9, %v956_v41, 0.0  ;;  %v887_v23 = vadd.f32 %v828_v36, %v736_v45  ;;  %v3910_v5 = vpop.f32.mrf.mxu3  ;;  %vm2667_vm9 = vcmask 1041408  }
 0x28c   : > { %v1057_v12 = vpack.c.bf16 %v1037_v50, %v1037_v50  ;;  %1376 = vmatmul.bf16.gmra.mxu2 %v3879_v6 }
 0x28d   : > { %v907_v40 = vadd.f32 %v887_v23, %v769_v52 }
 0x28e   : > { %v1118_v59 = vunpack.c.l.b16 %v1057_v12 }
 0x28f   : > { %v930_v46 = vadd.f32 %v3509_v54, %v907_v40 }
 0x290   : > { %v1131_v56 = vpack.c.b16 %v1119_v44, %v1118_v59 }
 0x291   : > { %v950_v57 = vmax.f32 %v930_v46, 0.0 }
 0x292   : > { %1145 = vrot.lane.b32.xlu1 %v1131_v56, %s3142_s11  ;;  %2983 = vmatmul.msk.bf16.gmra.mxu1 %vm1162_vm13, %v1131_v56  ;;  %v1144_v54 = vpop.permute.xlu0 %1143 }
 0x293   : > { %v1031_v49 = vsel %vm1001_vm12, %v950_v57, 0.0  ;;  %v1169_v0 = vsel %vm1162_vm13, %v3696_v27, %v1144_v54 }
 0x294   : > { %v1051_v19 = vpack.c.bf16 %v1031_v49, %v1031_v49 }
 0x296   : > { %v1112_v63 = vunpack.c.l.b16 %v1051_v19 }
 0x298   : > { %v1128_v30 = vpack.c.b16 %v1113_v29, %v1112_v63 }
 0x29a   : > { %v1165_v47 = vsel %vm1162_vm13, %v1128_v30, %v1142_v38 }
 0x29b   : > { %1341 = vmatmul.bf16.vlgmr.msrb.gmra.mxu0 %v1165_v47  ;;  %1439 = vmatmul.bf16.vlgmr.msrb.gmra.mxu3 %v1165_v47 }
 0x29c   : > { %2990 = vmatmul.msk.bf16.vlgmr.msrb.gmra.mxu2 %vm1162_vm13, %v3731_v9 }
 0x29d   : > { %v1391_v18 = vpop.f32.mrf.mxu1 }
 0x2a2   : > { %2984 = vmatmul.msk.bf16.gmra.mxu1 %vm1162_vm13, %v3631_v33 }
 0x2a5   : > { %v1393_v34 = vpop.f32.mrf.mxu1 }
 0x2ab   : > { %1346 = vmatmul.bf16.gmra.mxu0 %v1169_v0  ;;  %1444 = vmatmul.bf16.gmra.mxu3 %v1169_v0 }
 0x2ac   : > { %2991 = vmatmul.msk.bf16.gmra.mxu2 %vm1162_vm13, %v1131_v56 }
 0x2bc   : > { %2992 = vmatmul.msk.bf16.gmra.mxu2 %vm1162_vm13, %v3631_v33  ;;  %v3916_v33 = vpop.f32.mrf.mxu3 }
 0x2c4   : > { %v3922_v2 = vpop.f32.mrf.mxu3 }
 0x2cc   : > { %2993 = vmatmul.msk.bf16.gmra.mxu2 %vm1162_vm13, %v3544_v39  ;;  %v3928_v53 = vpop.f32.mrf.mxu3 }
 0x2d4   : > { %v3934_v20 = vpop.f32.mrf.mxu3 }
 0x2dc   : > { %2994 = vmatmul.msk.bf16.gmra.mxu2 %vm1162_vm13, %v3553_v25  ;;  %v3941_v28 = vpop.f32.mrf.mxu3 }
 0x2df   : > { %v3908_v27 = vpop.f32.mrf.mxu2 }
 0x2e7   : > { %v3912_v16 = vpop.f32.mrf.mxu2 }
 0x2ec   : > { %2995 = vmatmul.msk.bf16.gmra.mxu2 %vm1162_vm13, %v3629_v14 }
 0x2ef   : > { %v3918_v7 = vpop.f32.mrf.mxu2 }
 0x2f7   : > { %v3920_v39 = vpop.f32.mrf.mxu2 }
 0x2fc   : > { %2996 = vmatmul.msk.bf16.gmra.mxu2 %vm1162_vm13, %v3662_v3  ;;  %v1148_v3 = vpop.permute.xlu2 %1147 }
 0x2fd   : > { %v1177_v21 = vsel %vm1162_vm13, %v1131_v56, %v1148_v3 }
 0x2ff   : > { %v3926_v25 = vpop.f32.mrf.mxu2 }
 0x304   : > { %v1146_v31 = vpop.permute.xlu1 %1145 }
 0x305   : > { %v1173_v61 = vsel %vm1162_vm13, %v3731_v9, %v1146_v31 }
 0x306   : > { %1351 = vmatmul.bf16.gmra.mxu0 %v1173_v61  ;;  %1449 = vmatmul.bf16.gmra.mxu3 %v1173_v61 }
 0x307   : > { %v3932_v14 = vpop.f32.mrf.mxu2 }
 0x30c   : > { %2997 = vmatmul.msk.bf16.gmra.mxu2 %vm1162_vm13, %v3753_v10 }
 0x30f   : > { %v3938_v22 = vpop.f32.mrf.mxu2  ;;  %v1396_v42 = vpop.f32.mrf.mxu1 }
 0x316   : > { %1356 = vmatmul.bf16.gmra.mxu0 %v1177_v21  ;;  %1454 = vmatmul.bf16.gmra.mxu3 %v1177_v21 }
 0x317   : > { %v3943_v9 = vpop.f32.mrf.mxu2  ;;  %v1398_v59 = vpop.f32.mrf.mxu1 }
 0x318   : > { %v1342_v43 = vpop.f32.mrf.mxu0 }
 0x319   : > { %v1392_v58 = vadd.f32 %v1391_v18, %v1342_v43 }
 0x31b   : > { %1657 = vrot.lane.b32.xlu0 %v1392_v58, %s3142_s11  ;;  %v1545_v24 = vrot.slane %v1392_v58, 7 }
 0x31e   : > { %v1440_v26 = vpop.f32.mrf.mxu3 }
 0x31f   : > { %v1489_v37 = vpop.f32.mrf.mxu2 }
 0x320   : > { %v1490_v10 = vadd.f32 %v1489_v37, %v1440_v26  ;;  %v1344_v15 = vpop.f32.mrf.mxu0 }
 0x321   : > { %v1394_v62 = vadd.f32 %v1393_v34, %v1344_v15  ;;  %v3979_v15 = vld [vmem:[%s4495_s5] ss:$0 sm:$0xff] }
 0x322   : > { %v1609_v23 = vrot.slane %v1490_v10, 1 }
 0x323   : > { %v1546_v51 = vrot.slane %v1394_v62, 7  ;;  %1659 = vrot.lane.b32.xlu2 %v1394_v62, %s3142_s11 }
 0x325   : > { %v1547_v41 = vsel %vm685_vm6, %v1545_v24, %v1546_v51 }
 0x326   : > { %v1442_v32 = vpop.f32.mrf.mxu3  ;;  %1459 = vmatmul.bf16.gmra.mxu3 %v3777_v48 }
 0x327   : > { %v1491_v45 = vpop.f32.mrf.mxu2 }
 0x328   : > { %v1492_v36 = vadd.f32 %v1491_v45, %v1442_v32  ;;  %v1347_v13 = vpop.f32.mrf.mxu0 }
 0x329   : > { %v3949_v50 = vadd.f32 %v1396_v42, %v1347_v13  ;;  %v3991_v13 = vadd.f32 %v3902_v4, %v3908_v27 }
 0x32a   : > { %v1610_v12 = vrot.slane %v1492_v36, 1 }
 0x32b   : > { %1661 = vrot.lane.b32.xlu1 %v3949_v50, %s3142_s11  ;;  %v1548_v48 = vrot.slane %v3949_v50, 7 }
 0x32c   : > { %v1611_v52 = vsel %vm766_vm5, %v1609_v23, %v1610_v12  ;;  %v1649_v0 = vsel %vm766_vm5, %v1610_v12, 0.0 }
 0x32e   : > { %v1445_v40 = vpop.f32.mrf.mxu3 }
 0x32f   : > { %v1494_v44 = vpop.f32.mrf.mxu2 }
 0x330   : > { %v1495_v8 = vadd.f32 %v1494_v44, %v1445_v40  ;;  %v1349_v46 = vpop.f32.mrf.mxu0 }
 0x331   : > { %v1399_v56 = vadd.f32 %v1398_v59, %v1349_v46 }
 0x332   : > { %v1612_v63 = vrot.slane %v1495_v8, 1 }
 0x333   : > { %v1549_v57 = vrot.slane %v1399_v56, 7  ;;  %1663 = vrot.lane.b32.xlu0 %v1399_v56, %s3142_s11 }
 0x335   : > { %v3957_v60 = vsel %vm685_vm6, %v1548_v48, %v1549_v57  ;;  %v4016_v57 = vadd.f32 %v3934_v20, %v3938_v22 }
 0x336   : > { %v1447_v49 = vpop.f32.mrf.mxu3  ;;  %1464 = vmatmul.bf16.gmra.mxu3 %v3806_v55  ;;  %v1401_v55 = vpop.f32.mrf.mxu1 }
 0x337   : > { %v1496_v19 = vpop.f32.mrf.mxu2 }
 0x338   : > { %v3960_v29 = vadd.f32 %v1496_v19, %v1447_v49  ;;  %v1586_v19 = vsel %vm685_vm6, 0.0, %v1548_v48 }
 0x33a   : > { %v1613_v30 = vrot.slane %v3960_v29, 1 }
 0x33c   : > { %v1614_v38 = vsel %vm766_vm5, %v1612_v63, %v1613_v30 }
 0x33e   : > { %v1403_v43 = vpop.f32.mrf.mxu1 }
 0x33f   : > { %v1499_v18 = vpop.f32.mrf.mxu2 }
 0x346   : > { %1469 = vmatmul.bf16.gmra.mxu3 %v3860_v11 }
 0x347   : > { %v1501_v42 = vpop.f32.mrf.mxu2 }
 0x34f   : > { %v1504_v44 = vpop.f32.mrf.mxu2 }
 0x356   : > { %1474 = vmatmul.bf16.gmra.mxu3 %v3879_v6  ;;  %v1585_v6 = vsel %vm685_vm6, 0.0, %v1545_v24 }
 0x37d   : > { %v1660_v47 = vpop.permute.xlu2 %1659 }
 0x37e   : > { %v1706_v54 = vadd.f32 %v1660_v47, %v1547_v41 }
 0x380   : > { %v1722_v31 = vadd.f32 %v1706_v54, %v1649_v0 }
 0x382   : > { %v1741_v8 = vadd.f32 %v3979_v15, %v1722_v31 }
 0x383   : > { %v1352_v61 = vpop.f32.mrf.mxu0 }
 0x384   : > { %v3969_v3 = vadd.f32 %v1401_v55, %v1352_v61  ;;  %v4036_v55 = vadd.f32 %v3910_v5, %v3918_v7  ;;  %v4044_v61 = vadd.f32 %v3922_v2, %v3926_v25  ;;  %v1650_v7 = vsel %vm766_vm5, %v1613_v30, 0.0 }
 0x386   : > { %1665 = vrot.lane.b32.xlu2 %v3969_v3, %s3142_s11  ;;  %v1551_v26 = vrot.slane %v3969_v3, 7 }
 0x389   : > { %v1450_v21 = vpop.f32.mrf.mxu3 }
 0x38a   : > { %v1500_v62 = vadd.f32 %v1499_v18, %v1450_v21 }
 0x38b   : > { %v1354_v58 = vpop.f32.mrf.mxu0 }
 0x38c   : > { %v1404_v34 = vadd.f32 %v1403_v43, %v1354_v58  ;;  %v1615_v50 = vrot.slane %v1500_v62, 1 }
 0x38d   : > { %v1658_v11 = vpop.permute.xlu0 %1657 }
 0x38e   : > { %v1552_v37 = vrot.slane %v1404_v34, 7  ;;  %v1705_v10 = vadd.f32 %v1658_v11, %v1585_v6  ;;  %1667 = vrot.lane.b32.xlu1 %v1404_v34, %s3142_s11 }
 0x390   : > { %v1721_v51 = vadd.f32 %v1705_v10, %v1611_v52  ;;  %v3984_v41 = vsel %vm685_vm6, %v1551_v26, %v1552_v37 }
 0x391   : > { %v1452_v24 = vpop.f32.mrf.mxu3 }
 0x392   : > { %v1740_v32 = vadd.f32 %v3979_v15, %v1721_v51  ;;  %v3987_v45 = vadd.f32 %v1501_v42, %v1452_v24 }
 0x393   : > { %v1357_v36 = vpop.f32.mrf.mxu0 }
 0x394   : > { %v1616_v23 = vrot.slane %v3987_v45, 1  ;;  %v3995_v12 = vadd.f32 %v3894_v1, %v1357_v36  ;;  %v1756_v52 = vmax.f32 %v1740_v32, 0.0  ;;  %v4008_v1 = vadd.f32 %v3904_v35, %v3912_v16 }
 0x396   : > { %1673 = vrot.lane.b32.xlu1 %v3991_v13, %s3142_s11  ;;  %1669 = vrot.lane.b32.xlu0 %v3995_v12, %s3142_s11  ;;  %v4004_v40 = vsel %vm766_vm5, %v1615_v50, %v1616_v23  ;;  %v1772_v27 = vpack.c.bf16 %v1756_v52, %v1756_v52  ;;  %v1554_v47 = vrot.slane %v3995_v12, 7  ;;  %v4067_v50 = vadd.f32 %v3941_v28, %v3943_v9 }
 0x398   : > { %v1804_v63 = vrot.slane %v1772_v27, 3 }
 0x399   : > { %v1455_v4 = vpop.f32.mrf.mxu3 }
 0x39a   : > { %v4011_v46 = vadd.f32 %v1504_v44, %v1455_v4  ;;  %v1824_v20 = vsel %vm1823_vm14, %v1772_v27, %v1804_v63  ;;  %v1828_v22 = vsel %vm1827_vm15, %v1772_v27, %v1804_v63  ;;  %v1832_v48 = vsel %vm1831_vm1, %v1772_v27, %v1804_v63 }
 0x39b   : > { %v1359_v59 = vpop.f32.mrf.mxu0  ;;  %v1822_v43 = vsel %vm685_vm6, %v1772_v27, %v1804_v63  ;;  %v1826_v58 = vrot.slane %v1824_v20, 1  ;;  %v1830_v34 = vrot.slane %v1828_v22, 2  ;;  %v1834_v11 = vrot.slane %v1832_v48, 3 }
 0x39c   : > { %v1409_v56 = vadd.f32 %v3898_v17, %v1359_v59  ;;  %v1757_v17 = vmax.f32 %v1741_v8, 0.0  ;;  %v2079_v2 = vunpack.c.l.bf16 %v1822_v43 }
 0x39d   : > { %v1662_v49 = vpop.permute.xlu1 %1661  ;;  %v2080_v10 = vunpack.c.l.bf16 %v1826_v58  ;;  %v2081_v62 = vunpack.c.l.bf16 %v1830_v34  ;;  %v2082_v51 = vunpack.c.l.bf16 %v1834_v11 }
 0x39e   : > { %v1555_v54 = vrot.slane %v1409_v56, 7  ;;  %v1707_v0 = vadd.f32 %v1662_v49, %v1586_v19  ;;  %1675 = vrot.lane.b32.xlu0 %v4008_v1, %s3142_s11  ;;  %1671 = vrot.lane.b32.xlu2 %v1409_v56, %s3142_s11  ;;  %v1773_v18 = vpack.c.bf16 %v1757_v17, %v1757_v17  ;;  %v2144_v4 = vsel %vm2143_vm2, %v2079_v2, -inf  ;;  %v4075_v19 = vpop.f32.mrf.mxu2 }
 0x39f   : > { %1685 = vrot.lane.b32.xlu1 %v4016_v57, %s3142_s11  ;;  %v2153_v63 = vsel %vm2143_vm2, %v2080_v10, -inf  ;;  %v2162_v28 = vsel %vm2143_vm2, %v2081_v62, -inf }
 0x3a0   : > { %v1723_v35 = vadd.f32 %v1707_v0, %v1614_v38  ;;  %v4028_v16 = vsel %vm685_vm6, %v1554_v47, %v1555_v54  ;;  %v4040_v38 = vadd.f32 %v3916_v33, %v3920_v39  ;;  %v4054_v33 = vadd.f32 %v3928_v53, %v3932_v14 }
 0x3a1   : > { %v1805_v39 = vrot.slane %v1773_v18, 3  ;;  %v4071_v27 = vpop.f32.mrf.mxu3  ;;  %v2171_v0 = vsel %vm2143_vm2, %v2082_v51, -inf }
 0x3a2   : > { %v1742_v31 = vadd.f32 %v3979_v15, %v1723_v35 }
 0x3a3   : > { %v1838_v52 = vsel %vm1823_vm14, %v1773_v18, %v1805_v39  ;;  %v1841_v43 = vsel %vm1827_vm15, %v1773_v18, %v1805_v39  ;;  %v1844_v58 = vsel %vm1831_vm1, %v1773_v18, %v1805_v39 }
 0x3a4   : > { %v1758_v21 = vmax.f32 %v1742_v31, 0.0  ;;  %v1840_v11 = vrot.slane %v1838_v52, 1  ;;  %v1843_v2 = vrot.slane %v1841_v43, 2 }
 0x3a5   : > { %v1664_v6 = vpop.permute.xlu0 %1663 }
 0x3a6   : > { %v1774_v37 = vpack.c.bf16 %v1758_v21, %v1758_v21  ;;  %v1708_v5 = vadd.f32 %v1664_v6, %v3957_v60  ;;  %1681 = vrot.lane.b32.xlu0 %v4044_v61, %s3142_s11  ;;  %1677 = vrot.lane.b32.xlu2 %v4036_v55, %s3142_s11 }
 0x3a7   : > { %1679 = vrot.lane.b32.xlu1 %v4040_v38, %s3142_s11 }
 0x3a8   : > { %v1806_v25 = vrot.slane %v1774_v37, 3  ;;  %v1724_v60 = vadd.f32 %v1708_v5, %v1650_v7  ;;  %v1837_v5 = vsel %vm685_vm6, %v1773_v18, %v1805_v39 }
 0x3aa   : > { %v1849_v42 = vsel %vm685_vm6, %v1774_v37, %v1806_v25  ;;  %v1850_v53 = vsel %vm1823_vm14, %v1774_v37, %v1806_v25  ;;  %v1853_v14 = vsel %vm1827_vm15, %v1774_v37, %v1806_v25  ;;  %v1856_v29 = vsel %vm1831_vm1, %v1774_v37, %v1806_v25 }
 0x3ab   : > { %v1852_v30 = vrot.slane %v1850_v53, 1  ;;  %v1855_v24 = vrot.slane %v1853_v14, 2  ;;  %v1858_v32 = vrot.slane %v1856_v29, 3  ;;  %v2087_v36 = vunpack.c.l.bf16 %v1849_v42 }
 0x3ac   : > { %v1743_v44 = vadd.f32 %v3979_v15, %v1724_v60  ;;  %v1846_v25 = vrot.slane %v1844_v58, 3  ;;  %v2083_v14 = vunpack.c.l.bf16 %v1837_v5  ;;  %v2084_v29 = vunpack.c.l.bf16 %v1840_v11 }
 0x3ad   : > { %v2088_v59 = vunpack.c.l.bf16 %v1852_v30  ;;  %v2089_v8 = vunpack.c.l.bf16 %v1855_v24  ;;  %v2090_v56 = vunpack.c.l.bf16 %v1858_v32  ;;  %v2145_v49 = vsel %vm2143_vm2, %v2087_v36, -inf  ;;  %v4094_v32 = vpop.f32.mrf.mxu3 }
 0x3ae   : > { %v2146_v9 = vmax.f32 %v2144_v4, %v2145_v49  ;;  %v1759_v54 = vmax.f32 %v1743_v44, 0.0  ;;  %1683 = vrot.lane.b32.xlu2 %v4054_v33, %s3142_s11  ;;  %1687 = vrot.lane.b32.xlu0 %v4067_v50, %s3142_s11  ;;  %v4096_v4 = vpop.f32.mrf.mxu2  ;;  %v2085_v44 = vunpack.c.l.bf16 %v1843_v2 }
 0x3af   : > { %v2154_v17 = vsel %vm2143_vm2, %v2088_v59, -inf  ;;  %v2163_v35 = vsel %vm2143_vm2, %v2089_v8, -inf  ;;  %v2172_v20 = vsel %vm2143_vm2, %v2090_v56, -inf  ;;  %v2086_v59 = vunpack.c.l.bf16 %v1846_v25 }
 0x3b0   : > { %v2147_v22 = vrot.slane %v2146_v9, 4  ;;  %v2155_v48 = vmax.f32 %v2153_v63, %v2154_v17  ;;  %v2164_v31 = vmax.f32 %v2162_v28, %v2163_v35  ;;  %v2173_v21 = vmax.f32 %v2171_v0, %v2172_v20 }
 0x3b1   : > { %v1775_v34 = vpack.c.bf16 %v1759_v54, %v1759_v54  ;;  %v2180_v54 = vsel %vm2143_vm2, %v2083_v14, -inf  ;;  %v2189_v0 = vsel %vm2143_vm2, %v2084_v29, -inf  ;;  %v2198_v58 = vsel %vm2143_vm2, %v2085_v44, -inf }
 0x3b2   : > { %v2148_v6 = vmax.f32 %v2146_v9, %v2147_v22  ;;  %v2156_v37 = vrot.slane %v2155_v48, 4 }
 0x3b3   : > { %v1807_v7 = vrot.slane %v1775_v34, 3 }
 0x3b4   : > { %v2149_v60 = vrot.slane %v2148_v6, 2  ;;  %v2157_v10 = vmax.f32 %v2155_v48, %v2156_v37  ;;  %v2165_v37 = vrot.slane %v2164_v31, 4 }
 0x3b5   : > { %v1861_v62 = vsel %vm685_vm6, %v1775_v34, %v1807_v7  ;;  %v1862_v51 = vsel %vm1823_vm14, %v1775_v34, %v1807_v7  ;;  %v1865_v42 = vsel %vm1827_vm15, %v1775_v34, %v1807_v7  ;;  %v1868_v53 = vsel %vm1831_vm1, %v1775_v34, %v1807_v7 }
 0x3b6   : > { %v2150_v30 = vmax.f32 %v2148_v6, %v2149_v60  ;;  %v2158_v24 = vrot.slane %v2157_v10, 2  ;;  %v1864_v18 = vrot.slane %v1862_v51, 1  ;;  %v1867_v39 = vrot.slane %v1865_v42, 2  ;;  %v4106_v51 = vpop.f32.mrf.mxu3 }
 0x3b7   : > { %v1870_v36 = vrot.slane %v1868_v53, 3  ;;  %v2091_v52 = vunpack.c.l.bf16 %v1861_v62  ;;  %v2207_v34 = vsel %vm2143_vm2, %v2086_v59, -inf  ;;  %v2174_v60 = vrot.slane %v2173_v21, 4  ;;  %v4108_v53 = vpop.f32.mrf.mxu2 }
 0x3b8   : > { %v2151_v8 = vrot.slane %v2150_v30, 1  ;;  %v2159_v56 = vmax.f32 %v2157_v10, %v2158_v24  ;;  %v2092_v49 = vunpack.c.l.bf16 %v1864_v18  ;;  %v2093_v63 = vunpack.c.l.bf16 %v1867_v39 }
 0x3b9   : > { %v2094_v28 = vunpack.c.l.bf16 %v1870_v36  ;;  %v2181_v9 = vsel %vm2143_vm2, %v2091_v52, -inf  ;;  %v2166_v42 = vmax.f32 %v2164_v31, %v2165_v37 }
 0x3ba   : > { %v2152_v17 = vmax.f32 %v2150_v30, %v2151_v8  ;;  %v2160_v35 = vrot.slane %v2159_v56, 1  ;;  %v2182_v20 = vmax.f32 %v2180_v54, %v2181_v9  ;;  %v2190_v22 = vsel %vm2143_vm2, %v2092_v49, -inf }
 0x3bb   : > { %v2199_v48 = vsel %vm2143_vm2, %v2093_v63, -inf  ;;  %v2208_v43 = vsel %vm2143_vm2, %v2094_v28, -inf  ;;  %v2191_v5 = vmax.f32 %v2189_v0, %v2190_v22  ;;  %v2175_v30 = vmax.f32 %v2173_v21, %v2174_v60 }
 0x3bc   : > { %v2161_v11 = vmax.f32 %v2159_v56, %v2160_v35  ;;  %v2432_v6 = vpack.c.bf16 %v2152_v17, %v2152_v17  ;;  %v2200_v7 = vmax.f32 %v2198_v58, %v2199_v48  ;;  %v2209_v2 = vmax.f32 %v2207_v34, %v2208_v43 }
 0x3bd   : > { %v2183_v29 = vrot.slane %v2182_v20, 4  ;;  %v2192_v24 = vrot.slane %v2191_v5, 4  ;;  %v2167_v18 = vrot.slane %v2166_v42, 2  ;;  %v2176_v36 = vrot.slane %v2175_v30, 2 }
 0x3be   : > { %v2433_v25 = vpack.c.bf16 %v2161_v11, %v2161_v11  ;;  %v2496_v10 = vunpack.c.l.b16 %v2432_v6  ;;  %v2201_v44 = vrot.slane %v2200_v7, 4  ;;  %v4111_v56 = vpop.f32.mrf.mxu3  ;;  %v2210_v9 = vrot.slane %v2209_v2, 4 }
 0x3bf   : > { %v2184_v39 = vmax.f32 %v2182_v20, %v2183_v29  ;;  %v2193_v52 = vmax.f32 %v2191_v5, %v2192_v24  ;;  %v2168_v59 = vmax.f32 %v2166_v42, %v2167_v18  ;;  %v4113_v49 = vpop.f32.mrf.mxu2  ;;  %v2177_v63 = vmax.f32 %v2175_v30, %v2176_v36 }
 0x3c0   : > { %v2497_v62 = vunpack.c.l.b16 %v2433_v25  ;;  %v2202_v28 = vmax.f32 %v2200_v7, %v2201_v44  ;;  %v2211_v22 = vmax.f32 %v2209_v2, %v2210_v9 }
 0x3c1   : > { %v2185_v8 = vrot.slane %v2184_v39, 2  ;;  %v2194_v31 = vrot.slane %v2193_v52, 2  ;;  %v2169_v54 = vrot.slane %v2168_v59, 1  ;;  %v2178_v17 = vrot.slane %v2177_v63, 1 }
 0x3c2   : > { %v2528_v14 = vsel %vm1823_vm14, %v2497_v62, %v2496_v10  ;;  %v2203_v35 = vrot.slane %v2202_v28, 2  ;;  %v2212_v11 = vrot.slane %v2211_v22, 2 }
 0x3c3   : > { %v2186_v0 = vmax.f32 %v2184_v39, %v2185_v8  ;;  %v2195_v21 = vmax.f32 %v2193_v52, %v2194_v31  ;;  %v2170_v20 = vmax.f32 %v2168_v59, %v2169_v54  ;;  %v2179_v43 = vmax.f32 %v2177_v63, %v2178_v17 }
 0x3c4   : > { %v2204_v34 = vmax.f32 %v2202_v28, %v2203_v35  ;;  %v2213_v62 = vmax.f32 %v2211_v22, %v2212_v11  ;;  %v1587_v31 = vsel %vm685_vm6, 0.0, %v1551_v26 }
 0x3c5   : > { %v2187_v48 = vrot.slane %v2186_v0, 1  ;;  %v2196_v58 = vrot.slane %v2195_v21, 1  ;;  %v2434_v37 = vpack.c.bf16 %v2170_v20, %v2170_v20  ;;  %v2435_v60 = vpack.c.bf16 %v2179_v43, %v2179_v43 }
 0x3c6   : > { %v1467_v6 = vpop.f32.mrf.mxu3  ;;  %v2205_v7 = vrot.slane %v2204_v34, 1  ;;  %v2214_v2 = vrot.slane %v2213_v62, 1  ;;  %v1507_v43 = vadd.f32 %v4075_v19, %v4071_v27  ;;  %v1567_v19 = vrot.slane %v4067_v50, 7 }
 0x3c7   : > { %v1516_v5 = vpop.f32.mrf.mxu2  ;;  %v2188_v25 = vmax.f32 %v2186_v0, %v2187_v48  ;;  %v2197_v10 = vmax.f32 %v2195_v21, %v2196_v58  ;;  %v2498_v42 = vunpack.c.l.b16 %v2434_v37  ;;  %v2499_v30 = vunpack.c.l.b16 %v2435_v60 }
 0x3c8   : > { %v2206_v24 = vmax.f32 %v2204_v34, %v2205_v7  ;;  %v2215_v44 = vmax.f32 %v2213_v62, %v2214_v2  ;;  %v1557_v34 = vrot.slane %v3991_v13, 7  ;;  %v1558_v37 = vrot.slane %v4008_v1, 7 }
 0x3c9   : > { %v2436_v29 = vpack.c.bf16 %v2188_v25, %v2188_v25  ;;  %v2437_v18 = vpack.c.bf16 %v2197_v10, %v2197_v10  ;;  %v2529_v39 = vsel %vm1827_vm15, %v2498_v42, %v2528_v14  ;;  %v1619_v25 = vrot.slane %v1507_v43, 1 }
 0x3ca   : > { %v2530_v59 = vsel %vm1831_vm1, %v2499_v30, %v2529_v39  ;;  %v2438_v9 = vpack.c.bf16 %v2206_v24, %v2206_v24  ;;  %v2439_v54 = vpack.c.bf16 %v2215_v44, %v2215_v44  ;;  %v1560_v60 = vrot.slane %v4036_v55, 7 }
 0x3cb   : > { %v2500_v36 = vunpack.c.l.b16 %v2436_v29  ;;  %v2501_v63 = vunpack.c.l.b16 %v2437_v18  ;;  %v1561_v10 = vrot.slane %v4040_v38, 7  ;;  %v1563_v7 = vrot.slane %v4044_v61, 7 }
 0x3cc   : > { %v2502_v17 = vunpack.c.l.b16 %v2438_v9  ;;  %v2503_v35 = vunpack.c.l.b16 %v2439_v54  ;;  %v1564_v62 = vrot.slane %v4054_v33, 7  ;;  %v4141_v27 = vsel %vm685_vm6, 0.0, %v1557_v34 }
 0x3cd   : > { %v2532_v14 = vsel %vm2531_vm3, %v2500_v36, %v2530_v59  ;;  %v1566_v13 = vrot.slane %v4016_v57, 7  ;;  %v1652_v30 = vsel %vm766_vm5, %v1619_v25, 0.0  ;;  %v1512_v55 = vadd.f32 %v4108_v53, %v4106_v51 }
 0x3ce   : > { %v4116_v52 = vpop.f32.mrf.mxu3  ;;  %v2534_v22 = vsel %vm2533_vm4, %v2501_v63, %v2532_v14  ;;  %v1517_v38 = vadd.f32 %v1516_v5, %v1467_v6  ;;  %v4150_v61 = vsel %vm685_vm6, %v1557_v34, %v1558_v37  ;;  %v1510_v33 = vadd.f32 %v4096_v4, %v4094_v32 }
 0x3cf   : > { %v4119_v8 = vpop.f32.mrf.mxu2  ;;  %v2536_v20 = vsel %vm2535_vm7, %v2502_v17, %v2534_v22  ;;  %v1590_v57 = vsel %vm685_vm6, 0.0, %v1560_v60  ;;  %v4156_v50 = vsel %vm685_vm6, %v1560_v60, %v1561_v10  ;;  %v4161_v51 = vsel %vm685_vm6, %v1563_v7, %v1564_v62 }
 0x3d0   : > { %v4129_v3 = vsel %vm2537_vm8, %v2503_v35, %v2536_v20  ;;  %v4164_v53 = vsel %vm685_vm6, 0.0, %v1563_v7  ;;  %v4168_v4 = vsel %vm685_vm6, 0.0, %v1566_v13  ;;  %v4171_v5 = vsel %vm685_vm6, %v1566_v13, %v1567_v19 }
 0x3d1   : > { %v1622_v39 = vrot.slane %v1512_v55, 1  ;;  %v1625_v36 = vrot.slane %v1517_v38, 1  ;;  %v1588_v44 = vsel %vm685_vm6, 0.0, %v1554_v47  ;;  %v1618_v59 = vrot.slane %v4011_v46, 1 }
 0x3d2   : > { %v1621_v63 = vrot.slane %v1510_v33, 1  ;;  %v1520_v54 = vadd.f32 %v4119_v8, %v4116_v52 }
 0x3d3   : > { %v4184_v47 = vsel %vm766_vm5, %v1622_v39, 0.0  ;;  %v1620_v20 = vsel %vm766_vm5, %v1618_v59, %v1619_v25  ;;  %v4190_v43 = vsel %vm766_vm5, %v1625_v36, 0.0 }
 0x3d4   : > { %v1623_v22 = vsel %vm766_vm5, %v1621_v63, %v1622_v39 }
 0x3d6   : > { %v1472_v26 = vpop.f32.mrf.mxu3 }
 0x3d7   : > { %v1521_v48 = vpop.f32.mrf.mxu2 }
 0x3d8   : > { %v1522_v18 = vadd.f32 %v1521_v48, %v1472_v26 }
 0x3de   : > { %v1475_v58 = vpop.f32.mrf.mxu3 }
 0x3e0   : > { %v1666_v28 = vpop.permute.xlu2 %1665 }
 0x3e1   : > { %v1709_v0 = vadd.f32 %v1666_v28, %v1587_v31 }
 0x3e3   : > { %v1725_v21 = vadd.f32 %v1709_v0, %v4004_v40  ;;  %v1524_v40 = vpop.f32.mrf.mxu2  ;;  %v1628_v0 = vrot.slane %v1522_v18, 1 }
 0x3e4   : > { %v1525_v45 = vadd.f32 %v1524_v40, %v1475_v58  ;;  %v1627_v58 = vrot.slane %v1520_v54, 1 }
 0x3e5   : > { %v1744_v11 = vadd.f32 %v3979_v15, %v1725_v21 }
 0x3e6   : > { %v1477_v2 = vpop.f32.mrf.mxu3  ;;  %v1630_v34 = vrot.slane %v1525_v45, 1  ;;  %v4198_v62 = vsel %vm766_vm5, %v1627_v58, %v1628_v0 }
 0x3e7   : > { %v1760_v29 = vmax.f32 %v1744_v11, 0.0 }
 0x3e9   : > { %v1776_v6 = vpack.c.bf16 %v1760_v29, %v1760_v29 }
 0x3eb   : > { %v1808_v14 = vrot.slane %v1776_v6, 3 }
 0x3ed   : > { %v1874_v40 = vsel %vm1823_vm14, %v1776_v6, %v1808_v14  ;;  %v1877_v55 = vsel %vm1827_vm15, %v1776_v6, %v1808_v14  ;;  %v1880_v38 = vsel %vm1831_vm1, %v1776_v6, %v1808_v14 }
 0x3f8   : > { %v1672_v42 = vpop.permute.xlu2 %1671 }
 0x3f9   : > { %v1712_v1 = vadd.f32 %v1672_v42, %v4028_v16  ;;  %v1515_v16 = vadd.f32 %v4113_v49, %v4111_v56  ;;  %v1651_v56 = vsel %vm766_vm5, %v1616_v23, 0.0  ;;  %v1526_v49 = vpop.f32.mrf.mxu2 }
 0x3fa   : > { %v1527_v31 = vadd.f32 %v1526_v49, %v1477_v2 }
 0x3fb   : > { %v1728_v24 = vadd.f32 %v1712_v1, %v1652_v30  ;;  %v1624_v9 = vrot.slane %v1515_v16, 1  ;;  %v1873_v1 = vsel %vm685_vm6, %v1776_v6, %v1808_v14  ;;  %v1876_v30 = vrot.slane %v1874_v40, 1 }
 0x3fc   : > { %v1631_v26 = vrot.slane %v1527_v31, 1  ;;  %v1882_v6 = vrot.slane %v1880_v38, 3  ;;  %v2095_v54 = vunpack.c.l.bf16 %v1873_v1 }
 0x3fd   : > { %v1747_v32 = vadd.f32 %v3979_v15, %v1728_v24  ;;  %v1626_v46 = vsel %vm766_vm5, %v1624_v9, %v1625_v36  ;;  %v1879_v9 = vrot.slane %v1877_v55, 2 }
 0x3fe   : > { %v4201_v42 = vsel %vm766_vm5, %v1631_v26, 0.0 }
 0x3ff   : > { %v1763_v28 = vmax.f32 %v1747_v32, 0.0 }
 0x400   : > { %v1668_v17 = vpop.permute.xlu1 %1667  ;;  %v1678_v23 = vpop.permute.xlu2 %1677 }
 0x401   : > { %v1779_v21 = vpack.c.bf16 %v1763_v28, %v1763_v28  ;;  %v1710_v35 = vadd.f32 %v1668_v17, %v3984_v41  ;;  %v1715_v12 = vadd.f32 %v1678_v23, %v1590_v57  ;;  %v1655_v41 = vsel %vm766_vm5, %v1628_v0, 0.0 }
 0x402   : > { %v4211_v28 = vsel %vm766_vm5, %v1630_v34, %v1631_v26  ;;  %v2096_v0 = vunpack.c.l.bf16 %v1876_v30  ;;  %vm2587_vm5 = vcmask 1047556  }
 0x403   : > { %v1811_v52 = vrot.slane %v1779_v21, 3  ;;  %v1726_v8 = vadd.f32 %v1710_v35, %v1651_v56  ;;  %v1731_v48 = vadd.f32 %v1715_v12, %v1626_v46 }
 0x405   : > { %v1910_v11 = vsel %vm1823_vm14, %v1779_v21, %v1811_v52  ;;  %v1913_v37 = vsel %vm1827_vm15, %v1779_v21, %v1811_v52  ;;  %v1916_v60 = vsel %vm1831_vm1, %v1779_v21, %v1811_v52  ;;  %v1909_v13 = vsel %vm685_vm6, %v1779_v21, %v1811_v52 }
 0x406   : > { %v1912_v25 = vrot.slane %v1910_v11, 1  ;;  %v1915_v10 = vrot.slane %v1913_v37, 2  ;;  %v1918_v7 = vrot.slane %v1916_v60, 3  ;;  %v1745_v19 = vadd.f32 %v3979_v15, %v1726_v8 }
 0x407   : > { %v1750_v29 = vadd.f32 %v3979_v15, %v1731_v48  ;;  %v2107_v32 = vunpack.c.l.bf16 %v1909_v13 }
 0x408   : > { %v1674_v33 = vpop.permute.xlu1 %1673  ;;  %v1670_v24 = vpop.permute.xlu0 %1669  ;;  %v1761_v57 = vmax.f32 %v1745_v19, 0.0  ;;  %v2108_v56 = vunpack.c.l.bf16 %v1912_v25  ;;  %v2109_v49 = vunpack.c.l.bf16 %v1915_v10  ;;  %v2110_v39 = vunpack.c.l.bf16 %v1918_v7 }
 0x409   : > { %v1766_v16 = vmax.f32 %v1750_v29, 0.0  ;;  %v1713_v18 = vadd.f32 %v1674_v33, %v4141_v27  ;;  %v1711_v2 = vadd.f32 %v1670_v24, %v1588_v44  ;;  %v1684_v36 = vpop.permute.xlu2 %1683  ;;  %v2253_v44 = vsel %vm2143_vm2, %v2107_v32, -inf }
 0x40a   : > { %v1777_v59 = vpack.c.bf16 %v1761_v57, %v1761_v57  ;;  %v1718_v27 = vadd.f32 %v1684_v36, %v4161_v51  ;;  %v2262_v14 = vsel %vm2143_vm2, %v2108_v56, -inf  ;;  %v2271_v21 = vsel %vm2143_vm2, %v2109_v49, -inf }
 0x40b   : > { %v1782_v63 = vpack.c.bf16 %v1766_v16, %v1766_v16  ;;  %v1727_v31 = vadd.f32 %v1711_v2, %v1620_v20  ;;  %v1729_v23 = vadd.f32 %v1713_v18, %v1623_v22  ;;  %v2280_v35 = vsel %vm2143_vm2, %v2110_v39, -inf }
 0x40c   : > { %v1809_v45 = vrot.slane %v1777_v59, 3  ;;  %v1734_v40 = vadd.f32 %v1718_v27, %v1655_v41  ;;  %v2097_v57 = vunpack.c.l.bf16 %v1879_v9  ;;  %v2098_v16 = vunpack.c.l.bf16 %v1882_v6 }
 0x40d   : > { %v1814_v17 = vrot.slane %v1782_v63, 3  ;;  %v1748_v34 = vadd.f32 %v3979_v15, %v1729_v23  ;;  %v4232_v18 = vsel %vm2143_vm2, %v2095_v54, -inf  ;;  %v1746_v2 = vadd.f32 %v3979_v15, %v1727_v31 }
 0x40e   : > { %v1885_v12 = vsel %vm685_vm6, %v1777_v59, %v1809_v45  ;;  %v1886_v46 = vsel %vm1823_vm14, %v1777_v59, %v1809_v45  ;;  %v1889_v20 = vsel %vm1827_vm15, %v1777_v59, %v1809_v45  ;;  %v1892_v26 = vsel %vm1831_vm1, %v1777_v59, %v1809_v45 }
 0x40f   : > { %v1888_v52 = vrot.slane %v1886_v46, 1  ;;  %v1891_v22 = vrot.slane %v1889_v20, 2  ;;  %v1894_v8 = vrot.slane %v1892_v26, 3  ;;  %v2099_v51 = vunpack.c.l.bf16 %v1885_v12 }
 0x410   : > { %v1946_v48 = vsel %vm1823_vm14, %v1782_v63, %v1814_v17  ;;  %v1949_v58 = vsel %vm1827_vm15, %v1782_v63, %v1814_v17  ;;  %v1945_v7 = vsel %vm685_vm6, %v1782_v63, %v1814_v17  ;;  %v1952_v19 = vsel %vm1831_vm1, %v1782_v63, %v1814_v17 }
 0x411   : > { %v2100_v11 = vunpack.c.l.bf16 %v1888_v52  ;;  %v2101_v37 = vunpack.c.l.bf16 %v1891_v22  ;;  %v2102_v60 = vunpack.c.l.bf16 %v1894_v8  ;;  %v2252_v25 = vsel %vm2143_vm2, %v2099_v51, -inf }
 0x412   : > { %v2254_v10 = vmax.f32 %v2252_v25, %v2253_v44  ;;  %v1948_v13 = vrot.slane %v1946_v48, 1  ;;  %v1951_v55 = vrot.slane %v1949_v58, 2  ;;  %v1954_v39 = vrot.slane %v1952_v19, 3 }
 0x413   : > { %v2261_v29 = vsel %vm2143_vm2, %v2100_v11, -inf  ;;  %v2270_v1 = vsel %vm2143_vm2, %v2101_v37, -inf  ;;  %v2279_v30 = vsel %vm2143_vm2, %v2102_v60, -inf  ;;  %v2119_v36 = vunpack.c.l.bf16 %v1945_v7 }
 0x414   : > { %v2255_v38 = vrot.slane %v2254_v10, 4  ;;  %v2263_v41 = vmax.f32 %v2261_v29, %v2262_v14  ;;  %v2272_v33 = vmax.f32 %v2270_v1, %v2271_v21  ;;  %v2281_v24 = vmax.f32 %v2279_v30, %v2280_v35 }
 0x415   : > { %v2120_v59 = vunpack.c.l.bf16 %v1948_v13  ;;  %v1764_v63 = vmax.f32 %v1748_v34, 0.0  ;;  %v4237_v45 = vpack.c.b16 %v4129_v3, %v4129_v3  ;;  %v2121_v9 = vunpack.c.l.bf16 %v1951_v55 }
 0x416   : > { %v2256_v32 = vmax.f32 %v2254_v10, %v2255_v38  ;;  %v2264_v56 = vrot.slane %v2263_v41, 4  ;;  %v2273_v49 = vrot.slane %v2272_v33, 4  ;;  %v2282_v23 = vrot.slane %v2281_v24, 4 }
 0x417   : > { %v1753_v6 = vadd.f32 %v3979_v15, %v1734_v40  ;;  %v4241_v54 = vsel %vm2143_vm2, %v2096_v0, -inf  ;;  %v4244_v31 = vsel %vm2143_vm2, %v2097_v57, -inf  ;;  %v1780_v27 = vpack.c.bf16 %v1764_v63, %v1764_v63  ;;  %v1676_v40 = vpop.permute.xlu0 %1675 }
 0x418   : > { %v2257_v17 = vrot.slane %v2256_v32, 2  ;;  %v1762_v44 = vmax.f32 %v1746_v2, 0.0  ;;  %v4247_v14 = vsel %vm2143_vm2, %v2098_v16, -inf  ;;  %v2265_v21 = vmax.f32 %v2263_v41, %v2264_v56 }
 0x419   : > { %v2274_v35 = vmax.f32 %v2272_v33, %v2273_v49  ;;  %v2122_v3 = vunpack.c.l.bf16 %v1954_v39  ;;  %v2289_v12 = vsel %vm2143_vm2, %v2119_v36, -inf  ;;  %v2298_v46 = vsel %vm2143_vm2, %v2120_v59, -inf }
 0x41a   : > { %v1812_v20 = vrot.slane %v1780_v27, 3  ;;  %v1778_v26 = vpack.c.bf16 %v1762_v44, %v1762_v44  ;;  %v4251_v52 = vmax.f32 %v2256_v32, %v2257_v17  ;;  %v4253_v0 = vmax.f32 %v2281_v24, %v2282_v23 }
 0x41b   : > { %v2307_v22 = vsel %vm2143_vm2, %v2121_v9, -inf  ;;  %v1769_v8 = vmax.f32 %v1753_v6, 0.0  ;;  %v2266_v11 = vrot.slane %v2265_v21, 2  ;;  %v2275_v37 = vrot.slane %v2274_v35, 2 }
 0x41c   : > { %v1921_v51 = vsel %vm685_vm6, %v1780_v27, %v1812_v20  ;;  %v1922_v48 = vsel %vm1823_vm14, %v1780_v27, %v1812_v20  ;;  %v1925_v58 = vsel %vm1827_vm15, %v1780_v27, %v1812_v20  ;;  %v1928_v34 = vsel %vm1831_vm1, %v1780_v27, %v1812_v20 }
 0x41d   : > { %v2316_v60 = vsel %vm2143_vm2, %v2122_v3, -inf  ;;  %v1924_v25 = vrot.slane %v1922_v48, 1  ;;  %v1927_v10 = vrot.slane %v1925_v58, 2  ;;  %v1930_v7 = vrot.slane %v1928_v34, 3 }
 0x41e   : > { %v2111_v13 = vunpack.c.l.bf16 %v1921_v51  ;;  %v1810_v19 = vrot.slane %v1778_v26, 3  ;;  %v2284_v29 = vrot.slane %v4253_v0, 2  ;;  %v4262_v30 = vpack.c.bf16 %v1769_v8, %v1769_v8 }
 0x41f   : > { %v2112_v1 = vunpack.c.l.bf16 %v1924_v25  ;;  %v4265_v55 = vadd.f32 %v1676_v40, %v4150_v61  ;;  %v2259_v38 = vrot.slane %v4251_v52, 1  ;;  %v2113_v41 = vunpack.c.l.bf16 %v1927_v10 }
 0x420   : > { %v2114_v33 = vunpack.c.l.bf16 %v1930_v7  ;;  %v2288_v24 = vsel %vm2143_vm2, %v2111_v13, -inf  ;;  %v2267_v57 = vmax.f32 %v2265_v21, %v2266_v11  ;;  %v4269_v16 = vmax.f32 %v2274_v35, %v2275_v37 }
 0x421   : > { %v2290_v2 = vmax.f32 %v2288_v24, %v2289_v12  ;;  %v2297_v32 = vsel %vm2143_vm2, %v2112_v1, -inf  ;;  %v2306_v49 = vsel %vm2143_vm2, %v2113_v41, -inf  ;;  %v1898_v61 = vsel %vm1823_vm14, %v1778_v26, %v1810_v19 }
 0x422   : > { %v2299_v56 = vmax.f32 %v2297_v32, %v2298_v46  ;;  %v2315_v39 = vsel %vm2143_vm2, %v2114_v33, -inf  ;;  %v2308_v59 = vmax.f32 %v2306_v49, %v2307_v22  ;;  %v1897_v17 = vsel %vm685_vm6, %v1778_v26, %v1810_v19 }
 0x423   : > { %v2291_v36 = vrot.slane %v2290_v2, 4  ;;  %v2317_v63 = vmax.f32 %v2315_v39, %v2316_v60  ;;  %v1900_v9 = vrot.slane %v1898_v61, 1  ;;  %v1901_v6 = vsel %vm1827_vm15, %v1778_v26, %v1810_v19 }
 0x424   : > { %v2300_v23 = vrot.slane %v2299_v56, 4  ;;  %v1904_v27 = vsel %vm1831_vm1, %v1778_v26, %v1810_v19  ;;  %v2309_v21 = vrot.slane %v2308_v59, 4  ;;  %v1903_v3 = vrot.slane %v1901_v6, 2 }
 0x425   : > { %v2292_v44 = vmax.f32 %v2290_v2, %v2291_v36  ;;  %v2318_v35 = vrot.slane %v2317_v63, 4  ;;  %v1906_v46 = vrot.slane %v1904_v27, 3  ;;  %v2103_v20 = vunpack.c.l.bf16 %v1897_v17 }
 0x426   : > { %v2301_v12 = vmax.f32 %v2299_v56, %v2300_v23  ;;  %v2104_v8 = vunpack.c.l.bf16 %v1900_v9  ;;  %v2310_v48 = vmax.f32 %v2308_v59, %v2309_v21  ;;  %v2105_v58 = vunpack.c.l.bf16 %v1903_v3 }
 0x427   : > { %v2293_v51 = vrot.slane %v2292_v44, 2  ;;  %v2319_v22 = vmax.f32 %v2317_v63, %v2318_v35  ;;  %v2106_v40 = vunpack.c.l.bf16 %v1906_v46  ;;  %v2217_v11 = vsel %vm2143_vm2, %v2103_v20, -inf  ;;  %v1682_v20 = vpop.permute.xlu0 %1681 }
 0x428   : > { %v2302_v34 = vrot.slane %v2301_v12, 2  ;;  %v2226_v37 = vsel %vm2143_vm2, %v2104_v8, -inf  ;;  %v2311_v26 = vrot.slane %v2310_v48, 2  ;;  %v2218_v10 = vmax.f32 %v4232_v18, %v2217_v11 }
 0x429   : > { %v2294_v60 = vmax.f32 %v2292_v44, %v2293_v51  ;;  %v2320_v25 = vrot.slane %v2319_v22, 2  ;;  %v2227_v13 = vmax.f32 %v4241_v54, %v2226_v37  ;;  %v2235_v19 = vsel %vm2143_vm2, %v2105_v58, -inf }
 0x42a   : > { %v2303_v7 = vmax.f32 %v2301_v12, %v2302_v34  ;;  %v2244_v1 = vsel %vm2143_vm2, %v2106_v40, -inf  ;;  %v2268_v41 = vrot.slane %v2267_v57, 1  ;;  %v2312_v33 = vmax.f32 %v2310_v48, %v2311_v26 }
 0x42b   : > { %v2321_v24 = vmax.f32 %v2319_v22, %v2320_v25  ;;  %v2219_v2 = vrot.slane %v2218_v10, 4  ;;  %v2260_v32 = vmax.f32 %v4251_v52, %v2259_v38  ;;  %v2228_v56 = vrot.slane %v2227_v13, 4 }
 0x42c   : > { %v2236_v49 = vmax.f32 %v4244_v31, %v2235_v19  ;;  %v2245_v39 = vmax.f32 %v4247_v14, %v2244_v1  ;;  %v2295_v61 = vrot.slane %v2294_v60, 1  ;;  %v2304_v18 = vrot.slane %v2303_v7, 1  ;;  %v1686_v14 = vpop.permute.xlu1 %1685 }
 0x42d   : > { %v2313_v36 = vrot.slane %v2312_v33, 1  ;;  %v2220_v59 = vmax.f32 %v2218_v10, %v2219_v2  ;;  %v2322_v54 = vrot.slane %v2321_v24, 1  ;;  %v2229_v63 = vmax.f32 %v2227_v13, %v2228_v56 }
 0x42e   : > { %v2237_v17 = vrot.slane %v2236_v49, 4  ;;  %v2246_v23 = vrot.slane %v2245_v39, 4  ;;  %v2269_v9 = vmax.f32 %v2267_v57, %v2268_v41  ;;  %v2277_v6 = vrot.slane %v4269_v16, 1 }
 0x42f   : > { %v2221_v27 = vrot.slane %v2220_v59, 2  ;;  %v1730_v52 = vadd.f32 %v4265_v55, %v4184_v47  ;;  %v2444_v38 = vpack.c.bf16 %v2260_v32, %v2260_v32  ;;  %v2230_v44 = vrot.slane %v2229_v63, 2 }
 0x430   : > { %v2238_v31 = vmax.f32 %v2236_v49, %v2237_v17  ;;  %v2247_v21 = vmax.f32 %v2245_v39, %v2246_v23  ;;  %v2296_v35 = vmax.f32 %v2294_v60, %v2295_v61  ;;  %v2305_v3 = vmax.f32 %v2303_v7, %v2304_v18 }
 0x431   : > { %v2314_v12 = vmax.f32 %v2312_v33, %v2313_v36  ;;  %v2222_v46 = vmax.f32 %v2220_v59, %v2221_v27  ;;  %v2323_v8 = vmax.f32 %v2321_v24, %v2322_v54  ;;  %v2231_v51 = vmax.f32 %v2229_v63, %v2230_v44 }
 0x432   : > { %v2239_v48 = vrot.slane %v2238_v31, 2  ;;  %v2248_v57 = vrot.slane %v2247_v21, 2  ;;  %v4291_v22 = vmax.f32 %v4269_v16, %v2277_v6  ;;  %v4296_v47 = vmax.f32 %v4253_v0, %v2284_v29  ;;  %v1688_v6 = vpop.permute.xlu0 %1687 }
 0x433   : > { %v2223_v55 = vrot.slane %v2222_v46, 1  ;;  %v1817_v58 = vrot.slane %v4262_v30, 3  ;;  %v2445_v34 = vpack.c.bf16 %v2269_v9, %v2269_v9  ;;  %v2232_v40 = vrot.slane %v2231_v51, 1 }
 0x434   : > { %v2240_v11 = vmax.f32 %v2238_v31, %v2239_v48  ;;  %v2249_v37 = vmax.f32 %v2247_v21, %v2248_v57  ;;  %v4299_v60 = vunpack.c.l.b16 %v2444_v38  ;;  %v2448_v26 = vpack.c.bf16 %v2296_v35, %v2296_v35  ;;  %v1680_v63 = vpop.permute.xlu1 %1679 }
 0x435   : > { %v2449_v25 = vpack.c.bf16 %v2305_v3, %v2305_v3  ;;  %v2224_v10 = vmax.f32 %v2222_v46, %v2223_v55  ;;  %v2450_v7 = vpack.c.bf16 %v2314_v12, %v2314_v12  ;;  %v2451_v16 = vpack.c.bf16 %v2323_v8, %v2323_v8  ;;  %v3098_v8 = vld [vmem:[%s4495_s5] ss:$0 sm:$0xff] }
 0x436   : > { %v2233_v13 = vmax.f32 %v2231_v51, %v2232_v40  ;;  %v1982_v19 = vsel %vm1823_vm14, %v4262_v30, %v1817_v58  ;;  %v1981_v29 = vsel %vm685_vm6, %v4262_v30, %v1817_v58  ;;  %v1985_v1 = vsel %vm1827_vm15, %v4262_v30, %v1817_v58 }
 0x437   : > { %v2440_v0 = vpack.c.bf16 %v2224_v10, %v2224_v10  ;;  %v1749_v41 = vadd.f32 %v3979_v15, %v1730_v52  ;;  %v4308_v33 = vunpack.c.l.b16 %v2445_v34  ;;  %v2241_v24 = vrot.slane %v2240_v11, 1 }
 0x438   : > { %v2250_v2 = vrot.slane %v2249_v37, 1  ;;  %v2441_v32 = vpack.c.bf16 %v2233_v13, %v2233_v13  ;;  %v4310_v56 = vunpack.c.l.b16 %v2448_v26  ;;  %v4312_v49 = vunpack.c.l.b16 %v2449_v25 }
 0x439   : > { %v1984_v39 = vrot.slane %v1982_v19, 1  ;;  %v1988_v61 = vsel %vm1831_vm1, %v4262_v30, %v1817_v58  ;;  %v2504_v18 = vunpack.c.l.b16 %v2440_v0  ;;  %v1987_v59 = vrot.slane %v1985_v1, 2 }
 0x43a   : > { %v2505_v36 = vunpack.c.l.b16 %v2441_v32  ;;  %v2131_v54 = vunpack.c.l.bf16 %v1981_v29  ;;  %v4316_v17 = vunpack.c.l.b16 %v2450_v7  ;;  %v4318_v15 = vunpack.c.l.b16 %v2451_v16 }
 0x43b   : > { %v1765_v23 = vmax.f32 %v1749_v41, 0.0  ;;  %v1719_v9 = vadd.f32 %v1686_v14, %v4168_v4  ;;  %v2242_v27 = vmax.f32 %v2240_v11, %v2241_v24  ;;  %v2251_v52 = vmax.f32 %v2249_v37, %v2250_v2 }
 0x43c   : > { %v2539_v38 = vsel %vm1823_vm14, %v2505_v36, %v2504_v18  ;;  %v1990_v44 = vrot.slane %v1988_v61, 3  ;;  %v1717_v21 = vadd.f32 %v1682_v20, %v4164_v53  ;;  %v1716_v35 = vadd.f32 %v1680_v63, %v4156_v50 }
 0x43d   : > { %v1781_v31 = vpack.c.bf16 %v1765_v23, %v1765_v23  ;;  %v1735_v30 = vadd.f32 %v1719_v9, %v4211_v28  ;;  %v4325_v3 = vunpack.c.l.bf16 %v1984_v39  ;;  %v4327_v12 = vunpack.c.l.bf16 %v1987_v59 }
 0x43e   : > { %v4330_v46 = vsel %vm2143_vm2, %v2131_v54, -inf  ;;  %v1720_v4 = vadd.f32 %v1688_v6, %v4171_v5  ;;  %v1733_v28 = vadd.f32 %v1717_v21, %v4198_v62  ;;  %v1732_v53 = vadd.f32 %v1716_v35, %v4190_v43 }
 0x43f   : > { %v1813_v14 = vrot.slane %v1781_v31, 3  ;;  %v1754_v51 = vadd.f32 %v3098_v8, %v1735_v30  ;;  %v2442_v50 = vpack.c.bf16 %v2242_v27, %v2242_v27  ;;  %v2443_v20 = vpack.c.bf16 %v2251_v52, %v2251_v52 }
 0x440   : > { %v1736_v48 = vadd.f32 %v1720_v4, %v4201_v42  ;;  %v2286_v57 = vrot.slane %v4296_v47, 1  ;;  %v1752_v43 = vadd.f32 %v3098_v8, %v1733_v28  ;;  %v1751_v25 = vadd.f32 %v3098_v8, %v1732_v53 }
 0x441   : > { %v1933_v55 = vsel %vm685_vm6, %v1781_v31, %v1813_v14  ;;  %v1934_v5 = vsel %vm1823_vm14, %v1781_v31, %v1813_v14  ;;  %v1937_v58 = vsel %vm1827_vm15, %v1781_v31, %v1813_v14  ;;  %v1940_v34 = vsel %vm1831_vm1, %v1781_v31, %v1813_v14 }
 0x442   : > { %v1936_v40 = vrot.slane %v1934_v5, 1  ;;  %v1939_v11 = vrot.slane %v1937_v58, 2  ;;  %v1942_v37 = vrot.slane %v1940_v34, 3  ;;  %v2115_v62 = vunpack.c.l.bf16 %v1933_v55 }
 0x443   : > { %v1770_v26 = vmax.f32 %v1754_v51, 0.0  ;;  %v1755_v10 = vadd.f32 %v3098_v8, %v1736_v48  ;;  %v2506_v7 = vunpack.c.l.b16 %v2442_v50  ;;  %v4344_v19 = vunpack.c.l.bf16 %v1990_v44 }
 0x444   : > { %v2116_v42 = vunpack.c.l.bf16 %v1936_v40  ;;  %v2117_v16 = vunpack.c.l.bf16 %v1939_v11  ;;  %v2118_v13 = vunpack.c.l.bf16 %v1942_v37  ;;  %v1768_v29 = vmax.f32 %v1752_v43, 0.0 }
 0x445   : > { %v1786_v0 = vpack.c.bf16 %v1770_v26, %v1770_v26  ;;  %v1767_v1 = vmax.f32 %v1751_v25, 0.0  ;;  %v2507_v41 = vunpack.c.l.b16 %v2443_v20  ;;  %v4347_v24 = vsel %vm2143_vm2, %v2115_v62, -inf }
 0x446   : > { %v4350_v2 = vmax.f32 %v4296_v47, %v2286_v57  ;;  %v2446_v32 = vpack.c.bf16 %v4291_v22, %v4291_v22  ;;  %v1784_v61 = vpack.c.bf16 %v1768_v29, %v1768_v29  ;;  %v1771_v36 = vmax.f32 %v1755_v10, 0.0 }
 0x447   : > { %v1818_v39 = vrot.slane %v1786_v0, 3  ;;  %v1783_v18 = vpack.c.bf16 %v1767_v1, %v1767_v1  ;;  %v4355_v59 = vsel %vm2143_vm2, %v2116_v42, -inf  ;;  %v4358_v54 = vsel %vm2143_vm2, %v2117_v16, -inf }
 0x448   : > { %v4361_v63 = vsel %vm2143_vm2, %v2118_v13, -inf  ;;  %v2540_v23 = vsel %vm1827_vm15, %v2506_v7, %v2539_v38  ;;  %v1816_v21 = vrot.slane %v1784_v61, 3  ;;  %v4368_v4 = vpack.c.bf16 %v1771_v36, %v1771_v36 }
 0x449   : > { %v1993_v47 = vsel %vm685_vm6, %v1786_v0, %v1818_v39  ;;  %v1994_v9 = vsel %vm1823_vm14, %v1786_v0, %v1818_v39  ;;  %v1997_v6 = vsel %vm1827_vm15, %v1786_v0, %v1818_v39  ;;  %v2000_v27 = vsel %vm1831_vm1, %v1786_v0, %v1818_v39 }
 0x44a   : > { %v1996_v52 = vrot.slane %v1994_v9, 1  ;;  %v1999_v44 = vrot.slane %v1997_v6, 2  ;;  %v2002_v31 = vrot.slane %v2000_v27, 3  ;;  %v2135_v30 = vunpack.c.l.bf16 %v1993_v47 }
 0x44b   : > { %v1815_v35 = vrot.slane %v1783_v18, 3  ;;  %v4371_v14 = vsel %vm1831_vm1, %v2507_v41, %v2540_v23  ;;  %v1969_v53 = vsel %vm685_vm6, %v1784_v61, %v1816_v21  ;;  %v1970_v50 = vsel %vm1823_vm14, %v1784_v61, %v1816_v21 }
 0x44c   : > { %v2136_v38 = vunpack.c.l.bf16 %v1996_v52  ;;  %v2137_v8 = vunpack.c.l.bf16 %v1999_v44  ;;  %v2138_v51 = vunpack.c.l.bf16 %v2002_v31  ;;  %v2361_v28 = vsel %vm2143_vm2, %v2135_v30, -inf }
 0x44d   : > { %v1973_v20 = vsel %vm1827_vm15, %v1784_v61, %v1816_v21  ;;  %v1976_v48 = vsel %vm1831_vm1, %v1784_v61, %v1816_v21  ;;  %v1972_v58 = vrot.slane %v1970_v50, 1  ;;  %v2127_v11 = vunpack.c.l.bf16 %v1969_v53 }
 0x44e   : > { %v2370_v57 = vsel %vm2143_vm2, %v2136_v38, -inf  ;;  %v2379_v55 = vsel %vm2143_vm2, %v2137_v8, -inf  ;;  %v2388_v5 = vsel %vm2143_vm2, %v2138_v51, -inf  ;;  %v1975_v34 = vrot.slane %v1973_v20, 2 }
 0x44f   : > { %v1978_v40 = vrot.slane %v1976_v48, 3  ;;  %v1957_v37 = vsel %vm685_vm6, %v1783_v18, %v1815_v35  ;;  %v2128_v62 = vunpack.c.l.bf16 %v1972_v58  ;;  %v1958_v26 = vsel %vm1823_vm14, %v1783_v18, %v1815_v35 }
 0x450   : > { %v1961_v43 = vsel %vm1827_vm15, %v1783_v18, %v1815_v35  ;;  %v1964_v25 = vsel %vm1831_vm1, %v1783_v18, %v1815_v35  ;;  %v2129_v10 = vunpack.c.l.bf16 %v1975_v34  ;;  %v2360_v42 = vsel %vm2143_vm2, %v2127_v11, -inf }
 0x451   : > { %v2130_v7 = vunpack.c.l.bf16 %v1978_v40  ;;  %v1960_v16 = vrot.slane %v1958_v26, 1  ;;  %v2362_v13 = vmax.f32 %v2360_v42, %v2361_v28  ;;  %v2369_v0 = vsel %vm2143_vm2, %v2128_v62, -inf }
 0x452   : > { %v1963_v29 = vrot.slane %v1961_v43, 2  ;;  %v1966_v1 = vrot.slane %v1964_v25, 3  ;;  %v2371_v41 = vmax.f32 %v2369_v0, %v2370_v57  ;;  %v2378_v39 = vsel %vm2143_vm2, %v2129_v10, -inf }
 0x453   : > { %v2387_v61 = vsel %vm2143_vm2, %v2130_v7, -inf  ;;  %v2123_v36 = vunpack.c.l.bf16 %v1957_v37  ;;  %v2363_v23 = vrot.slane %v2362_v13, 4  ;;  %v2380_v47 = vmax.f32 %v2378_v39, %v2379_v55 }
 0x454   : > { %v2389_v9 = vmax.f32 %v2387_v61, %v2388_v5  ;;  %v2124_v18 = vunpack.c.l.bf16 %v1960_v16  ;;  %v2372_v6 = vrot.slane %v2371_v41, 4  ;;  %v2125_v27 = vunpack.c.l.bf16 %v1963_v29 }
 0x455   : > { %v2126_v52 = vunpack.c.l.bf16 %v1966_v1  ;;  %v2325_v44 = vsel %vm2143_vm2, %v2123_v36, -inf  ;;  %v2364_v31 = vmax.f32 %v2362_v13, %v2363_v23  ;;  %v2381_v30 = vrot.slane %v2380_v47, 4 }
 0x456   : > { %v2390_v21 = vrot.slane %v2389_v9, 4  ;;  %v2326_v35 = vmax.f32 %v4347_v24, %v2325_v44  ;;  %v2373_v38 = vmax.f32 %v2371_v41, %v2372_v6  ;;  %v2334_v8 = vsel %vm2143_vm2, %v2124_v18, -inf }
 0x457   : > { %v2343_v51 = vsel %vm2143_vm2, %v2125_v27, -inf  ;;  %v2352_v28 = vsel %vm2143_vm2, %v2126_v52, -inf  ;;  %v2365_v53 = vrot.slane %v2364_v31, 2  ;;  %v2382_v50 = vmax.f32 %v2380_v47, %v2381_v30 }
 0x458   : > { %v2391_v20 = vmax.f32 %v2389_v9, %v2390_v21  ;;  %v2327_v48 = vrot.slane %v2326_v35, 4  ;;  %v2374_v57 = vrot.slane %v2373_v38, 2  ;;  %v2335_v55 = vmax.f32 %v4355_v59, %v2334_v8 }
 0x459   : > { %v2344_v5 = vmax.f32 %v4358_v54, %v2343_v51  ;;  %v2353_v58 = vmax.f32 %v4361_v63, %v2352_v28  ;;  %v2366_v34 = vmax.f32 %v2364_v31, %v2365_v53  ;;  %v2383_v24 = vrot.slane %v2382_v50, 2 }
 0x45a   : > { %v2392_v40 = vrot.slane %v2391_v20, 2  ;;  %v2328_v11 = vmax.f32 %v2326_v35, %v2327_v48  ;;  %v2375_v37 = vmax.f32 %v2373_v38, %v2374_v57  ;;  %v2336_v62 = vrot.slane %v2335_v55, 4 }
 0x45b   : > { %v2345_v26 = vrot.slane %v2344_v5, 4  ;;  %v2354_v43 = vrot.slane %v2353_v58, 4  ;;  %v2367_v25 = vrot.slane %v2366_v34, 1  ;;  %v2384_v10 = vmax.f32 %v2382_v50, %v2383_v24 }
 0x45c   : > { %v2393_v7 = vmax.f32 %v2391_v20, %v2392_v40  ;;  %v2329_v42 = vrot.slane %v2328_v11, 2  ;;  %v2376_v16 = vrot.slane %v2375_v37, 1  ;;  %v2337_v13 = vmax.f32 %v2335_v55, %v2336_v62 }
 0x45d   : > { %v2346_v0 = vmax.f32 %v2344_v5, %v2345_v26  ;;  %v2447_v59 = vpack.c.bf16 %v4350_v2, %v4350_v2  ;;  %v2368_v54 = vmax.f32 %v2366_v34, %v2367_v25  ;;  %v2385_v63 = vrot.slane %v2384_v10, 1 }
 0x45e   : > { %v2330_v29 = vmax.f32 %v2328_v11, %v2329_v42  ;;  %v1819_v1 = vrot.slane %v4368_v4, 3  ;;  %v2377_v41 = vmax.f32 %v2375_v37, %v2376_v16  ;;  %v2338_v39 = vrot.slane %v2337_v13, 2 }
 0x45f   : > { %v2347_v61 = vrot.slane %v2346_v0, 2  ;;  %v2355_v36 = vmax.f32 %v2353_v58, %v2354_v43  ;;  %v2405_v23 = vsel %vm2143_vm2, %v4325_v3, -inf  ;;  %v2386_v47 = vmax.f32 %v2384_v10, %v2385_v63 }
 0x460   : > { %v2394_v9 = vrot.slane %v2393_v7, 1  ;;  %v2456_v18 = vpack.c.bf16 %v2368_v54, %v2368_v54  ;;  %v2414_v6 = vsel %vm2143_vm2, %v4327_v12, -inf  ;;  %v2423_v2 = vsel %vm2143_vm2, %v4344_v19, -inf }
 0x461   : > { %v2331_v27 = vrot.slane %v2330_v29, 1  ;;  %v2339_v52 = vmax.f32 %v2337_v13, %v2338_v39  ;;  %v2457_v44 = vpack.c.bf16 %v2377_v41, %v2377_v41  ;;  %v2005_v31 = vsel %vm685_vm6, %v4368_v4, %v1819_v1 }
 0x462   : > { %v2510_v30 = vunpack.c.l.b16 %v2446_v32  ;;  %v2511_v3 = vunpack.c.l.b16 %v2447_v59  ;;  %v2348_v35 = vmax.f32 %v2346_v0, %v2347_v61  ;;  %v2356_v38 = vrot.slane %v2355_v36, 2 }
 0x463   : > { %v2340_v21 = vrot.slane %v2339_v52, 1  ;;  %v2006_v12 = vsel %vm1823_vm14, %v4368_v4, %v1819_v1  ;;  %v4413_v8 = vmax.f32 %v2393_v7, %v2394_v9  ;;  %v2458_v19 = vpack.c.bf16 %v2386_v47, %v2386_v47 }
 0x464   : > { %v2520_v51 = vunpack.c.l.b16 %v2456_v18  ;;  %v2008_v28 = vrot.slane %v2006_v12, 1  ;;  %v2332_v53 = vmax.f32 %v2330_v29, %v2331_v27  ;;  %v2009_v50 = vsel %vm1827_vm15, %v4368_v4, %v1819_v1 }
 0x465   : > { %v2012_v22 = vsel %vm1831_vm1, %v4368_v4, %v1819_v1  ;;  %v2139_v32 = vunpack.c.l.bf16 %v2005_v31  ;;  %v2521_v20 = vunpack.c.l.b16 %v2457_v44  ;;  %v2011_v48 = vrot.slane %v2009_v50, 2 }
 0x466   : > { %v2014_v57 = vrot.slane %v2012_v22, 3  ;;  %v2140_v55 = vunpack.c.l.bf16 %v2008_v28  ;;  %v2341_v5 = vmax.f32 %v2339_v52, %v2340_v21  ;;  %v2349_v58 = vrot.slane %v2348_v35, 1 }
 0x467   : > { %v2397_v34 = vsel %vm2143_vm2, %v2139_v32, -inf  ;;  %v2357_v24 = vmax.f32 %v2355_v36, %v2356_v38  ;;  %v2141_v40 = vunpack.c.l.bf16 %v2011_v48  ;;  %v2522_v26 = vunpack.c.l.b16 %v2458_v19 }
 0x468   : > { %v2142_v11 = vunpack.c.l.bf16 %v2014_v57  ;;  %v2398_v37 = vmax.f32 %v4330_v46, %v2397_v34  ;;  %v2406_v62 = vsel %vm2143_vm2, %v2140_v55, -inf  ;;  %v2452_v43 = vpack.c.bf16 %v2332_v53, %v2332_v53 }
 0x469   : > { %v2407_v25 = vmax.f32 %v2405_v23, %v2406_v62  ;;  %v2358_v4 = vrot.slane %v2357_v24, 1  ;;  %v2415_v7 = vsel %vm2143_vm2, %v2141_v40, -inf  ;;  %v2542_v16 = vsel %vm2531_vm3, %v4299_v60, %v4371_v14 }
 0x46a   : > { %v2399_v10 = vrot.slane %v2398_v37, 4  ;;  %v2424_v42 = vsel %vm2143_vm2, %v2142_v11, -inf  ;;  %v2416_v0 = vmax.f32 %v2414_v6, %v2415_v7  ;;  %v2350_v54 = vmax.f32 %v2348_v35, %v2349_v58 }
 0x46b   : > { %v2408_v13 = vrot.slane %v2407_v25, 4  ;;  %v2425_v59 = vmax.f32 %v2423_v2, %v2424_v42  ;;  %v2453_v63 = vpack.c.bf16 %v2341_v5, %v2341_v5  ;;  %v2543_v29 = vsel %vm2533_vm4, %v4308_v33, %v2542_v16 }
 0x46c   : > { %v2400_v46 = vmax.f32 %v2398_v37, %v2399_v10  ;;  %v2546_v1 = vsel %vm1823_vm14, %v4312_v49, %v4310_v56  ;;  %v2516_v41 = vunpack.c.l.b16 %v2452_v43  ;;  %v2417_v61 = vrot.slane %v2416_v0, 4 }
 0x46d   : > { %v2409_v39 = vmax.f32 %v2407_v25, %v2408_v13  ;;  %v2426_v36 = vrot.slane %v2425_v59, 4  ;;  %v2359_v47 = vmax.f32 %v2357_v24, %v2358_v4  ;;  %v2544_v60 = vsel %vm2535_vm7, %v2510_v30, %v2543_v29 }
 0x46e   : > { %v2401_v23 = vrot.slane %v2400_v46, 2  ;;  %v2547_v14 = vsel %vm1827_vm15, %v4316_v17, %v2546_v1  ;;  %v2418_v18 = vmax.f32 %v2416_v0, %v2417_v61  ;;  %v2454_v2 = vpack.c.bf16 %v2350_v54, %v2350_v54 }
 0x46f   : > { %v2410_v9 = vrot.slane %v2409_v39, 2  ;;  %v2427_v6 = vmax.f32 %v2425_v59, %v2426_v36  ;;  %v2517_v27 = vunpack.c.l.b16 %v2453_v63  ;;  %v2545_v52 = vsel %vm2537_vm8, %v2511_v3, %v2544_v60 }
 0x470   : > { %v2402_v33 = vmax.f32 %v2400_v46, %v2401_v23  ;;  %v2548_v56 = vsel %vm1831_vm1, %v4318_v15, %v2547_v14  ;;  %v2419_v44 = vrot.slane %v2418_v18, 2  ;;  %v2459_v30 = vpack.c.bf16 %v4413_v8, %v4413_v8 }
 0x471   : > { %v2411_v49 = vmax.f32 %v2409_v39, %v2410_v9  ;;  %v2428_v31 = vrot.slane %v2427_v6, 2  ;;  %v2549_v21 = vsel %vm2531_vm3, %v2516_v41, %v2548_v56  ;;  %v2455_v35 = vpack.c.bf16 %v2359_v47, %v2359_v47 }
 0x472   : > { %v2403_v17 = vrot.slane %v2402_v33, 1  ;;  %v2553_v38 = vsel %vm1823_vm14, %v2521_v20, %v2520_v51  ;;  %v2420_v19 = vmax.f32 %v2418_v18, %v2419_v44  ;;  %v2518_v53 = vunpack.c.l.b16 %v2454_v2 }
 0x473   : > { %v2412_v12 = vrot.slane %v2411_v49, 1  ;;  %v2429_v28 = vmax.f32 %v2427_v6, %v2428_v31  ;;  %v2550_v50 = vsel %vm2533_vm4, %v2517_v27, %v2549_v21  ;;  %v2561_v15 = vpack.c.b16 %v2545_v52, %v2545_v52 }
 0x474   : > { %v2404_v3 = vmax.f32 %v2402_v33, %v2403_v17  ;;  %v2421_v32 = vrot.slane %v2420_v19, 1  ;;  %v2554_v57 = vsel %vm1827_vm15, %v2522_v26, %v2553_v38  ;;  %v2523_v55 = vunpack.c.l.b16 %v2459_v30 }
 0x475   : > { %v2413_v22 = vmax.f32 %v2411_v49, %v2412_v12  ;;  %v2430_v48 = vrot.slane %v2429_v28, 1  ;;  %v2519_v8 = vunpack.c.l.b16 %v2455_v35  ;;  %v3143_v58 = vmov 1983009808  }
 0x476   : > { %v2460_v5 = vpack.c.bf16 %v2404_v3, %v2404_v3  ;;  %v2578_v34 = vunpack.c.l.s4 %v3143_v58  ;;  %v2422_v24 = vmax.f32 %v2420_v19, %v2421_v32  ;;  %v2551_v40 = vsel %vm2535_vm7, %v2518_v53, %v2550_v50 }
 0x477   : > { %v2431_v51 = vmax.f32 %v2429_v28, %v2430_v48  ;;  %v2461_v20 = vpack.c.bf16 %v2413_v22, %v2413_v22  ;;  %v2555_v37 = vsel %vm1831_vm1, %v2523_v55, %v2554_v57  ;;  %v2566_v43 = vpack.i.b16 %v2561_v15, %v4237_v45 }
 0x478   : > { %v2524_v11 = vunpack.c.l.b16 %v2460_v5  ;;  %v2579_v62 = vunpack.c.0.s8 %v2578_v34  ;;  %v2462_v25 = vpack.c.bf16 %v2422_v24, %v2422_v24  ;;  %v2568_v26 = vshrl.u32 %v2561_v15, 16 }
 0x479   : > { %v2463_v4 = vpack.c.bf16 %v2431_v51, %v2431_v51  ;;  %v2525_v10 = vunpack.c.l.b16 %v2461_v20  ;;  %v2552_v7 = vsel %vm2537_vm8, %v2519_v8, %v2551_v40  ;;  %v2567_v59 = vshrl.u32 %v4237_v45, 16 }
 0x47a   : > { %v2556_v42 = vsel %vm2531_vm3, %v2524_v11, %v2555_v37  ;;  %v2580_v16 = vperm.slane %v2566_v43, %v2579_v62  ;;  %v2526_v13 = vunpack.c.l.b16 %v2462_v25  ;;  %v2562_v63 = vpack.c.b16 %v2552_v7, %v2552_v7 }
 0x47b   : > { %v2557_v0 = vsel %vm2533_vm4, %v2525_v10, %v2556_v42  ;;  %v2527_v54 = vunpack.c.l.b16 %v2463_v4  ;;  %v2569_v29 = vpack.i.b16 %v2568_v26, %v2567_v59  ;;  %v3144_v41 = vmov 1934713408  }
 0x47c   : > { %v2558_v46 = vsel %vm2535_vm7, %v2526_v13, %v2557_v0  ;;  %v2592_v39 = vunpack.c.l.s4 %v3144_v41  ;;  %v2573_v36 = vshrl.u32 %v2562_v63, 16  ;;  %v2589_v18 = vrot.slane %v2580_v16, 4 }
 0x47d   : > { %v2559_v1 = vsel %vm2537_vm8, %v2527_v54, %v2558_v46  ;;  %v2607_v47 = vperm.slane %v2569_v29, %v2579_v62  ;;  %vm2670_vm6 = vcmask 1045508  }
 0x47e   : > { %v2563_v61 = vpack.c.b16 %v2559_v1, %v2559_v1  ;;  %v2593_v14 = vunpack.c.0.s8 %v2592_v39 }
 0x47f   : > { %v2615_v2 = vrot.slane %v2607_v47, 4 }
 0x480   : > { %v2574_v23 = vshrl.u32 %v2563_v61, 16  ;;  %v2572_v60 = vpack.i.b16 %v2563_v61, %v2562_v63 }
 0x482   : > { %v2575_v9 = vpack.i.b16 %v2574_v23, %v2573_v36  ;;  %v2585_v6 = vperm.slane %v2572_v60, %v2579_v62 }
 0x484   : > { %v2612_v45 = vperm.slane %v2575_v9, %v2579_v62  ;;  %v2590_v33 = vsel %vm2587_vm5, %v2585_v6, %v2589_v18  ;;  %v2586_v27 = vrot.slane %v2585_v6, 4 }
 0x485   : > { %v2598_v52 = vperm.slane %v2590_v33, %v2593_v14 }
 0x486   : > { %v2616_v56 = vsel %vm2587_vm5, %v2612_v45, %v2615_v2  ;;  %v2613_v49 = vrot.slane %v2612_v45, 4  ;;  %v2588_v44 = vsel %vm2587_vm5, %v2586_v27, %v2580_v16 }
 0x487   : > { %v2624_v31 = vperm.slane %v2616_v56, %v2593_v14  ;;  %v2601_v21 = vrot.slane %v2598_v52, 4  ;;  %v2594_v30 = vperm.slane %v2588_v44, %v2593_v14 }
 0x488   : > { %v2614_v17 = vsel %vm2587_vm5, %v2613_v49, %v2607_v47 }
 0x489   : > { %v2640_v35 = vunpack.c.l.b16 %v2624_v31  ;;  %v2627_v38 = vrot.slane %v2624_v31, 4  ;;  %v2620_v12 = vperm.slane %v2614_v17, %v2593_v14  ;;  %v2602_v19 = vsel %vm2587_vm5, 0, %v2601_v21 }
 0x48a   : > { %v2599_v28 = vrot.slane %v2594_v30, 4 }
 0x48b   : > { %v2641_v53 = vpack.c.b16 %v2640_v35, %v2640_v35  ;;  %v2628_v3 = vsel %vm2587_vm5, 0, %v2627_v38  ;;  %v2625_v50 = vrot.slane %v2620_v12, 4  ;;  %v2630_v5 = vunpack.c.l.b16 %v2620_v12 }
 0x48c   : > { %v2645_v15 = vunpack.c.l.b16 %v2628_v3  ;;  %v2600_v22 = vsel %vm2587_vm5, 0, %v2599_v28 }
 0x48d   : > { %2642 = vrot.lane.b32.xlu2 %v2641_v53, %s3142_s11  ;;  %v2626_v32 = vsel %vm2587_vm5, 0, %v2625_v50  ;;  %v2631_v8 = vpack.c.b16 %v2630_v5, %v2630_v5 }
 0x48e   : > { %v2646_v48 = vpack.c.b16 %v2645_v15, %v2645_v15  ;;  %v2635_v57 = vunpack.c.l.b16 %v2626_v32 }
 0x490   : > { %2647 = vrot.lane.b32.xlu0 %v2646_v48, %s3142_s11  ;;  %v2636_v55 = vpack.c.b16 %v2635_v57, %v2635_v57 }
 0x492   : > { %2637 = vrot.lane.b32.xlu1 %v2636_v55, %s3142_s11 }
 0x49a   : > { %2632 = vrot.lane.b32.xlu1 %v2631_v8, %s3142_s11 }
 0x4e7   : > { %v2643_v58 = vpop.permute.xlu2 %2642 }
 0x4e8   : > { %v2657_v34 = vsel %vm1162_vm13, %v2598_v52, %v2643_v58 }
 0x4e9   : > { %v2665_v20 = vrot.slane %v2657_v34, 4 }
 0x502   : > { %v2648_v24 = vpop.permute.xlu0 %2647 }
 0x503   : > { %v2660_v51 = vsel %vm1162_vm13, %v2602_v19, %v2648_v24 }
 0x504   : > { %v2666_v40 = vrot.slane %v2660_v51, 2  ;;  %v2638_v11 = vpop.permute.xlu1 %2637 }
 0x505   : > { %v2654_v62 = vsel %vm1162_vm13, %v2600_v22, %v2638_v11 }
 0x506   : > { %v2673_v37 = vsel %vm2670_vm6, %v2665_v20, %v2666_v40  ;;  %v2664_v43 = vrot.slane %v2654_v62, 6 }
 0x50c   : > { %v2633_v25 = vpop.permute.xlu1 %2632 }
 0x50d   : > { %v2651_v4 = vsel %vm1162_vm13, %v2594_v30, %v2633_v25 }
 0x50e   : > { %v2669_v10 = vsel %vm2667_vm9, %v2651_v4, %v2664_v43 }
 0x50f   : > { %v2674_v26 = vsel %vm537_vm0, %v2669_v10, %v2673_v37 }
 0x510   : > { %2676 = vst [vmem:[%s326_s12] sm:$0xff] %v2674_v26 }
 0x511 PF: > { %s16_s25 = sadd.s32 1, %s3137_s25   ;;  %s4511_s21 = smov %s3129_s23 }
 0x512   : > { %p13_p8 = scmp.ge.s32.totalorder %s16_s25, 6   ;;  %s4512_s22 = smov %s3133_s24 }
 0x513   : > { %s4513_s23 = smov %s4516_s26  ;;  %s4514_s24 = smov %s4520_s27 }
 0x514   :  { %15 = sbr.rel (!%p13_p8) target bundleno = 3 (0x3), region = 77 }

// kernel: feature_extractor.3
= control target key start
LH: loop header
LB: loop body
LE: loop exit
PB: predicated region body
PF: predicated region fallthrough
CT: control target
= control target key end

     0   :  { %s2549_s21 = smov 0   ;;  %s2551_s22 = smov 0   ;;  %s3511_s0 = inlined_call_operand.vmem [shape: bf16[2,8,8,64], index: 0, kind: input, shape index: {}]   ;;  %s3512_s1 = inlined_call_operand.vmem [shape: bf16[2,2,4,8,64], index: 1, kind: input, shape index: {}]   ;;  %s3513_s2 = inlined_call_operand.vmem [shape: bf16[192,384], index: 2, kind: input, shape index: {}]   ;;  %s3514_s3 = inlined_call_operand.vmem [shape: f32[1,128], index: 3, kind: input, shape index: {}]   ;;  %s3515_s4 = inlined_call_operand.vmem [shape: bf16[384,384], index: 4, kind: input, shape index: {}]   ;;  %s3516_s5 = inlined_call_operand.vmem [shape: f32[1,128], index: 5, kind: input, shape index: {}]   ;;  %s3517_s6 = inlined_call_operand.vmem [shape: f32[2,2,4,1024], index: 6, kind: output, shape index: {}]  }
   0x1   :  { %s2553_s23 = smov 0   ;;  %s2555_s24 = smov 0  }
   0x2   :  { %s2557_s25 = smov 0  }
   0x3 LB: > { %s25_s26 = sadd.s32 1, %s2501_s23  ;;  %s28_s27 = sadd.s32 1, %s2505_s24  ;;  %s2509_s25 = sphi %s2557_s25, %s16_s25   ;;  %s2505_s24 = sphi %s2555_s24, %s3529_s24   ;;  %s2501_s23 = sphi %s2553_s23, %s3528_s23   ;;  %s2497_s22 = sphi %s2551_s22, %s3527_s22   ;;  %s2493_s21 = sphi %s2549_s21, %s3526_s21  }
   0x4   : > { %p26_p0 = scmp.ge.s32.totalorder %s25_s26, 2  ;;  %p1850_p1 = scmp.ge.s32.totalorder %s2509_s25, 1 }
   0x5   : > { %p249_p2 = scmp.lt.s32.totalorder %s2509_s25, 5 }
   0x6   : > { %s3531_s26 = smov (%p26_p0, %s25_s26), 0  ;;  %s3533_s27 = smov (!%p26_p0, %s28_s27), %s2505_s24 }
   0x7   : > { %p250_p3 = pnand %p1850_p1, %p249_p2  ;;  %p30_p4 = scmp.ge.s32.totalorder %s3533_s27, 2 }
   0x8   : > { %p297_p5 = scmp.lt.s32.totalorder (!%p250_p3), %s2497_s22, 1  ;;  %p308_p6 = scmp.lt.s32.totalorder (!%p250_p3), %s2493_s21, 1 }
   0x9   : > { %s3535_s27 = smov (%p30_p4, %s3533_s27), 0  ;;  %253 = sbr.rel (%p250_p3) target bundleno = 568 (0x238), region = 44 }
   0xa   : > { %s2585_s8 = sshll.u32 (!%p250_p3), %s2493_s21, 2 }
   0xb   : > { %p299_p7 = scmp.lt.s32.totalorder (!%p250_p3), %s2585_s8, 7 }
   0xe   : > { %v2338_v0 = vld [vmem:[%s3513_s2 + $0x10c] sm:$0xf]  ;;  %v1997_v1 = vld [vmem:[%s3513_s2 + $0x114] sm:$0xf0]  ;;  %v2335_v3 = vld [vmem:[%s3513_s2 + $0xf4] sm:$0xf] }
   0xf   : > { %v2000_v2 = vor.u32 %v2338_v0, %v1997_v1  ;;  %v1985_v4 = vld [vmem:[%s3513_s2 + $0xfc] sm:$0xf0]  ;;  %s3537_s22 = smov (!%p297_p5, %s2497_s22), 1  ;;  %v1995_v5 = vld [vmem:[%s3513_s2 + $0x108] sm:$0xf]  ;;  %s3539_s21 = smov (!%p308_p6, %s2493_s21), 1 }
  0x10   : > { %v2339_v6 = vld [vmem:[%s3513_s2 + $0x110] sm:$0xf0]  ;;  %v1988_v7 = vor.u32 %v2335_v3, %v1985_v4  ;;  %v2332_v9 = vld [vmem:[%s3513_s2 + $0xdc] sm:$0xf]  ;;  %v1973_v10 = vld [vmem:[%s3513_s2 + $0xe4] sm:$0xf0] }
  0x11   : > { %732 = vmatpush.bf16.msra.mxu3 %v2000_v2  ;;  %v1996_v8 = vor.u32 %v2339_v6, %v1995_v5  ;;  %s1852_s28 = sshll.u32 %s3537_s22, 3  ;;  %s1858_s29 = sshll.u32 %s3537_s22, 4  ;;  %v1983_v11 = vld [vmem:[%s3513_s2 + $0xf0] sm:$0xf]  ;;  %v2336_v12 = vld [vmem:[%s3513_s2 + $0xf8] sm:$0xf0]  ;;  %v1976_v16 = vor.u32 %v2332_v9, %v1973_v10 }
  0x12   : > { %s1854_s11 = sshll.u32 %s3539_s21, 2  ;;  %s1857_s12 = sshll.u32 %s3539_s21, 3  ;;  %v1984_v13 = vor.u32 %v2336_v12, %v1983_v11  ;;  %v1971_v14 = vld [vmem:[%s3513_s2 + $0xd8] sm:$0xf]  ;;  %v2333_v15 = vld [vmem:[%s3513_s2 + $0xe0] sm:$0xf0] }
  0x13   : > { %684 = vmatpush.bf16.msra.mxu1 %v1996_v8  ;;  %s312_s13 = sadd.s32 %s1854_s11, %s1852_s28  ;;  %s2617_s14 = sadd.s32 %s1858_s29, %s1857_s12  ;;  %v2329_v17 = vld [vmem:[%s3513_s2 + $0xc4] sm:$0xf]  ;;  %v1961_v18 = vld [vmem:[%s3513_s2 + $0xcc] sm:$0xf0]  ;;  %v1972_v21 = vor.u32 %v2333_v15, %v1971_v14  ;;  %v2340_v22 = vld [vmem:[%s3513_s2 + $0x118] sm:$0xf0] }
  0x14   : > { %s1856_s19 = sshll.u32 %s312_s13, 2  ;;  %v2003_v19 = vld [vmem:[%s3513_s2 + $0x110] sm:$0xf]  ;;  %v1959_v24 = vld [vmem:[%s3513_s2 + $0xc0] sm:$0xf]  ;;  %v1964_v27 = vor.u32 %v2329_v17, %v1961_v18  ;;  %s2511_s12 = smov 64  }
  0x15   : > { %733 = vmatpush.bf16.msra.mxu3 %v1988_v7  ;;  %s2628_s30 = scalar_lea.vmem %s3512_s1, %s1856_s19  ;;  %v2330_v25 = vld [vmem:[%s3513_s2 + $0xc8] sm:$0xf0]  ;;  %v1955_v26 = vld [vmem:[%s3513_s2 + $0xb0] sm:$0xf]  ;;  %v2328_v28 = vld [vmem:[%s3513_s2 + $0xb8] sm:$0xf0]  ;;  %v2004_v31 = vor.u32 %v2340_v22, %v2003_v19 }
  0x16   : > { %v2640_v20 = vld [vmem:[%s2628_s30 + $0x4] sm:$0xf]  ;;  %s300_s7 = scalar_select %p299_p7, %s2585_s8, 7  ;;  %v1947_v29 = vld [vmem:[%s3513_s2 + $0xa8] sm:$0xf]  ;;  %v1960_v35 = vor.u32 %v2330_v25, %v1959_v24  ;;  %v1956_v41 = vor.u32 %v2328_v28, %v1955_v26  ;;  %vm413_vm0 = vcmask 523264  }
  0x17   : > { %685 = vmatpush.bf16.msra.mxu1 %v1984_v13  ;;  %v389_v23 = vunpack.c.l.b16 %v2640_v20  ;;  %v2327_v32 = vld [vmem:[%s3513_s2 + $0xb0] sm:$0xf0]  ;;  %v2326_v33 = vld [vmem:[%s3513_s2 + $0xac] sm:$0xf]  ;;  %v1949_v34 = vld [vmem:[%s3513_s2 + $0xb4] sm:$0xf0] }
  0x18   : > { %s302_s19 = sadd.s32 %s1852_s28, %s300_s7  ;;  %v1991_v36 = vld [vmem:[%s3513_s2 + $0xf8] sm:$0xf]  ;;  %v2337_v37 = vld [vmem:[%s3513_s2 + $0x100] sm:$0xf0]  ;;  %v1948_v38 = vor.u32 %v2327_v32, %v1947_v29  ;;  %v1952_v39 = vor.u32 %v2326_v33, %v1949_v34  ;;  %v1935_v40 = vld [vmem:[%s3513_s2 + $0x90] sm:$0xf] }
  0x19   : > { %734 = vmatpush.bf16.msra.mxu3 %v1976_v16  ;;  %v395_v30 = vpack.c.b16 %v389_v23, %v389_v23  ;;  %s1853_s22 = sshll.u32 %s302_s19, 2  ;;  %v2324_v42 = vld [vmem:[%s3513_s2 + $0x98] sm:$0xf0]  ;;  %v2323_v43 = vld [vmem:[%s3513_s2 + $0x94] sm:$0xf]  ;;  %v1992_v48 = vor.u32 %v2337_v37, %v1991_v36  ;;  %v2714_v57 = vld [vmem:[%s2628_s30 + $0x8] sm:$0xff]  }
  0x1a   : > { %s304_s18 = scalar_lea.vmem %s3511_s0, %s1853_s22  ;;  %656 = vmatpush.bf16.msra.mxu0 %v1948_v38  ;;  %v1936_v44 = vor.u32 %v2324_v42, %v1935_v40  ;;  %v1937_v45 = vld [vmem:[%s3513_s2 + $0x9c] sm:$0xf0]  ;;  %704 = vmatpush.bf16.msra.mxu2 %v1952_v39  ;;  %v1943_v53 = vld [vmem:[%s3513_s2 + $0x98] sm:$0xf]  ;;  %v2325_v54 = vld [vmem:[%s3513_s2 + $0xa0] sm:$0xf0]  ;;  %v2415_v3 = vunpack.c.l.b16 %v2714_v57 }
  0x1b   : > { %686 = vmatpush.bf16.msra.mxu1 %v1972_v21  ;;  %401 = vrot.lane.b32.xlu0 %v395_v30, %s2511_s12  ;;  %v2696_v46 = vld [vmem:[%s304_s18 + $0x4] sm:$0xf]  ;;  %v2698_v47 = vld [vmem:[%s304_s18] sm:$0xf]  ;;  %v1940_v49 = vor.u32 %v2323_v43, %v1937_v45  ;;  %v2702_v52 = vld [vmem:[%s304_s18 + $0xc] sm:$0xf]  ;;  %v1944_v62 = vor.u32 %v2325_v54, %v1943_v53 }
  0x1c   : > { %v391_v50 = vunpack.c.l.b16 %v2696_v46  ;;  %v390_v51 = vunpack.c.l.b16 %v2698_v47  ;;  %v2710_v55 = vld [vmem:[%s304_s18 + $0x8] sm:$0xf]  ;;  %v393_v56 = vunpack.c.l.b16 %v2702_v52  ;;  %v1931_v0 = vld [vmem:[%s3513_s2 + $0x80] sm:$0xf]  ;;  %v2322_v1 = vld [vmem:[%s3513_s2 + $0x88] sm:$0xf0]  ;;  %v400_v21 = vpack.c.b16 %v2415_v3, %v2415_v3 }
  0x1d   : > { %735 = vmatpush.bf16.msra.mxu3 %v1964_v27  ;;  %v392_v63 = vunpack.c.l.b16 %v2710_v55  ;;  %v1979_v2 = vld [vmem:[%s3513_s2 + $0xe0] sm:$0xf]  ;;  %v2334_v4 = vld [vmem:[%s3513_s2 + $0xe8] sm:$0xf0]  ;;  %v1923_v5 = vld [vmem:[%s3513_s2 + $0x78] sm:$0xf]  ;;  %v1932_v10 = vor.u32 %v2322_v1, %v1931_v0 }
  0x1e   : > { %v397_v58 = vpack.c.b16 %v391_v50, %v391_v50  ;;  %v396_v59 = vpack.c.b16 %v390_v51, %v390_v51  ;;  %v2716_v60 = vpack.c.b16 %v391_v50, %v390_v51  ;;  %657 = vmatpush.bf16.msra.mxu0 %v1936_v44  ;;  %v399_v61 = vpack.c.b16 %v393_v56, %v393_v56  ;;  %v2321_v7 = vld [vmem:[%s3513_s2 + $0x80] sm:$0xf0]  ;;  %v2320_v8 = vld [vmem:[%s3513_s2 + $0x7c] sm:$0xf]  ;;  %v1925_v9 = vld [vmem:[%s3513_s2 + $0x84] sm:$0xf0] }
  0x1f   : > { %687 = vmatpush.bf16.msra.mxu1 %v1960_v35  ;;  %705 = vmatpush.bf16.msra.mxu2 %v1940_v49  ;;  %v1980_v6 = vor.u32 %v2334_v4, %v1979_v2  ;;  %v1924_v11 = vor.u32 %v2321_v7, %v1923_v5  ;;  %v1928_v12 = vor.u32 %v2320_v8, %v1925_v9  ;;  %v1911_v13 = vld [vmem:[%s3513_s2 + $0x60] sm:$0xf]  ;;  %v2318_v14 = vld [vmem:[%s3513_s2 + $0x68] sm:$0xf0]  ;;  %v2317_v15 = vld [vmem:[%s3513_s2 + $0x64] sm:$0xf] }
  0x20   : > { %405 = vrot.lane.b32.xlu1 %v397_v58, %s2511_s12  ;;  %2008 = vmatmul.msk.bf16.vlgmr.msra.gmra.mxu3 %vm413_vm0, %v2716_v60  ;;  %v398_v16 = vpack.c.b16 %v392_v63, %v392_v63  ;;  %v1919_v17 = vld [vmem:[%s3513_s2 + $0x68] sm:$0xf]  ;;  %v2319_v18 = vld [vmem:[%s3513_s2 + $0x70] sm:$0xf0]  ;;  %v1913_v19 = vld [vmem:[%s3513_s2 + $0x6c] sm:$0xf0]  ;;  %v1912_v22 = vor.u32 %v2318_v14, %v1911_v13  ;;  %v449_v34 = vpack.c.b16 %v393_v56, %v392_v63 }
  0x21   : > { %780 = vmatpush.bf16.msrb.mxu3 %v2004_v31  ;;  %409 = vrot.lane.b32.xlu2 %v399_v61, %s2511_s12  ;;  %v1916_v23 = vor.u32 %v2317_v15, %v1913_v19  ;;  %v1899_v24 = vld [vmem:[%s3513_s2 + $0x48] sm:$0xf]  ;;  %v2315_v25 = vld [vmem:[%s3513_s2 + $0x50] sm:$0xf0]  ;;  %v1920_v26 = vor.u32 %v2319_v18, %v1919_v17  ;;  %v2314_v27 = vld [vmem:[%s3513_s2 + $0x4c] sm:$0xf] }
  0x22   : > { %2005 = vmatmul.msk.bf16.vlgmr.msra.gmra.mxu1 %vm413_vm0, %v2716_v60  ;;  %658 = vmatpush.bf16.msra.mxu0 %v1924_v11  ;;  %v1901_v28 = vld [vmem:[%s3513_s2 + $0x54] sm:$0xf0]  ;;  %v1907_v29 = vld [vmem:[%s3513_s2 + $0x50] sm:$0xf]  ;;  %v2316_v30 = vld [vmem:[%s3513_s2 + $0x58] sm:$0xf0]  ;;  %v1900_v31 = vor.u32 %v2315_v25, %v1899_v24 }
  0x23   : > { %752 = vmatpush.bf16.msrb.mxu1 %v1956_v41  ;;  %403 = vrot.lane.b32.xlu0 %v396_v59, %s2511_s12  ;;  %v1904_v32 = vor.u32 %v2314_v27, %v1901_v28  ;;  %v1908_v33 = vor.u32 %v2316_v30, %v1907_v29  ;;  %v1967_v35 = vld [vmem:[%s3513_s2 + $0xc8] sm:$0xf]  ;;  %v2331_v36 = vld [vmem:[%s3513_s2 + $0xd0] sm:$0xf0]  ;;  %v1895_v37 = vld [vmem:[%s3513_s2 + $0x38] sm:$0xf] }
  0x24   : > { %706 = vmatpush.bf16.msra.mxu2 %v1928_v12  ;;  %v2313_v38 = vld [vmem:[%s3513_s2 + $0x40] sm:$0xf0]  ;;  %v1968_v39 = vor.u32 %v2331_v36, %v1967_v35  ;;  %v1887_v41 = vld [vmem:[%s3513_s2 + $0x30] sm:$0xf]  ;;  %v2312_v42 = vld [vmem:[%s3513_s2 + $0x38] sm:$0xf0] }
  0x25   : > { %781 = vmatpush.bf16.msrb.mxu3 %v1992_v48  ;;  %v1896_v40 = vor.u32 %v2313_v38, %v1895_v37  ;;  %v2311_v43 = vld [vmem:[%s3513_s2 + $0x34] sm:$0xf]  ;;  %v1888_v44 = vor.u32 %v2312_v42, %v1887_v41  ;;  %v1889_v45 = vld [vmem:[%s3513_s2 + $0x3c] sm:$0xf0]  ;;  %v1875_v48 = vld [vmem:[%s3513_s2 + $0x18] sm:$0xf] }
  0x26   : > { %659 = vmatpush.bf16.msra.mxu0 %v1912_v22  ;;  %v2309_v49 = vld [vmem:[%s3513_s2 + $0x20] sm:$0xf0]  ;;  %v1892_v50 = vor.u32 %v2311_v43, %v1889_v45  ;;  %v2308_v51 = vld [vmem:[%s3513_s2 + $0x1c] sm:$0xf]  ;;  %v1877_v53 = vld [vmem:[%s3513_s2 + $0x24] sm:$0xf0] }
  0x27   : > { %753 = vmatpush.bf16.msrb.mxu1 %v1944_v62  ;;  %v1883_v54 = vld [vmem:[%s3513_s2 + $0x20] sm:$0xf]  ;;  %v1876_v56 = vor.u32 %v2309_v49, %v1875_v48  ;;  %v2310_v58 = vld [vmem:[%s3513_s2 + $0x28] sm:$0xf0]  ;;  %v1880_v59 = vor.u32 %v2308_v51, %v1877_v53  ;;  %v2305_v0 = vld [vmem:[%s3513_s2 + $0x4] sm:$0xf] }
  0x28   : > { %407 = vrot.lane.b32.xlu1 %v398_v16, %s2511_s12  ;;  %707 = vmatpush.bf16.msra.mxu2 %v1916_v23  ;;  %v1884_v61 = vor.u32 %v2310_v58, %v1883_v54  ;;  %v1863_v62 = vld [vmem:[%s3513_s2] sm:$0xf]  ;;  %v2306_v63 = vld [vmem:[%s3513_s2 + $0x8] sm:$0xf0]  ;;  %v1871_v2 = vld [vmem:[%s3513_s2 + $0x8] sm:$0xf] }
  0x29   : > { %782 = vmatpush.bf16.msrb.mxu3 %v1980_v6  ;;  %411 = vrot.lane.b32.xlu2 %v400_v21, %s2511_s12  ;;  %v1864_v1 = vor.u32 %v2306_v63, %v1863_v62  ;;  %v2307_v3 = vld [vmem:[%s3513_s2 + $0x10] sm:$0xf0]  ;;  %v326_v7 = vld [vmem:[%s2628_s30] sm:$0xf]  ;;  %v2185_v29 = vld [vmem:[%s3515_s4 + $0x150] sm:$0xf] }
  0x2a   : > { %660 = vmatpush.bf16.msra.mxu0 %v1900_v31  ;;  %v1872_v5 = vor.u32 %v2307_v3, %v1871_v2  ;;  %v2387_v22 = vld [vmem:[%s3515_s4 + $0x170] sm:$0xf0]  ;;  %v2384_v30 = vld [vmem:[%s3515_s4 + $0x158] sm:$0xf0]  ;;  %v2101_v36 = vld [vmem:[%s3515_s4 + $0xa8] sm:$0xf] }
  0x2b   : > { %754 = vmatpush.bf16.msrb.mxu1 %v1932_v10  ;;  %v2363_v37 = vld [vmem:[%s3515_s4 + $0xb0] sm:$0xf0]  ;;  %v2362_v38 = vld [vmem:[%s3515_s4 + $0xac] sm:$0xf]  ;;  %v2089_v43 = vld [vmem:[%s3515_s4 + $0x90] sm:$0xf] }
  0x2c   : > { %708 = vmatpush.bf16.msra.mxu2 %v1904_v32  ;;  %v2359_v48 = vld [vmem:[%s3515_s4 + $0x94] sm:$0xf]  ;;  %v2091_v49 = vld [vmem:[%s3515_s4 + $0x9c] sm:$0xf0]  ;;  %v2173_v53 = vld [vmem:[%s3515_s4 + $0x138] sm:$0xf] }
  0x2d   : > { %783 = vmatpush.bf16.msrb.mxu3 %v1968_v39  ;;  %v2102_v39 = vor.u32 %v2363_v37, %v2101_v36  ;;  %v2094_v51 = vor.u32 %v2359_v48, %v2091_v49  ;;  %v2381_v54 = vld [vmem:[%s3515_s4 + $0x140] sm:$0xf0]  ;;  %v2077_v58 = vld [vmem:[%s3515_s4 + $0x78] sm:$0xf]  ;;  %v2079_v63 = vld [vmem:[%s3515_s4 + $0x84] sm:$0xf0] }
  0x2e   : > { %661 = vmatpush.bf16.msra.mxu0 %v1888_v44  ;;  %v2360_v44 = vld [vmem:[%s3515_s4 + $0x98] sm:$0xf0]  ;;  %v2353_v3 = vld [vmem:[%s3515_s4 + $0x64] sm:$0xf]  ;;  %v2137_v48 = vld [vmem:[%s3515_s4 + $0xf0] sm:$0xf] }
  0x2f   : > { %755 = vmatpush.bf16.msrb.mxu1 %v1920_v26  ;;  %v2090_v45 = vor.u32 %v2360_v44, %v2089_v43  ;;  %v2345_v36 = vld [vmem:[%s3515_s4 + $0x20] sm:$0xf0]  ;;  %v2344_v37 = vld [vmem:[%s3515_s4 + $0x1c] sm:$0xf]  ;;  %v2271_v44 = vld [vmem:[%s3515_s4 + $0x204] sm:$0xf0] }
  0x30   : > { %2009 = vmatmul.msk.bf16.gmra.mxu3 %vm413_vm0, %v449_v34  ;;  %709 = vmatpush.bf16.msra.mxu2 %v1892_v50  ;;  %v2404_v43 = vld [vmem:[%s3515_s4 + $0x1fc] sm:$0xf]  ;;  %s2014_s12 = sadd.s32 4294967295, %s2585_s8  ;;  %vm818_vm1 = vcmask 1040384   ;;  %vm843_vm2 = vcmask 1046528   ;;  %s1859_s10 = sshll.u32 %s2617_s14, 2 }
  0x31   : > { %v2372_v49 = vld [vmem:[%s3515_s4 + $0xf8] sm:$0xf0]  ;;  %s323_s30 = scalar_lea.vmem %s3517_s6, %s1859_s10 }
  0x32   : > { %2006 = vmatmul.msk.bf16.gmra.mxu1 %vm413_vm0, %v449_v34  ;;  %662 = vmatpush.bf16.msra.mxu0 %v1876_v56  ;;  %v2174_v56 = vor.u32 %v2381_v54, %v2173_v53  ;;  %v2138_v53 = vor.u32 %v2372_v49, %v2137_v48  ;;  %v2342_v54 = vld [vmem:[%s3515_s4 + $0x8] sm:$0xf0]  ;;  %v3122_v48 = vld [vmem:[%s3514_s3] ss:$0 sm:$0xff] }
  0x33   : > { %756 = vmatpush.bf16.msrb.mxu1 %v1908_v33 }
  0x34   : > { %710 = vmatpush.bf16.msra.mxu2 %v1880_v59  ;;  %v2357_v59 = vld [vmem:[%s3515_s4 + $0x80] sm:$0xf0] }
  0x35   : > { %v2078_v62 = vor.u32 %v2357_v59, %v2077_v58  ;;  %v2019_v58 = vld [vmem:[%s3515_s4 + $0xc] sm:$0xf0] }
  0x36   : > { %663 = vmatpush.bf16.msra.mxu0 %v1864_v1  ;;  %v2065_v1 = vld [vmem:[%s3515_s4 + $0x60] sm:$0xf] }
  0x37   : > { %757 = vmatpush.bf16.msrb.mxu1 %v1896_v40  ;;  %v2103_v40 = vld [vmem:[%s3515_s4 + $0xb4] sm:$0xf0] }
  0x38   : > { %v2106_v41 = vor.u32 %v2362_v38, %v2103_v40  ;;  %v2031_v38 = vld [vmem:[%s3515_s4 + $0x24] sm:$0xf0] }
  0x3a   : > { %1429 = vmatpush.bf16.msrb.mxu0 %v2102_v39 }
  0x3b   : > { %758 = vmatpush.bf16.msrb.mxu1 %v1884_v61  ;;  %v2356_v61 = vld [vmem:[%s3515_s4 + $0x7c] sm:$0xf] }
  0x3e   : > { %1430 = vmatpush.bf16.msrb.mxu0 %v2090_v45  ;;  %v2274_v45 = vor.u32 %v2404_v43, %v2271_v44  ;;  %v2405_v43 = vld [vmem:[%s3515_s4 + $0x200] sm:$0xf0]  ;;  %v2392_v44 = vld [vmem:[%s3515_s4 + $0x19c] sm:$0xf] }
  0x3f   : > { %759 = vmatpush.bf16.msrb.mxu1 %v1872_v5 }
  0x40   : > { %2010 = vmatmul.msk.bf16.gmra.mxu3 %vm413_vm0, %v2714_v57 }
  0x42   : > { %2007 = vmatmul.msk.bf16.gmra.mxu1 %vm413_vm0, %v2714_v57  ;;  %1431 = vmatpush.bf16.msrb.mxu0 %v2078_v62  ;;  %v2401_v62 = vld [vmem:[%s3515_s4 + $0x1e4] sm:$0xf] }
  0x43   : > { %1486 = vmatpush.bf16.msra.mxu1 %v2106_v41  ;;  %v2034_v41 = vor.u32 %v2344_v37, %v2031_v38  ;;  %v2199_v37 = vld [vmem:[%s3515_s4 + $0x174] sm:$0xf0] }
  0x44   : > { %v2269_v38 = vld [vmem:[%s3515_s4 + $0x1f8] sm:$0xf] }
  0x47   : > { %1487 = vmatpush.bf16.msra.mxu1 %v2094_v51  ;;  %v2017_v51 = vld [vmem:[%s3515_s4] sm:$0xf] }
  0x48   : > { %v2018_v59 = vor.u32 %v2342_v54, %v2017_v51  ;;  %v2223_v54 = vld [vmem:[%s3515_s4 + $0x1a4] sm:$0xf0] }
  0x50   : > { %2011 = vmatmul.msk.bf16.vlgmr.msrb.gmra.mxu3 %vm413_vm0, %v2716_v60  ;;  %v1865_v60 = vld [vmem:[%s3513_s2 + $0xc] sm:$0xf0] }
  0x51   : > { %v1868_v4 = vor.u32 %v2305_v0, %v1865_v60  ;;  %v2082_v0 = vor.u32 %v2356_v61, %v2079_v63  ;;  %v2354_v60 = vld [vmem:[%s3515_s4 + $0x68] sm:$0xf0]  ;;  %v2259_v63 = vld [vmem:[%s3515_s4 + $0x1ec] sm:$0xf0] }
  0x52   : > { %v2066_v2 = vor.u32 %v2354_v60, %v2065_v1  ;;  %v2125_v1 = vld [vmem:[%s3515_s4 + $0xd8] sm:$0xf]  ;;  %v2369_v60 = vld [vmem:[%s3515_s4 + $0xe0] sm:$0xf0] }
  0x53   : > { %711 = vmatpush.bf16.msra.mxu2 %v1868_v4  ;;  %1488 = vmatpush.bf16.msra.mxu1 %v2082_v0  ;;  %v2067_v4 = vld [vmem:[%s3515_s4 + $0x6c] sm:$0xf0]  ;;  %v2262_v0 = vor.u32 %v2401_v62, %v2259_v63  ;;  %v2226_v62 = vor.u32 %v2392_v44, %v2223_v54 }
  0x54   : > { %1432 = vmatpush.bf16.msrb.mxu0 %v2066_v2  ;;  %v2293_v2 = vld [vmem:[%s3515_s4 + $0x228] sm:$0xf]  ;;  %v2233_v54 = vld [vmem:[%s3515_s4 + $0x1b0] sm:$0xf] }
  0x60   : > { %2012 = vmatmul.msk.bf16.gmra.mxu3 %vm413_vm0, %v449_v34 }
  0x70   : > { %2013 = vmatmul.msk.bf16.gmra.mxu3 %vm413_vm0, %v2714_v57 }
  0x7b   : > { %v410_v19 = vpop.permute.xlu2 %409 }
  0x8d   : > { %v402_v6 = vpop.permute.xlu0 %401 }
  0x8e   : > { %v416_v8 = vsel %vm413_vm0, %v326_v7, %v402_v6  ;;  %v2070_v6 = vor.u32 %v2353_v3, %v2067_v4  ;;  %v2126_v4 = vor.u32 %v2369_v60, %v2125_v1 }
  0x8f   : > { %v439_v12 = vunpack.c.l.b16 %v416_v8  ;;  %v2161_v8 = vld [vmem:[%s3515_s4 + $0x120] sm:$0xf] }
  0x90   : > { %1489 = vmatpush.bf16.msra.mxu1 %v2070_v6  ;;  %v2411_v6 = vld [vmem:[%s3515_s4 + $0x230] sm:$0xf0] }
  0x92   : > { %v406_v9 = vpop.permute.xlu1 %405 }
  0x93   : > { %v422_v16 = vsel %vm413_vm0, %v2698_v47, %v406_v9  ;;  %v412_v47 = vpop.permute.xlu2 %411  ;;  %v2378_v9 = vld [vmem:[%s3515_s4 + $0x128] sm:$0xf0] }
  0x94   : > { %v441_v17 = vunpack.c.l.b16 %v422_v16  ;;  %v431_v24 = vsel %vm413_vm0, %v2702_v52, %v412_v47  ;;  %v2407_v47 = vld [vmem:[%s3515_s4 + $0x214] sm:$0xf] }
  0x95   : > { %v404_v10 = vpop.permute.xlu0 %403  ;;  %v444_v26 = vunpack.c.l.b16 %v431_v24 }
  0x96   : > { %v419_v11 = vsel %vm413_vm0, %v2640_v20, %v404_v10  ;;  %v2197_v20 = vld [vmem:[%s3515_s4 + $0x168] sm:$0xf] }
  0x97   : > { %v440_v13 = vunpack.c.l.b16 %v419_v11  ;;  %v2198_v23 = vor.u32 %v2387_v22, %v2197_v20  ;;  %v2053_v10 = vld [vmem:[%s3515_s4 + $0x48] sm:$0xf]  ;;  %v2162_v11 = vor.u32 %v2378_v9, %v2161_v8  ;;  %v2347_v20 = vld [vmem:[%s3515_s4 + $0x34] sm:$0xf]  ;;  %v2398_v8 = vld [vmem:[%s3515_s4 + $0x1cc] sm:$0xf] }
  0x98   : > { %v2247_v9 = vld [vmem:[%s3515_s4 + $0x1d4] sm:$0xf0] }
  0x99   : > { %v446_v14 = vpack.c.b16 %v440_v13, %v439_v12  ;;  %1448 = vmatpush.bf16.msrb.mxu2 %v2198_v23  ;;  %v2351_v12 = vld [vmem:[%s3515_s4 + $0x50] sm:$0xf0]  ;;  %v2350_v13 = vld [vmem:[%s3515_s4 + $0x4c] sm:$0xf]  ;;  %v2043_v23 = vld [vmem:[%s3515_s4 + $0x3c] sm:$0xf0] }
  0x9a   : > { %v408_v15 = vpop.permute.xlu1 %407  ;;  %v2046_v24 = vor.u32 %v2347_v20, %v2043_v23  ;;  %v2281_v20 = vld [vmem:[%s3515_s4 + $0x210] sm:$0xf] }
  0x9b   : > { %664 = vmatmul.bf16.vlgmr.msra.gmra.mxu0 %v446_v14  ;;  %712 = vmatmul.bf16.vlgmr.msra.gmra.mxu2 %v446_v14  ;;  %v425_v57 = vsel %vm413_vm0, %v2696_v46, %v408_v15  ;;  %v428_v46 = vsel %vm413_vm0, %v2710_v55, %v410_v19  ;;  %v2186_v55 = vor.u32 %v2384_v30, %v2185_v29  ;;  %v2041_v19 = vld [vmem:[%s3515_s4 + $0x30] sm:$0xf]  ;;  %v2375_v29 = vld [vmem:[%s3515_s4 + $0x110] sm:$0xf0]  ;;  %v2029_v30 = vld [vmem:[%s3515_s4 + $0x18] sm:$0xf] }
  0x9c   : > { %760 = vmatmul.bf16.vlgmr.msrb.gmra.mxu1 %v446_v14  ;;  %v442_v18 = vunpack.c.l.b16 %v425_v57  ;;  %v443_v25 = vunpack.c.l.b16 %v428_v46  ;;  %v2055_v14 = vld [vmem:[%s3515_s4 + $0x54] sm:$0xf0]  ;;  %v2054_v15 = vor.u32 %v2351_v12, %v2053_v10  ;;  %v2410_v57 = vld [vmem:[%s3515_s4 + $0x22c] sm:$0xf]  ;;  %v2283_v46 = vld [vmem:[%s3515_s4 + $0x21c] sm:$0xf0]  ;;  %v2030_v40 = vor.u32 %v2345_v36, %v2029_v30 }
  0x9d   : > { %1449 = vmatpush.bf16.msrb.mxu2 %v2186_v55  ;;  %v2058_v16 = vor.u32 %v2350_v13, %v2055_v14  ;;  %v2294_v13 = vor.u32 %v2411_v6, %v2293_v2  ;;  %v2250_v14 = vor.u32 %v2398_v8, %v2247_v9  ;;  %v2386_v36 = vld [vmem:[%s3515_s4 + $0x16c] sm:$0xf]  ;;  %v2257_v8 = vld [vmem:[%s3515_s4 + $0x1e0] sm:$0xf] }
  0x9e   : > { %v448_v21 = vpack.c.b16 %v442_v18, %v441_v17  ;;  %v450_v27 = vpack.c.b16 %v444_v26, %v443_v25  ;;  %v2295_v17 = vld [vmem:[%s3515_s4 + $0x234] sm:$0xf0]  ;;  %1433 = vmatpush.bf16.msrb.mxu0 %v2054_v15  ;;  %v2286_v25 = vor.u32 %v2407_v47, %v2283_v46  ;;  %v2205_v15 = vld [vmem:[%s3515_s4 + $0x170] sm:$0xf]  ;;  %v2395_v47 = vld [vmem:[%s3515_s4 + $0x1b4] sm:$0xf] }
  0x9f   : > { %v2888_v52 = vpop.f32.mrf.mxu1  ;;  %v2298_v18 = vor.u32 %v2410_v57, %v2295_v17  ;;  %1490 = vmatpush.bf16.msra.mxu1 %v2058_v16  ;;  %v2388_v16 = vld [vmem:[%s3515_s4 + $0x178] sm:$0xf0]  ;;  %v2235_v46 = vld [vmem:[%s3515_s4 + $0x1bc] sm:$0xf0]  ;;  %v2402_v9 = vld [vmem:[%s3515_s4 + $0x1e8] sm:$0xf0] }
  0xa0   : > { %v2206_v17 = vor.u32 %v2388_v16, %v2205_v15 }
  0xa1   : > { %1450 = vmatpush.bf16.msrb.mxu2 %v2174_v56  ;;  %1524 = vmatpush.bf16.msra.mxu3 %v2298_v18  ;;  %v2341_v56 = vld [vmem:[%s3515_s4 + $0x4] sm:$0xf]  ;;  %v2366_v18 = vld [vmem:[%s3515_s4 + $0xc8] sm:$0xf0] }
  0xa2   : > { %v2022_v61 = vor.u32 %v2341_v56, %v2019_v58  ;;  %v2181_v56 = vld [vmem:[%s3515_s4 + $0x140] sm:$0xf]  ;;  %v3133_v58 = vstv %s2014_s12 }
  0xa3   : > { %v2878_v28 = vpop.f32.mrf.mxu3  ;;  %1491 = vmatpush.bf16.msra.mxu1 %v2046_v24  ;;  %v3140_v60 = vadd.s32 1, %v3133_v58  ;;  %vm884_vm3 = vcmp.ge.s32.totalorder %v3133_v58, 0  ;;  %vm890_vm4 = vcmp.lt.s32.totalorder %v3133_v58, 8 }
  0xa4   : > { %vm3199_vm6 = vmand %vm884_vm3, %vm890_vm4 }
  0xa5   : > { %1451 = vmatpush.bf16.msrb.mxu2 %v2162_v11  ;;  %1525 = vmatpush.bf16.msra.mxu3 %v2286_v25  ;;  %vm885_vm5 = vcmp.ge.s32.totalorder %v3140_v60, 0  ;;  %vm891_vm7 = vcmp.lt.s32.totalorder %v3140_v60, 8 }
  0xa6   : > { %vm3239_vm8 = vmand %vm885_vm5, %vm891_vm7  ;;  %vm1652_vm7 = vcmask 1047556  }
  0xa7   : > { %v2892_v33 = vpop.f32.mrf.mxu1  ;;  %1492 = vmatpush.bf16.msra.mxu1 %v2034_v41 }
  0xa9   : > { %1526 = vmatpush.bf16.msra.mxu3 %v2274_v45 }
  0xab   : > { %669 = vmatmul.bf16.gmra.mxu0 %v448_v21  ;;  %717 = vmatmul.bf16.gmra.mxu2 %v448_v21  ;;  %v2886_v31 = vpop.f32.mrf.mxu3 }
  0xac   : > { %765 = vmatmul.bf16.gmra.mxu1 %v448_v21  ;;  %v2348_v21 = vld [vmem:[%s3515_s4 + $0x38] sm:$0xf0] }
  0xad   : > { %v2042_v22 = vor.u32 %v2348_v21, %v2041_v19  ;;  %1493 = vmatpush.bf16.msra.mxu1 %v2022_v61  ;;  %1527 = vmatpush.bf16.msra.mxu3 %v2262_v0 }
  0xaf   : > { %v2896_v35 = vpop.f32.mrf.mxu1  ;;  %1434 = vmatpush.bf16.msrb.mxu0 %v2042_v22  ;;  %v2408_v22 = vld [vmem:[%s3515_s4 + $0x218] sm:$0xf0] }
  0xb0   : > { %v2282_v23 = vor.u32 %v2408_v22, %v2281_v20  ;;  %v2175_v20 = vld [vmem:[%s3515_s4 + $0x144] sm:$0xf0] }
  0xb1   : > { %1528 = vmatpush.bf16.msra.mxu3 %v2250_v14  ;;  %1562 = vmatpush.bf16.msrb.mxu1 %v2206_v17  ;;  %v2379_v17 = vld [vmem:[%s3515_s4 + $0x130] sm:$0xf0] }
  0xb3   : > { %v2890_v32 = vpop.f32.mrf.mxu3  ;;  %1435 = vmatpush.bf16.msrb.mxu0 %v2030_v40 }
  0xb7   : > { %v2924_v50 = vpop.f32.mrf.mxu1  ;;  %1436 = vmatpush.bf16.msrb.mxu0 %v2018_v59 }
  0xbb   : > { %674 = vmatmul.bf16.gmra.mxu0 %v450_v27  ;;  %722 = vmatmul.bf16.gmra.mxu2 %v450_v27  ;;  %v2894_v34 = vpop.f32.mrf.mxu3 }
  0xbc   : > { %770 = vmatmul.bf16.gmra.mxu1 %v450_v27  ;;  %v2149_v27 = vld [vmem:[%s3515_s4 + $0x108] sm:$0xf]  ;;  %1467 = vmatpush.bf16.msra.mxu0 %v2294_v13  ;;  %v2211_v13 = vld [vmem:[%s3515_s4 + $0x18c] sm:$0xf0] }
  0xbd   : > { %v2150_v55 = vor.u32 %v2375_v29, %v2149_v27  ;;  %v2193_v27 = vld [vmem:[%s3515_s4 + $0x158] sm:$0xf]  ;;  %v2385_v29 = vld [vmem:[%s3515_s4 + $0x160] sm:$0xf0] }
  0xbf   : > { %v2958_v7 = vpop.f32.mrf.mxu1  ;;  %1452 = vmatpush.bf16.msrb.mxu2 %v2150_v55  ;;  %v2194_v55 = vor.u32 %v2385_v29, %v2193_v27 }
  0xc0   : > { %1468 = vmatpush.bf16.msra.mxu0 %v2282_v23 }
  0xc1   : > { %1563 = vmatpush.bf16.msrb.mxu1 %v2194_v55  ;;  %v2157_v55 = vld [vmem:[%s3515_s4 + $0x110] sm:$0xf] }
  0xc3   : > { %v2910_v42 = vpop.f32.mrf.mxu3  ;;  %1453 = vmatpush.bf16.msrb.mxu2 %v2138_v53  ;;  %v2270_v53 = vor.u32 %v2405_v43, %v2269_v38  ;;  %v3204_v38 = vadd.s32 2, %v3133_v58 }
  0xc5   : > { %1469 = vmatpush.bf16.msra.mxu0 %v2270_v53  ;;  %vm886_vm9 = vcmp.ge.s32.totalorder %v3204_v38, 0  ;;  %vm892_vm10 = vcmp.lt.s32.totalorder %v3204_v38, 8  ;;  %v2127_v38 = vld [vmem:[%s3515_s4 + $0xe4] sm:$0xf0] }
  0xc6   : > { %vm3319_vm11 = vmand %vm886_vm9, %vm892_vm10 }
  0xc7   : > { %v3020_v39 = vpop.f32.mrf.mxu1  ;;  %1454 = vmatpush.bf16.msrb.mxu2 %v2126_v4  ;;  %v2187_v4 = vld [vmem:[%s3515_s4 + $0x15c] sm:$0xf0] }
  0xcb   : > { %v2956_v5 = vpop.f32.mrf.mxu3 }
  0xd3   : > { %v785_v26 = vpop.f32.mrf.mxu3 }
  0xdb   : > { %v787_v12 = vpop.f32.mrf.mxu3 }
  0xe3   : > { %v790_v1 = vpop.f32.mrf.mxu3 }
 0x118   : > { %v665_v3 = vpop.f32.mrf.mxu0 }
 0x119   : > { %v690_v10 = vadd.f32 %v2888_v52, %v665_v3  ;;  %v761_v11 = vpop.f32.mrf.mxu1  ;;  %v2113_v52 = vld [vmem:[%s3515_s4 + $0xc0] sm:$0xf]  ;;  %v2383_v3 = vld [vmem:[%s3515_s4 + $0x154] sm:$0xf] }
 0x11a   : > { %v786_v57 = vadd.f32 %v785_v26, %v761_v11  ;;  %v2114_v21 = vor.u32 %v2366_v18, %v2113_v52  ;;  %v2238_v26 = vor.u32 %v2395_v47, %v2235_v46  ;;  %v2190_v6 = vor.u32 %v2383_v3, %v2187_v4  ;;  %v2245_v47 = vld [vmem:[%s3515_s4 + $0x1c8] sm:$0xf]  ;;  %v2109_v46 = vld [vmem:[%s3515_s4 + $0xb0] sm:$0xf] }
 0x11b   : > { %v806_v19 = vrot.slane %v690_v10, 7  ;;  %v2258_v11 = vor.u32 %v2402_v9, %v2257_v8  ;;  %v2373_v8 = vld [vmem:[%s3515_s4 + $0x100] sm:$0xf0] }
 0x11c   : > { %v831_v24 = vrot.slane %v786_v57, 1  ;;  %1455 = vmatpush.bf16.msrb.mxu2 %v2114_v21  ;;  %1529 = vmatpush.bf16.msra.mxu3 %v2238_v26  ;;  %v2169_v57 = vld [vmem:[%s3515_s4 + $0x128] sm:$0xf]  ;;  %v2380_v21 = vld [vmem:[%s3515_s4 + $0x13c] sm:$0xf] }
 0x11d   : > { %v819_v40 = vsel %vm818_vm1, 0.0, %v806_v19  ;;  %1470 = vmatpush.bf16.msra.mxu0 %v2258_v11  ;;  %v2170_v19 = vor.u32 %v2379_v17, %v2169_v57  ;;  %v2178_v23 = vor.u32 %v2380_v21, %v2175_v20  ;;  %v2221_v57 = vld [vmem:[%s3515_s4 + $0x198] sm:$0xf]  ;;  %v2085_v17 = vld [vmem:[%s3515_s4 + $0x80] sm:$0xf] }
 0x11e   : > { %v713_v25 = vpop.f32.mrf.mxu2  ;;  %v844_v59 = vsel %vm843_vm2, %v831_v24, 0.0 }
 0x11f   : > { %v738_v30 = vadd.f32 %v2878_v28, %v713_v25  ;;  %v2202_v28 = vor.u32 %v2386_v36, %v2199_v37 }
 0x120   : > { %v667_v41 = vpop.f32.mrf.mxu0  ;;  %1530 = vmatpush.bf16.msra.mxu3 %v2226_v62 }
 0x121   : > { %v850_v45 = vadd.f32 %v819_v40, %v738_v30  ;;  %v692_v49 = vadd.f32 %v2892_v33, %v667_v41  ;;  %v763_v51 = vpop.f32.mrf.mxu1  ;;  %1505 = vmatpush.bf16.msra.mxu2 %v2202_v28  ;;  %v2382_v33 = vld [vmem:[%s3515_s4 + $0x148] sm:$0xf0]  ;;  %v2364_v30 = vld [vmem:[%s3515_s4 + $0xb8] sm:$0xf0] }
 0x122   : > { %v788_v61 = vadd.f32 %v787_v12, %v763_v51  ;;  %v2182_v2 = vor.u32 %v2382_v33, %v2181_v56  ;;  %v2389_v12 = vld [vmem:[%s3515_s4 + $0x184] sm:$0xf]  ;;  %v3206_v40 = vor.u32 %v2364_v30, %v2109_v46  ;;  %v2376_v41 = vld [vmem:[%s3515_s4 + $0x118] sm:$0xf0]  ;;  %v2209_v30 = vld [vmem:[%s3515_s4 + $0x180] sm:$0xf] }
 0x123   : > { %v856_v63 = vadd.f32 %v850_v45, %v844_v59  ;;  %v807_v0 = vrot.slane %v692_v49, 7  ;;  %v2214_v16 = vor.u32 %v2389_v12, %v2211_v13  ;;  %v2158_v44 = vor.u32 %v2376_v41, %v2157_v55  ;;  %v2377_v45 = vld [vmem:[%s3515_s4 + $0x124] sm:$0xf]  ;;  %v2163_v49 = vld [vmem:[%s3515_s4 + $0x12c] sm:$0xf0] }
 0x124   : > { %1564 = vmatpush.bf16.msrb.mxu1 %v2182_v2  ;;  %v832_v14 = vrot.slane %v788_v61, 1  ;;  %v2166_v53 = vor.u32 %v2377_v45, %v2163_v49  ;;  %v2396_v56 = vld [vmem:[%s3515_s4 + $0x1b8] sm:$0xf0]  ;;  %v792_v61 = vpop.f32.mrf.mxu3  ;;  %v2374_v12 = vld [vmem:[%s3515_s4 + $0x10c] sm:$0xf] }
 0x125   : > { %v865_v10 = vadd.f32 %v3122_v48, %v856_v63  ;;  %1506 = vmatpush.bf16.msra.mxu2 %v2190_v6  ;;  %v820_v52 = vsel %vm818_vm1, 0.0, %v807_v0  ;;  %1531 = vmatpush.bf16.msra.mxu3 %v2214_v16  ;;  %v2234_v33 = vor.u32 %v2396_v56, %v2233_v54  ;;  %v2097_v63 = vld [vmem:[%s3515_s4 + $0x98] sm:$0xf]  ;;  %v2361_v0 = vld [vmem:[%s3515_s4 + $0xa0] sm:$0xf0] }
 0x126   : > { %v715_v15 = vpop.f32.mrf.mxu2  ;;  %v845_v36 = vsel %vm843_vm2, %v832_v14, 0.0  ;;  %v3244_v4 = vor.u32 %v2361_v0, %v2097_v63  ;;  %v2145_v6 = vld [vmem:[%s3515_s4 + $0xf8] sm:$0xf]  ;;  %v2390_v55 = vld [vmem:[%s3515_s4 + $0x188] sm:$0xf0]  ;;  %v881_v0 = vadd.s32 3, %v3133_v58 }
 0x127   : > { %v740_v18 = vadd.f32 %v2886_v31, %v715_v15  ;;  %v2399_v31 = vld [vmem:[%s3515_s4 + $0x1d0] sm:$0xf0]  ;;  %v871_v24 = vmax.f32 %v865_v10, 0.0  ;;  %v2146_v11 = vor.u32 %v2373_v8, %v2145_v6  ;;  %v2151_v13 = vld [vmem:[%s3515_s4 + $0x114] sm:$0xf0]  ;;  %v2210_v41 = vor.u32 %v2390_v55, %v2209_v30 }
 0x128   : > { %v670_v22 = vpop.f32.mrf.mxu0  ;;  %1565 = vmatpush.bf16.msrb.mxu1 %v2170_v19  ;;  %v2246_v29 = vor.u32 %v2399_v31, %v2245_v47  ;;  %v2154_v16 = vor.u32 %v2374_v12, %v2151_v13  ;;  %v2121_v49 = vld [vmem:[%s3515_s4 + $0xc8] sm:$0xf]  ;;  %v2352_v8 = vld [vmem:[%s3515_s4 + $0x58] sm:$0xf0]  ;;  %v2365_v13 = vld [vmem:[%s3515_s4 + $0xc4] sm:$0xf] }
 0x129   : > { %v851_v25 = vadd.f32 %v820_v52, %v740_v18  ;;  %v695_v26 = vadd.f32 %v2896_v35, %v670_v22  ;;  %v766_v27 = vpop.f32.mrf.mxu1  ;;  %1507 = vmatpush.bf16.msra.mxu2 %v2178_v23  ;;  %2418 = vmatpush.bf16.msrb.mxu3 %v3206_v40  ;;  %v914_v62 = vsel %vm3199_vm6, %v871_v24, 0.0  ;;  %v2358_v22 = vld [vmem:[%s3515_s4 + $0x88] sm:$0xf0]  ;;  %v2133_v23 = vld [vmem:[%s3515_s4 + $0xe0] sm:$0xf]  ;;  %vm887_vm12 = vcmp.ge.s32.totalorder %v881_v0, 0 }
 0x12a   : > { %v791_v37 = vadd.f32 %v790_v1, %v766_v27  ;;  %1471 = vmatpush.bf16.msra.mxu0 %v2246_v29  ;;  %v920_v15 = vpack.c.bf16 %v914_v62, %v914_v62  ;;  %v3279_v46 = vor.u32 %v2358_v22, %v2085_v17  ;;  %v2371_v24 = vld [vmem:[%s3515_s4 + $0xf4] sm:$0xf]  ;;  %v2349_v17 = vld [vmem:[%s3515_s4 + $0x40] sm:$0xf0]  ;;  %vm893_vm13 = vcmp.lt.s32.totalorder %v881_v0, 8 }
 0x12b   : > { %v857_v28 = vadd.f32 %v851_v25, %v845_v36  ;;  %v808_v43 = vrot.slane %v695_v26, 7  ;;  %v2139_v25 = vld [vmem:[%s3515_s4 + $0xfc] sm:$0xf0]  ;;  %vm3364_vm14 = vmand %vm887_vm12, %vm893_vm13  ;;  %v2289_v55 = vld [vmem:[%s3515_s4 + $0x218] sm:$0xf] }
 0x12c   : > { %v833_v51 = vrot.slane %v791_v37, 1  ;;  %1566 = vmatpush.bf16.msrb.mxu1 %v2158_v44  ;;  %v2142_v29 = vor.u32 %v2371_v24, %v2139_v25  ;;  %v1029_v37 = vunpack.c.l.b16 %v920_v15 }
 0x12d   : > { %v866_v59 = vadd.f32 %v3122_v48, %v857_v28  ;;  %v821_v1 = vsel %vm818_vm1, 0.0, %v808_v43  ;;  %1508 = vmatpush.bf16.msra.mxu2 %v2166_v53  ;;  %2419 = vmatpush.bf16.msrb.mxu3 %v3244_v4  ;;  %v2073_v28 = vld [vmem:[%s3515_s4 + $0x68] sm:$0xf]  ;;  %v2355_v43 = vld [vmem:[%s3515_s4 + $0x70] sm:$0xf0] }
 0x12e   : > { %v718_v2 = vpop.f32.mrf.mxu2  ;;  %v846_v60 = vsel %vm843_vm2, %v833_v51, 0.0  ;;  %1472 = vmatpush.bf16.msra.mxu0 %v2234_v33  ;;  %v3305_v45 = vor.u32 %v2355_v43, %v2073_v28  ;;  %v2367_v51 = vld [vmem:[%s3515_s4 + $0xd0] sm:$0xf0]  ;;  %v795_v33 = vpop.f32.mrf.mxu3 }
 0x12f   : > { %v872_v9 = vmax.f32 %v866_v59, 0.0  ;;  %v743_v10 = vadd.f32 %v2890_v32, %v718_v2  ;;  %v2393_v32 = vld [vmem:[%s3515_s4 + $0x1a0] sm:$0xf0] }
 0x130   : > { %v672_v14 = vpop.f32.mrf.mxu0  ;;  %1567 = vmatpush.bf16.msrb.mxu1 %v2146_v11  ;;  %v2222_v20 = vor.u32 %v2393_v32, %v2221_v57  ;;  %v2049_v32 = vld [vmem:[%s3515_s4 + $0x38] sm:$0xf] }
 0x131   : > { %v852_v52 = vadd.f32 %v821_v1, %v743_v10  ;;  %v697_v18 = vadd.f32 %v2924_v50, %v672_v14  ;;  %v768_v19 = vpop.f32.mrf.mxu1  ;;  %v915_v21 = vsel %vm3239_vm8, %v872_v9, 0.0  ;;  %1509 = vmatpush.bf16.msra.mxu2 %v2154_v16  ;;  %v2370_v50 = vld [vmem:[%s3515_s4 + $0xe8] sm:$0xf0]  ;;  %2420 = vmatpush.bf16.msrb.mxu3 %v3279_v46  ;;  %v2368_v1 = vld [vmem:[%s3515_s4 + $0xdc] sm:$0xf] }
 0x132   : > { %v793_v47 = vadd.f32 %v792_v61, %v768_v19  ;;  %v921_v31 = vpack.c.bf16 %v915_v21, %v915_v21  ;;  %1473 = vmatpush.bf16.msra.mxu0 %v2222_v20  ;;  %v2134_v27 = vor.u32 %v2370_v50, %v2133_v23  ;;  %v2122_v61 = vor.u32 %v2367_v51, %v2121_v49  ;;  %v2115_v14 = vld [vmem:[%s3515_s4 + $0xcc] sm:$0xf0] }
 0x133   : > { %v858_v26 = vadd.f32 %v852_v52, %v846_v60  ;;  %v809_v36 = vrot.slane %v697_v18, 7  ;;  %v2130_v6 = vor.u32 %v2368_v1, %v2127_v38  ;;  %v2118_v57 = vor.u32 %v2365_v13, %v2115_v14 }
 0x134   : > { %v1030_v35 = vunpack.c.l.b16 %v921_v31  ;;  %1568 = vmatpush.bf16.msrb.mxu1 %v2134_v27  ;;  %v834_v53 = vrot.slane %v793_v47, 1  ;;  %v3362_v20 = vor.u32 %v2349_v17, %v2049_v32  ;;  %v882_v31 = vadd.s32 4, %v3133_v58  ;;  %v2412_v27 = vld [vmem:[%s3515_s4 + $0x238] sm:$0xf0]  ;;  %v2253_v17 = vld [vmem:[%s3515_s4 + $0x1d0] sm:$0xf] }
 0x135   : > { %v867_v44 = vadd.f32 %v3122_v48, %v858_v26  ;;  %1510 = vmatpush.bf16.msra.mxu2 %v2142_v29  ;;  %v822_v2 = vsel %vm818_vm1, 0.0, %v809_v36  ;;  %2421 = vmatpush.bf16.msrb.mxu3 %v3305_v45  ;;  %v2301_v26 = vld [vmem:[%s3515_s4 + $0x230] sm:$0xf] }
 0x136   : > { %v720_v54 = vpop.f32.mrf.mxu2  ;;  %v3313_v56 = vpack.c.b16 %v1030_v35, %v1029_v37  ;;  %1474 = vmatpush.bf16.msra.mxu0 %v2210_v41  ;;  %v847_v15 = vsel %vm843_vm2, %v834_v53, 0.0  ;;  %v2302_v30 = vor.u32 %v2412_v27, %v2301_v26  ;;  %v797_v37 = vpop.f32.mrf.mxu3  ;;  %vm888_vm15 = vcmp.ge.s32.totalorder %v882_v31, 0 }
 0x137   : > { %v873_v62 = vmax.f32 %v867_v44, 0.0  ;;  %v745_v63 = vadd.f32 %v2894_v34, %v720_v54  ;;  %v2061_v34 = vld [vmem:[%s3515_s4 + $0x50] sm:$0xf]  ;;  %v2409_v44 = vld [vmem:[%s3515_s4 + $0x220] sm:$0xf0]  ;;  %vm894_vm0 = vcmp.lt.s32.totalorder %v882_v31, 8 }
 0x138   : > { %v675_v3 = vpop.f32.mrf.mxu0  ;;  %1437 = vmatmul.bf16.vlgmr.msrb.gmra.mxu0 %v3313_v56  ;;  %1494 = vmatmul.bf16.vlgmr.msra.gmra.mxu1 %v3313_v56  ;;  %v3344_v12 = vor.u32 %v2352_v8, %v2061_v34  ;;  %v2290_v54 = vor.u32 %v2409_v44, %v2289_v55  ;;  %vm900_vm3 = vmand %vm888_vm15, %vm894_vm0  ;;  %v2277_v34 = vld [vmem:[%s3515_s4 + $0x200] sm:$0xf]  ;;  %v2406_v8 = vld [vmem:[%s3515_s4 + $0x208] sm:$0xf0] }
 0x139   : > { %v853_v9 = vadd.f32 %v822_v2, %v745_v63  ;;  %v700_v60 = vadd.f32 %v2958_v7, %v675_v3  ;;  %v771_v10 = vpop.f32.mrf.mxu1  ;;  %v916_v11 = vsel %vm3319_vm11, %v873_v62, 0.0  ;;  %1569 = vmatpush.bf16.msrb.mxu1 %v2122_v61  ;;  %1511 = vmatpush.bf16.msra.mxu2 %v2130_v6  ;;  %v2343_v61 = vld [vmem:[%s3515_s4 + $0x10] sm:$0xf0]  ;;  %v883_v6 = vadd.s32 5, %v3133_v58  ;;  %v2265_v58 = vld [vmem:[%s3515_s4 + $0x1e8] sm:$0xf] }
 0x13a   : > { %v796_v7 = vadd.f32 %v795_v33, %v771_v10  ;;  %v922_v16 = vpack.c.bf16 %v916_v11, %v916_v11  ;;  %1543 = vmatpush.bf16.msrb.mxu0 %v3206_v40  ;;  %2422 = vmatpush.bf16.msrb.mxu3 %v3344_v12  ;;  %v2403_v10 = vld [vmem:[%s3515_s4 + $0x1f0] sm:$0xf0]  ;;  %v2394_v31 = vld [vmem:[%s3515_s4 + $0x1a8] sm:$0xf0] }
 0x13b   : > { %v859_v52 = vadd.f32 %v853_v9, %v847_v15  ;;  %v810_v18 = vrot.slane %v700_v60, 7  ;;  %v2266_v14 = vor.u32 %v2403_v10, %v2265_v58  ;;  %vm889_vm4 = vcmp.ge.s32.totalorder %v883_v6, 0 }
 0x13c   : > { %v1031_v19 = vunpack.c.l.b16 %v922_v16  ;;  %v835_v22 = vrot.slane %v796_v7, 1  ;;  %vm895_vm5 = vcmp.lt.s32.totalorder %v883_v6, 8 }
 0x13d   : > { %v868_v21 = vadd.f32 %v3122_v48, %v859_v52  ;;  %1512 = vmatpush.bf16.msra.mxu2 %v2118_v57  ;;  %v823_v24 = vsel %vm818_vm1, 0.0, %v810_v18  ;;  %vm901_vm6 = vmand %vm889_vm4, %vm895_vm5  ;;  %v2400_v52 = vld [vmem:[%s3515_s4 + $0x1d8] sm:$0xf0] }
 0x13e   : > { %v723_v23 = vpop.f32.mrf.mxu2  ;;  %v3368_v47 = vpack.c.b16 %v1031_v19, %v1030_v35  ;;  %1544 = vmatpush.bf16.msrb.mxu0 %v3244_v4  ;;  %v2037_v4 = vld [vmem:[%s3515_s4 + $0x20] sm:$0xf]  ;;  %2423 = vmatpush.bf16.msrb.mxu3 %v3362_v20  ;;  %v848_v51 = vsel %vm843_vm2, %v835_v22, 0.0  ;;  %v2254_v18 = vor.u32 %v2400_v52, %v2253_v17 }
 0x13f   : > { %v874_v50 = vmax.f32 %v868_v21, 0.0  ;;  %v748_v25 = vadd.f32 %v2910_v42, %v723_v23  ;;  %v2346_v42 = vld [vmem:[%s3515_s4 + $0x28] sm:$0xf0]  ;;  %v2229_v23 = vld [vmem:[%s3515_s4 + $0x1a0] sm:$0xf] }
 0x140   : > { %v677_v29 = vpop.f32.mrf.mxu0  ;;  %1456 = vmatmul.bf16.vlgmr.msrb.gmra.mxu2 %v3368_v47  ;;  %v3394_v43 = vor.u32 %v2346_v42, %v2037_v4 }
 0x141   : > { %v917_v36 = vsel %vm3364_vm14, %v874_v50, 0.0  ;;  %v854_v35 = vadd.f32 %v823_v24, %v748_v25  ;;  %v702_v41 = vadd.f32 %v3020_v39, %v677_v29  ;;  %v773_v28 = vpop.f32.mrf.mxu1  ;;  %1581 = vmatpush.bf16.msrb.mxu2 %v2302_v30  ;;  %v2025_v39 = vld [vmem:[%s3515_s4 + $0x8] sm:$0xf]  ;;  %v2230_v50 = vor.u32 %v2394_v31, %v2229_v23  ;;  %v2391_v25 = vld [vmem:[%s3515_s4 + $0x190] sm:$0xf0] }
 0x142   : > { %v923_v49 = vpack.c.bf16 %v917_v36, %v917_v36  ;;  %v798_v53 = vadd.f32 %v797_v37, %v773_v28  ;;  %1545 = vmatpush.bf16.msrb.mxu0 %v3279_v46  ;;  %2424 = vmatpush.bf16.msrb.mxu3 %v3394_v43  ;;  %v2026_v38 = vor.u32 %v2343_v61, %v2025_v39  ;;  %v2217_v24 = vld [vmem:[%s3515_s4 + $0x188] sm:$0xf] }
 0x143   : > { %v860_v59 = vadd.f32 %v854_v35, %v848_v51  ;;  %v811_v33 = vrot.slane %v702_v41, 7  ;;  %v2218_v26 = vor.u32 %v2391_v25, %v2217_v24 }
 0x144   : > { %v1032_v62 = vunpack.c.l.b16 %v923_v49  ;;  %v836_v0 = vrot.slane %v798_v53, 1 }
 0x145   : > { %v869_v63 = vadd.f32 %v3122_v48, %v860_v59  ;;  %1582 = vmatpush.bf16.msrb.mxu2 %v2290_v54  ;;  %v824_v9 = vsel %vm818_vm1, 0.0, %v811_v33 }
 0x146   : > { %v3409_v46 = vpack.c.b16 %v1032_v62, %v1031_v19  ;;  %v725_v1 = vpop.f32.mrf.mxu2  ;;  %1546 = vmatpush.bf16.msrb.mxu0 %v3305_v45  ;;  %v2278_v45 = vor.u32 %v2406_v8, %v2277_v34  ;;  %v849_v11 = vsel %vm843_vm2, %v836_v0, 0.0  ;;  %2425 = vmatpush.bf16.msrb.mxu3 %v2026_v38 }
 0x147   : > { %v875_v2 = vmax.f32 %v869_v63, 0.0  ;;  %v750_v3 = vadd.f32 %v2956_v5, %v725_v1 }
 0x148   : > { %1442 = vmatmul.bf16.gmra.mxu0 %v3409_v46  ;;  %1499 = vmatmul.bf16.gmra.mxu1 %v3409_v46 }
 0x149   : > { %v855_v60 = vadd.f32 %v824_v9, %v750_v3  ;;  %1532 = vmatmul.bf16.vlgmr.msra.gmra.mxu3 %v3409_v46  ;;  %v918_v5 = vsel %vm900_vm3, %v875_v2, 0.0  ;;  %1583 = vmatpush.bf16.msrb.mxu2 %v2278_v45 }
 0x14a   : > { %v924_v13 = vpack.c.bf16 %v918_v5, %v918_v5  ;;  %1547 = vmatpush.bf16.msrb.mxu0 %v3344_v12  ;;  %v2397_v12 = vld [vmem:[%s3515_s4 + $0x1c0] sm:$0xf0] }
 0x14b   : > { %v861_v15 = vadd.f32 %v855_v60, %v849_v11 }
 0x14c   : > { %v1033_v7 = vunpack.c.l.b16 %v924_v13 }
 0x14d   : > { %v870_v16 = vadd.f32 %v3122_v48, %v861_v15  ;;  %1584 = vmatpush.bf16.msrb.mxu2 %v2266_v14  ;;  %v2241_v48 = vld [vmem:[%s3515_s4 + $0x1b8] sm:$0xf] }
 0x14e   : > { %v1038_v57 = vpack.c.b16 %v1033_v7, %v1032_v62  ;;  %1548 = vmatpush.bf16.msrb.mxu0 %v3362_v20  ;;  %v2242_v20 = vor.u32 %v2397_v12, %v2241_v48 }
 0x14f   : > { %v876_v32 = vmax.f32 %v870_v16, 0.0 }
 0x150   : > { %1461 = vmatmul.bf16.gmra.mxu2 %v1038_v57 }
 0x151   : > { %v919_v19 = vsel %vm901_vm6, %v876_v32, 0.0  ;;  %1585 = vmatpush.bf16.msrb.mxu2 %v2254_v18 }
 0x152   : > { %v925_v21 = vpack.c.bf16 %v919_v19, %v919_v19  ;;  %1549 = vmatpush.bf16.msrb.mxu0 %v3394_v43  ;;  %v2470_v19 = vld [vmem:[%s3516_s5] ss:$0 sm:$0xff] }
 0x154   : > { %v1034_v40 = vunpack.c.l.b16 %v925_v21 }
 0x155   : > { %1586 = vmatpush.bf16.msrb.mxu2 %v2242_v20 }
 0x156   : > { %v1039_v22 = vpack.c.b16 %v1034_v40, %v1033_v7  ;;  %1550 = vmatpush.bf16.msrb.mxu0 %v2026_v38 }
 0x158   : > { %1475 = vmatmul.bf16.vlgmr.msra.gmra.mxu0 %v3409_v46  ;;  %1570 = vmatmul.bf16.vlgmr.msrb.gmra.mxu1 %v3368_v47 }
 0x159   : > { %1537 = vmatmul.bf16.gmra.mxu3 %v1039_v22  ;;  %1587 = vmatpush.bf16.msrb.mxu2 %v2230_v50 }
 0x15d   : > { %1588 = vmatpush.bf16.msrb.mxu2 %v2218_v26 }
 0x160   : > { %1513 = vmatmul.bf16.vlgmr.msra.gmra.mxu2 %v3368_v47 }
 0x168   : > { %1480 = vmatmul.bf16.gmra.mxu0 %v1039_v22  ;;  %1575 = vmatmul.bf16.gmra.mxu1 %v1038_v57 }
 0x169   : > { %1556 = vmatmul.bf16.vlgmr.msrb.gmra.mxu3 %v3409_v46 }
 0x170   : > { %1518 = vmatmul.bf16.gmra.mxu2 %v1038_v57 }
 0x178   : > { %1551 = vmatmul.bf16.vlgmr.msrb.gmra.mxu0 %v3313_v56 }
 0x180   : > { %1589 = vmatmul.bf16.vlgmr.msrb.gmra.mxu2 %v3409_v46 }
 0x190   : > { %1594 = vmatmul.bf16.gmra.mxu2 %v1039_v22 }
 0x1b5   : > { %v1438_v27 = vpop.f32.mrf.mxu0  ;;  %v1495_v37 = vpop.f32.mrf.mxu1 }
 0x1bd   : > { %v1440_v29 = vpop.f32.mrf.mxu0  ;;  %v1497_v28 = vpop.f32.mrf.mxu1 }
 0x1c3   : > { %v1457_v30 = vpop.f32.mrf.mxu2 }
 0x1c4   : > { %v1458_v4 = vadd.f32 %v1457_v30, %v1438_v27 }
 0x1c5   : > { %v1443_v42 = vpop.f32.mrf.mxu0  ;;  %v1500_v51 = vpop.f32.mrf.mxu1 }
 0x1cb   : > { %v1459_v55 = vpop.f32.mrf.mxu2 }
 0x1cc   : > { %v1533_v49 = vpop.f32.mrf.mxu3  ;;  %v1460_v60 = vadd.f32 %v1459_v55, %v1440_v29 }
 0x1cd   : > { %v1445_v36 = vpop.f32.mrf.mxu0  ;;  %v1502_v59 = vpop.f32.mrf.mxu1 }
 0x1d3   : > { %v1462_v35 = vpop.f32.mrf.mxu2 }
 0x1d4   : > { %v1535_v54 = vpop.f32.mrf.mxu3  ;;  %v1463_v10 = vadd.f32 %v1462_v35, %v1443_v42 }
 0x1d5   : > { %v1476_v47 = vpop.f32.mrf.mxu0  ;;  %v1571_v33 = vpop.f32.mrf.mxu1 }
 0x1d6   : > { %v1477_v3 = vadd.f32 %v1476_v47, %v1458_v4 }
 0x1d8   : > { %v1604_v9 = vrot.slane %v1477_v3, 7 }
 0x1da   : > { %v1612_v15 = vsel %vm818_vm1, 0.0, %v1604_v9 }
 0x1db   : > { %v1464_v41 = vpop.f32.mrf.mxu2 }
 0x1dc   : > { %v1538_v62 = vpop.f32.mrf.mxu3  ;;  %v1465_v50 = vadd.f32 %v1464_v41, %v1445_v36 }
 0x1dd   : > { %v1478_v43 = vpop.f32.mrf.mxu0  ;;  %v1573_v2 = vpop.f32.mrf.mxu1 }
 0x1de   : > { %v1479_v13 = vadd.f32 %v1478_v43, %v1460_v60 }
 0x1e0   : > { %v1605_v48 = vrot.slane %v1479_v13, 7 }
 0x1e2   : > { %v1613_v25 = vsel %vm818_vm1, 0.0, %v1605_v48 }
 0x1e3   : > { %v1514_v44 = vpop.f32.mrf.mxu2 }
 0x1e4   : > { %v1540_v46 = vpop.f32.mrf.mxu3  ;;  %v1515_v34 = vadd.f32 %v1514_v44, %v1495_v37 }
 0x1e5   : > { %v1481_v56 = vpop.f32.mrf.mxu0  ;;  %v1576_v17 = vpop.f32.mrf.mxu1 }
 0x1e6   : > { %v1534_v5 = vadd.f32 %v1533_v49, %v1515_v34  ;;  %v1482_v7 = vadd.f32 %v1481_v56, %v1463_v10 }
 0x1e8   : > { %v1632_v32 = vadd.f32 %v1612_v15, %v1534_v5  ;;  %v1606_v21 = vrot.slane %v1482_v7, 7 }
 0x1ea   : > { %v1614_v27 = vsel %vm818_vm1, 0.0, %v1606_v21 }
 0x1eb   : > { %v1516_v53 = vpop.f32.mrf.mxu2 }
 0x1ec   : > { %v1557_v14 = vpop.f32.mrf.mxu3  ;;  %v1517_v52 = vadd.f32 %v1516_v53, %v1497_v28 }
 0x1ed   : > { %v1483_v61 = vpop.f32.mrf.mxu0  ;;  %v1577_v20 = vadd.f32 %v1576_v17, %v1557_v14  ;;  %v1578_v28 = vpop.f32.mrf.mxu1 }
 0x1ee   : > { %v1536_v22 = vadd.f32 %v1535_v54, %v1517_v52  ;;  %v1484_v29 = vadd.f32 %v1483_v61, %v1465_v50  ;;  %v2512_v54 = vmov 1983009808  }
 0x1f0   : > { %v1633_v42 = vadd.f32 %v1613_v25, %v1536_v22  ;;  %v1607_v41 = vrot.slane %v1484_v29, 7 }
 0x1f3   : > { %v1519_v39 = vpop.f32.mrf.mxu2 }
 0x1f4   : > { %v1520_v18 = vadd.f32 %v1519_v39, %v1500_v51  ;;  %v1559_v37 = vpop.f32.mrf.mxu3  ;;  %v1657_v39 = vunpack.c.l.s4 %v2512_v54 }
 0x1f5   : > { %v1552_v0 = vpop.f32.mrf.mxu0  ;;  %v1579_v49 = vadd.f32 %v1578_v28, %v1559_v37 }
 0x1f6   : > { %v1572_v38 = vadd.f32 %v1571_v33, %v1552_v0  ;;  %v1539_v23 = vadd.f32 %v1538_v62, %v1520_v18  ;;  %v1658_v3 = vunpack.c.0.s8 %v1657_v39 }
 0x1f8   : > { %v1634_v55 = vadd.f32 %v1614_v27, %v1539_v23 }
 0x1fb   : > { %v1521_v63 = vpop.f32.mrf.mxu2 }
 0x1fc   : > { %v1522_v35 = vadd.f32 %v1521_v63, %v1502_v59  ;;  %v1615_v59 = vsel %vm818_vm1, 0.0, %v1607_v41  ;;  %vm1720_vm1 = vcmask 1043456  }
 0x1fd   : > { %v1554_v8 = vpop.f32.mrf.mxu0 }
 0x1fe   : > { %v1574_v11 = vadd.f32 %v1573_v2, %v1554_v8  ;;  %v1541_v51 = vadd.f32 %v1540_v46, %v1522_v35 }
 0x203   : > { %v1590_v1 = vpop.f32.mrf.mxu2 }
 0x204   : > { %v1591_v6 = vadd.f32 %v1590_v1, %v1572_v38  ;;  %v1635_v1 = vadd.f32 %v1615_v59, %v1541_v51 }
 0x206   : > { %v1620_v45 = vrot.slane %v1591_v6, 1 }
 0x208   : > { %v1628_v16 = vsel %vm843_vm2, %v1620_v45, 0.0  ;;  %v2513_v45 = vmov 1934713408  }
 0x209   : > { %v1636_v12 = vadd.f32 %v1632_v32, %v1628_v16  ;;  %v1681_v60 = vunpack.c.l.s4 %v2513_v45 }
 0x20b   : > { %v1592_v58 = vpop.f32.mrf.mxu2  ;;  %v1643_v26 = vadd.f32 %v2470_v19, %v1636_v12  ;;  %v1682_v15 = vunpack.c.0.s8 %v1681_v60 }
 0x20c   : > { %v1593_v57 = vadd.f32 %v1592_v58, %v1574_v11 }
 0x20d   : > { %v1647_v43 = vmax.f32 %v1643_v26, 0.0 }
 0x20e   : > { %v1621_v40 = vrot.slane %v1593_v57, 1 }
 0x20f   : > { %v1654_v62 = vrot.slane %v1647_v43, 4 }
 0x210   : > { %v1629_v30 = vsel %vm843_vm2, %v1621_v40, 0.0 }
 0x211   : > { %v1637_v44 = vadd.f32 %v1633_v42, %v1629_v30 }
 0x213   : > { %v1595_v31 = vpop.f32.mrf.mxu2  ;;  %v1644_v33 = vadd.f32 %v2470_v19, %v1637_v44 }
 0x214   : > { %v1596_v24 = vadd.f32 %v1595_v31, %v1577_v20 }
 0x215   : > { %v1648_v46 = vmax.f32 %v1644_v33, 0.0 }
 0x216   : > { %v1622_v4 = vrot.slane %v1596_v24, 1 }
 0x217   : > { %v1666_v58 = vrot.slane %v1648_v46, 4 }
 0x218   : > { %v1630_v47 = vsel %vm843_vm2, %v1622_v4, 0.0 }
 0x219   : > { %v1638_v36 = vadd.f32 %v1634_v55, %v1630_v47 }
 0x21b   : > { %v1645_v56 = vadd.f32 %v2470_v19, %v1638_v36  ;;  %v1597_v53 = vpop.f32.mrf.mxu2 }
 0x21c   : > { %v1598_v61 = vadd.f32 %v1597_v53, %v1579_v49 }
 0x21d   : > { %v1649_v0 = vmax.f32 %v1645_v56, 0.0 }
 0x21e   : > { %v1623_v63 = vrot.slane %v1598_v61, 1 }
 0x21f   : > { %v1651_v38 = vrot.slane %v1649_v0, 4  ;;  %v1655_v2 = vsel %vm1652_vm7, %v1649_v0, %v1654_v62 }
 0x220   : > { %v1631_v6 = vsel %vm843_vm2, %v1623_v63, 0.0  ;;  %v1663_v5 = vperm.slane %v1655_v2, %v1658_v3 }
 0x221   : > { %v1653_v34 = vsel %vm1652_vm7, %v1651_v38, %v1647_v43  ;;  %v1639_v8 = vadd.f32 %v1635_v1, %v1631_v6 }
 0x222   : > { %v1659_v11 = vperm.slane %v1653_v34, %v1658_v3  ;;  %v1690_v7 = vrot.slane %v1663_v5, 4 }
 0x223   : > { %v1646_v9 = vadd.f32 %v2470_v19, %v1639_v8 }
 0x224   : > { %v1678_v32 = vrot.slane %v1659_v11, 4 }
 0x225   : > { %v1650_v10 = vmax.f32 %v1646_v9, 0.0 }
 0x227   : > { %v1664_v13 = vrot.slane %v1650_v10, 4  ;;  %v1667_v14 = vsel %vm1652_vm7, %v1650_v10, %v1666_v58 }
 0x228   : > { %v1675_v16 = vperm.slane %v1667_v14, %v1658_v3 }
 0x229   : > { %v1665_v57 = vsel %vm1652_vm7, %v1664_v13, %v1648_v46 }
 0x22a   : > { %v1671_v17 = vperm.slane %v1665_v57, %v1658_v3  ;;  %v1688_v52 = vrot.slane %v1675_v16, 4  ;;  %v1691_v18 = vsel %vm1652_vm7, %v1675_v16, %v1690_v7 }
 0x22b   : > { %v1699_v48 = vperm.slane %v1691_v18, %v1682_v15 }
 0x22c   : > { %v1676_v12 = vrot.slane %v1671_v17, 4  ;;  %v1679_v19 = vsel %vm1652_vm7, %v1671_v17, %v1678_v32  ;;  %v1689_v21 = vsel %vm1652_vm7, %v1688_v52, %v1663_v5 }
 0x22d   : > { %v1687_v20 = vperm.slane %v1679_v19, %v1682_v15  ;;  %v1695_v40 = vperm.slane %v1689_v21, %v1682_v15  ;;  %v1706_v22 = vrot.slane %v1699_v48, 4 }
 0x22e   : > { %v1677_v23 = vsel %vm1652_vm7, %v1676_v12, %v1659_v11 }
 0x22f   : > { %v1683_v31 = vperm.slane %v1677_v23, %v1682_v15  ;;  %v1702_v50 = vrot.slane %v1687_v20, 4  ;;  %v1704_v24 = vrot.slane %v1695_v40, 4  ;;  %v1707_v25 = vsel %vm1652_vm7, 0.0, %v1706_v22 }
 0x230   : > { %v1719_v26 = vrot.slane %v1707_v25, 4 }
 0x231   : > { %v1700_v27 = vrot.slane %v1683_v31, 4  ;;  %v1703_v29 = vsel %vm1652_vm7, 0.0, %v1702_v50  ;;  %v1705_v30 = vsel %vm1652_vm7, 0.0, %v1704_v24 }
 0x232   : > { %v1717_v4 = vrot.slane %v1703_v29, 4  ;;  %v1718_v42 = vrot.slane %v1705_v30, 4  ;;  %v1724_v55 = vsel %vm1720_vm1, %v1699_v48, %v1719_v26 }
 0x233   : > { %v1701_v37 = vsel %vm1652_vm7, 0.0, %v1700_v27  ;;  %1732 = vst [vmem:[%s323_s30 + $0x18] sm:$0xff] %v1724_v55 }
 0x234   : > { %v1716_v35 = vrot.slane %v1701_v37, 4  ;;  %v1722_v47 = vsel %vm1720_vm1, %v1687_v20, %v1717_v4  ;;  %v1723_v28 = vsel %vm1720_vm1, %v1695_v40, %v1718_v42 }
 0x235   : > { %1730 = vst [vmem:[%s323_s30 + $0x8] sm:$0xff] %v1722_v47 }
 0x236   : > { %v1721_v43 = vsel %vm1720_vm1, %v1683_v31, %v1716_v35  ;;  %1731 = vst [vmem:[%s323_s30 + $0x10] sm:$0xff] %v1723_v28 }
 0x237   : > { %1729 = vst [vmem:[%s323_s30] sm:$0xff] %v1721_v43 }
 0x238 PF: > { %s16_s25 = sadd.s32 1, %s2509_s25   ;;  %s3526_s21 = smov %s2501_s23 }
 0x239   : > { %p13_p8 = scmp.ge.s32.totalorder %s16_s25, 6   ;;  %s3527_s22 = smov %s2505_s24 }
 0x23a   : > { %s3528_s23 = smov %s3531_s26  ;;  %s3529_s24 = smov %s3535_s27 }
 0x23b   :  { %15 = sbr.rel (!%p13_p8) target bundleno = 3 (0x3), region = 77 }

</bundles_post_ra>
